<compile_context>
chip_gen: v5e
topology: v5e:2x2
jax: 0.10.0
libtpu: 0.0.40
codegen_flags: <defaults>
</compile_context>

<pallas_src>
import functools
import math

import jax
import jax.numpy as jnp
from jax import lax
from jax.experimental import pallas as pl
from jax.experimental.pallas import tpu as pltpu


# --------------------------------------------------------------------------
# Small helpers
# --------------------------------------------------------------------------
def _round_up(x, m):
    return ((x + m - 1) // m) * m


def _vmem_limit(est_bytes, lo=32 << 20, hi=64 << 20):
    """Scoped-VMEM limit with 2x headroom, clamped to a safe range."""
    return int(min(max(2 * est_bytes, lo), hi))


def _largest_tile(m, max_tile):
    """Largest multiple-of-8 divisor of m that is <= max_tile (m if small)."""
    if m <= max_tile:
        return m
    for t in range(max_tile - max_tile % 8, 7, -8):
        if m % t == 0:
            return t
    return m


# --------------------------------------------------------------------------
# Pallas kernels
# --------------------------------------------------------------------------
def _project_l2norm_kernel(x_ref, w_ref, b_ref, o_ref, *, scale):
    """Batched WK projection + L2 normalize + sqrt(1/tau) scaling.

    x_ref: (tm, C) f32   w_ref: (C, Kd) bf16   b_ref: (1, Kd) f32
    o_ref: (tm, Kd) bf16  (normalized, tau-folded keys/queries for the MXU)
    """
    x = x_ref[...].astype(jnp.bfloat16)
    proj = jnp.dot(x, w_ref[...], preferred_element_type=jnp.float32)
    proj = proj + b_ref[...]
    ss = jnp.sum(proj * proj, axis=-1, keepdims=True)
    # F.normalize(p=2, dim=-1) eps-clamp, then * sqrt(1/tau) so that
    # q_scaled . k_scaled == (q . k) / tau  (tau never touches the (rows,L)
    # scores matrix inside the attention kernels).
    o_ref[...] = (proj * (lax.rsqrt(jnp.maximum(ss, 1e-24)) * scale)
                  ).astype(o_ref.dtype)


def _self_attn_norm_kernel(x_ref, qkn_ref, o_ref, v_bf16, *, rows, hw, eps):
    """Fused self-attention + residual + per-frame InstanceNorm.

    Grid: (sequence, query-frame-block).  The full-L blocks below are resident
    across the inner frame axis; query / residual rows are sliced out of them
    (no duplicate DMA streams).

    x_ref:   (L, C)   f32   tokens of this sequence (values + residual source)
    qkn_ref: (L, Kd)  bf16  L2-normalized, sqrt(1/tau)-scaled projections
                            (queries == keys for self-attention)
    o_ref:   (rows, C) f32  InstanceNorm(x_q + softmax(q k^T / tau) @ v)
    v_bf16:  (L, C)   bf16  scratch: value block cast once per sequence
    """
    f = pl.program_id(1)

    @pl.when(f == 0)
    def _():                       # cast values to bf16 once per sequence
        v_bf16[...] = x_ref[...].astype(jnp.bfloat16)

    row0 = pl.multiple_of(f * rows, 8)
    q = qkn_ref[pl.ds(row0, rows), :]
    # scores in [-1/tau, 1/tau] (unit-norm q/k) -> exp cannot overflow f32,
    # so the softmax max-subtraction is omitted on purpose.
    scores = lax.dot_general(q, qkn_ref[...], (((1,), (1,)), ((), ())),
                             preferred_element_type=jnp.float32)
    e = jnp.exp(scores)
    denom = jnp.sum(e, axis=-1, keepdims=True)
    p = (e * pl.reciprocal(denom, approx=True)).astype(jnp.bfloat16)
    attn = jnp.dot(p, v_bf16[...], preferred_element_type=jnp.float32)
    y = x_ref[pl.ds(row0, rows), :] + attn                      # residual

    # InstanceNorm2d (affine=False): per channel over the HW tokens of each
    # frame inside this block (static unroll over the few frames per block).
    for i in range(rows // hw):
        yf = y[i * hw:(i + 1) * hw, :]
        mean = jnp.mean(yf, axis=0, keepdims=True)
        var = jnp.mean((yf - mean) * (yf - mean), axis=0, keepdims=True)
        o_ref[i * hw:(i + 1) * hw, :] = (yf - mean) * lax.rsqrt(var + eps)


def _cross_attn_kernel(qn_ref, kn_ref, v_ref, o_ref):
    """Cross-attention (one (sequence, query-tile) per grid step).

    qn_ref: (tLq, Kd) bf16   kn_ref: (Lk, Kd) bf16   v_ref: (Lk, Cv) bf16
    o_ref:  (tLq, Cv) f32
    tau is folded into the sqrt(1/tau)-scaled projections; max-free softmax is
    safe because scores are bounded by 1/tau.
    """
    scores = lax.dot_general(qn_ref[...], kn_ref[...], (((1,), (1,)), ((), ())),
                             preferred_element_type=jnp.float32)
    e = jnp.exp(scores)
    p = (e * pl.reciprocal(jnp.sum(e, axis=-1, keepdims=True), approx=True)
         ).astype(jnp.bfloat16)
    o_ref[...] = jnp.dot(p, v_ref[...], preferred_element_type=jnp.float32)


# --------------------------------------------------------------------------
# Pallas wrappers
# --------------------------------------------------------------------------
def project_l2norm(x, w_bf16, b, scale):
    """x: (M, C) f32, w: (C, Kd) bf16, b: (1, Kd) f32 -> (M, Kd) bf16."""
    M, C = x.shape
    Kd = w_bf16.shape[1]
    tm = min(1024, _round_up(M, 8))
    Mp = _round_up(M, tm)
    if Mp != M:                      # pad rows instead of a full-M block
        x = jnp.pad(x, ((0, Mp - M), (0, 0)))
    est = 2 * (tm * C * 4 + C * Kd * 2 + Kd * 4) + 2 * tm * Kd * 2
    out = pl.pallas_call(
        functools.partial(_project_l2norm_kernel, scale=scale),
        out_shape=jax.ShapeDtypeStruct((Mp, Kd), jnp.bfloat16),
        grid=(Mp // tm,),
        in_specs=[
            pl.BlockSpec((tm, C), lambda i: (i, 0)),
            pl.BlockSpec((C, Kd), lambda i: (0, 0)),
            pl.BlockSpec((1, Kd), lambda i: (0, 0)),
        ],
        out_specs=pl.BlockSpec((tm, Kd), lambda i: (i, 0)),
        compiler_params=pltpu.CompilerParams(
            dimension_semantics=("parallel",),
            vmem_limit_bytes=_vmem_limit(est)),
    )(x, w_bf16, b)
    return out[:M] if Mp != M else out


def self_attention_norm(x, qkn, num_frames, *, target_rows=256, eps=1e-5):
    """Fused self-attention (+residual +InstanceNorm) over batch-first tokens.

    x:   (S, L, C)  raw tokens (query = key = value = residual source)
    qkn: (S, L, Kd) L2-normalized, sqrt(1/tau)-scaled projections (bf16)
    L = num_frames * HW; InstanceNorm is over the HW tokens of each frame.
    """
    S, L, C = x.shape
    Kd = qkn.shape[2]
    assert L % num_frames == 0
    HW = L // num_frames
    assert HW % 8 == 0, "per-frame token count must be 8-aligned"

    # Batch frames per grid step until ~target_rows query rows (MXU row
    # utilization + per-step overhead amortization).
    fpb = 1
    for cand in range(num_frames, 0, -1):
        if num_frames % cand == 0 and cand * HW <= max(target_rows, HW):
            fpb = cand
            break
    rows = fpb * HW
    n_qb = num_frames // fpb

    kernel = functools.partial(_self_attn_norm_kernel, rows=rows, hw=HW, eps=eps)
    est = (2 * (L * C * 4 + L * Kd * 2)        # double-buffered inputs
           + 2 * rows * C * 4                  # double-buffered output
           + L * C * 2                         # bf16 value scratch
           + 3 * rows * L * 4)                 # scores / exp / prob temporaries
    # TODO(synk): key-axis tiling with accumulating max-free softmax for
    # production L on v7x (bounds the resident (L,.) blocks).
    return pl.pallas_call(
        kernel,
        out_shape=jax.ShapeDtypeStruct((S, L, C), jnp.float32),
        grid=(S, n_qb),
        in_specs=[
            pl.BlockSpec((None, L, C), lambda s, f: (s, 0, 0)),    # values + residual
            pl.BlockSpec((None, L, Kd), lambda s, f: (s, 0, 0)),   # queries == keys
        ],
        out_specs=pl.BlockSpec((None, rows, C), lambda s, f: (s, f, 0)),
        scratch_shapes=[pltpu.VMEM((L, C), jnp.bfloat16)],
        compiler_params=pltpu.CompilerParams(
            # S is the outer "parallel" axis so a 2-TC chip splits sequences;
            # the inner frame axis is "arbitrary" so the resident per-sequence
            # K/V block is never duplicated across cores (and the scratch
            # cache under f==0 stays valid).
            dimension_semantics=("parallel", "arbitrary"),
            vmem_limit_bytes=_vmem_limit(est)),
    )(x, qkn)


def cross_attention(qn, kn, v_bf16, *, max_q_tile=256):
    """qn: (S, Lq, Kd) bf16, kn: (S, Lk, Kd) bf16, v_bf16: (S, Lk, Cv) bf16."""
    S, Lq, Kd = qn.shape
    Lk = kn.shape[1]
    Cv = v_bf16.shape[2]
    tlq = _largest_tile(Lq, max_q_tile)
    est = (2 * (tlq * Kd * 2 + Lk * Kd * 2 + Lk * Cv * 2)
           + 2 * tlq * Cv * 4 + 3 * tlq * Lk * 4)
    return pl.pallas_call(
        _cross_attn_kernel,
        out_shape=jax.ShapeDtypeStruct((S, Lq, Cv), jnp.float32),
        grid=(S, Lq // tlq),
        in_specs=[
            pl.BlockSpec((None, tlq, Kd), lambda s, q: (s, q, 0)),
            pl.BlockSpec((None, Lk, Kd), lambda s, q: (s, 0, 0)),
            pl.BlockSpec((None, Lk, Cv), lambda s, q: (s, 0, 0)),
        ],
        out_specs=pl.BlockSpec((None, tlq, Cv), lambda s, q: (s, q, 0)),
        compiler_params=pltpu.CompilerParams(
            dimension_semantics=("parallel", "parallel"),
            vmem_limit_bytes=_vmem_limit(est)),
    )(qn, kn, v_bf16)


# --------------------------------------------------------------------------
# Transformer forward
# --------------------------------------------------------------------------
def transformer_forward(params, test_feat, train_feat, train_mask_enc,
                        tau=1.0 / 30, cross_tau=1.0 / 30):
    """
    test_feat:       (1, S, C, H, W)
    train_feat:      (F, S, C, H, W)
    train_mask_enc:  (F, S, Ce, H, W)
    returns:         (1, S, Ce, H, W)
    """
    F_, S, C, H, W = train_feat.shape
    HW = H * W
    L = F_ * HW
    Ce = train_mask_enc.shape[2]

    # ---- entry layout: canonical batch-first tokens (S, L, C), done once ----
    src = train_feat.reshape(F_, S, C, HW).transpose(1, 0, 3, 2).reshape(S, L, C)
    tgt = test_feat.reshape(1, S, C, HW).transpose(1, 0, 3, 2).reshape(S, HW, C)
    penc = train_mask_enc.reshape(F_, S, Ce, HW).transpose(1, 0, 3, 2).reshape(
        S, L, Ce)
    penc_bf16 = penc.astype(jnp.bfloat16)   # cross-attn values (no residual)
    # TODO(synk): `pos`/`train_mask` is reshaped but never consumed in the
    # reference decoder, so it is omitted here.

    scale_self = math.sqrt(1.0 / tau)
    scale_cross = math.sqrt(1.0 / cross_tau)

    # ---- Encoder: shared q==k projection computed once, fused attn+res+IN ----
    qk_enc = project_l2norm(src.reshape(S * L, C),
                            params["WK_w"], params["WK_b"],
                            scale_self).reshape(S, L, -1)
    encoded = self_attention_norm(src, qk_enc, F_)              # (S, L, C)

    # ---- Decoder self-attention (same shared WK), fused attn+res+IN ----
    qk_dec = project_l2norm(tgt.reshape(S * HW, C),
                            params["WK_w"], params["WK_b"],
                            scale_self).reshape(S, HW, -1)
    tgt_n = self_attention_norm(tgt, qk_dec, 1)                 # (S, HW, C)

    # ---- Decoder cross-attention: query=tgt_n, key=memory, value=pos_enc ----
    q_cr = project_l2norm(tgt_n.reshape(S * HW, C),
                          params["WK2_w"], params["WK2_b"],
                          scale_cross).reshape(S, HW, -1)
    k_cr = project_l2norm(encoded.reshape(S * L, C),
                          params["WK2_w"], params["WK2_b"],
                          scale_cross).reshape(S, L, -1)
    enc = cross_attention(q_cr, k_cr, penc_bf16)                # (S, HW, Ce)

    # ---- exit layout: (S, HW, Ce) -> (1, S, Ce, H, W), done once ----
    out = enc.transpose(0, 2, 1).reshape(1, S, Ce, H, W)
    return out


# --------------------------------------------------------------------------
# Parameter init (matches module __init__: N(0, sqrt(2/out_features)), bias=0)
# Weights are stored transposed (C, Kd) and pre-cast to bf16 (MXU operand).
# --------------------------------------------------------------------------
def init_params(key, feature_dim, key_dim, cross_key_dim=128):
    k1, k2 = jax.random.split(key, 2)
    return {
        "WK_w": (jax.random.normal(k1, (feature_dim, key_dim), jnp.float32)
                 * math.sqrt(2.0 / key_dim)).astype(jnp.bfloat16),
        "WK_b": jnp.zeros((1, key_dim), jnp.float32),
        "WK2_w": (jax.random.normal(k2, (feature_dim, cross_key_dim),
                                    jnp.float32)
                  * math.sqrt(2.0 / cross_key_dim)).astype(jnp.bfloat16),
        "WK2_b": jnp.zeros((1, cross_key_dim), jnp.float32),
        # NOTE: Attention.WV is never used in the reference forward pass.
    }


if __name__ == "__main__":
    feature_dim = 128      # lane-dense channel dims (multiples of 128)
    key_dim = 128
    cross_key_dim = 128    # module hard-codes key_dim=128 for cross-attention
    num_frames, num_sequences = 2, 2
    h = w = 8
    ce = 128

    key = jax.random.PRNGKey(0)
    kp, k1, k2, k3 = jax.random.split(key, 4)

    params = init_params(kp, feature_dim, key_dim, cross_key_dim)

    test_feat = jax.random.normal(
        k1, (1, num_sequences, feature_dim, h, w), jnp.float32)
    train_feat = jax.random.normal(
        k2, (num_frames, num_sequences, feature_dim, h, w), jnp.float32)
    train_mask_enc = jax.random.normal(
        k3, (num_frames, num_sequences, ce, h, w), jnp.float32)

    fwd = jax.jit(transformer_forward)
    out = fwd(params, test_feat, train_feat, train_mask_enc)
    out = jax.block_until_ready(out)

    assert out.shape == (1, num_sequences, ce, h, w), out.shape
    assert bool(jnp.all(jnp.isfinite(out)))
    print("KERNEL_OK")
</pallas_src>

<mosaic_0001>
module attributes {stable_mosaic.version = 11 : i64} {
  func.func @_project_l2norm_kernel(%arg0: i32, %arg1: memref<256x128xf32, #tpu.memory_space<vmem>>, %arg2: memref<128x128xbf16, #tpu.memory_space<vmem>>, %arg3: memref<1x128xf32, #tpu.memory_space<vmem>>, %arg4: memref<256x128xbf16, #tpu.memory_space<vmem>>) attributes {dimension_semantics = [#tpu.dimension_semantics<parallel>], iteration_bounds = array<i64: 1>, scalar_prefetch = 0 : i64, scratch_operands = 0 : i64, tpu.core_type = #tpu.core_type<tc>, window_params = [{transform_indices = @transform_0, window_bounds = array<i64: 256, 128>}, {pipeline_mode = #tpu.pipeline_mode<synchronous>, transform_indices = @transform_1, window_bounds = array<i64: 128, 128>}, {pipeline_mode = #tpu.pipeline_mode<synchronous>, transform_indices = @transform_2, window_bounds = array<i64: 1, 128>}, {transform_indices = @transform_3, window_bounds = array<i64: 256, 128>}]} {
    %c0 = arith.constant 0 : index
    %c0_0 = arith.constant 0 : index
    %0 = vector.load %arg1[%c0, %c0_0] : memref<256x128xf32, #tpu.memory_space<vmem>>, vector<256x128xf32>
    %1 = arith.truncf %0 : vector<256x128xf32> to vector<256x128xbf16>
    %c0_1 = arith.constant 0 : index
    %c0_2 = arith.constant 0 : index
    %2 = vector.load %arg2[%c0_1, %c0_2] : memref<128x128xbf16, #tpu.memory_space<vmem>>, vector<128x128xbf16>
    %cst = arith.constant dense<0.000000e+00> : vector<256x128xf32>
    %3 = tpu.matmul %1, %2, %cst {dimension_numbers = #tpu.dot_dimension_numbers<[1], [0], [0], [1], [0, 0, 1, 1], [], []>} : vector<256x128xbf16>, vector<128x128xbf16>, vector<256x128xf32> -> vector<256x128xf32>
    %c0_3 = arith.constant 0 : index
    %c0_4 = arith.constant 0 : index
    %4 = vector.load %arg3[%c0_3, %c0_4] : memref<1x128xf32, #tpu.memory_space<vmem>>, vector<1x128xf32>
    %5 = vector.broadcast %4 : vector<1x128xf32> to vector<256x128xf32>
    %6 = arith.addf %3, %5 : vector<256x128xf32>
    %7 = arith.mulf %6, %6 : vector<256x128xf32>
    %cst_5 = arith.constant dense<0.000000e+00> : vector<256xf32>
    %8 = vector.multi_reduction <add>, %7, %cst_5 [1] : vector<256x128xf32> to vector<256xf32>
    %9 = vector.shape_cast %8 : vector<256xf32> to vector<256x1xf32>
    %cst_6 = arith.constant 1.000000e-24 : f32
    %10 = vector.broadcast %cst_6 : f32 to vector<256x1xf32>
    %11 = arith.maximumf %9, %10 : vector<256x1xf32>
    %12 = math.rsqrt %11 : vector<256x1xf32>
    %cst_7 = arith.constant 5.47722578 : f32
    %13 = vector.broadcast %cst_7 : f32 to vector<256x1xf32>
    %14 = arith.mulf %12, %13 : vector<256x1xf32>
    %15 = vector.broadcast %14 : vector<256x1xf32> to vector<256x128xf32>
    %16 = arith.mulf %6, %15 : vector<256x128xf32>
    %17 = arith.truncf %16 : vector<256x128xf32> to vector<256x128xbf16>
    %c0_8 = arith.constant 0 : index
    %c0_9 = arith.constant 0 : index
    %18 = vector.load %arg4[%c0_8, %c0_9] : memref<256x128xbf16, #tpu.memory_space<vmem>>, vector<256x128xbf16>
    tpu.vector_store %arg4[%c0_8, %c0_9], %17 {strides = array<i32>} : memref<256x128xbf16, #tpu.memory_space<vmem>>, vector<256x128xbf16>,
    return
  }
  func.func @transform_0(%arg0: i32) -> (i32, i32) {
    %c0_i32 = arith.constant 0 : i32
    %c0_i32_0 = arith.constant 0 : i32
    return %arg0, %c0_i32 : i32, i32
  }
  func.func @transform_1(%arg0: i32) -> (i32, i32) {
    %c0_i32 = arith.constant 0 : i32
    %c0_i32_0 = arith.constant 0 : i32
    %c0_i32_1 = arith.constant 0 : i32
    return %c0_i32, %c0_i32_0 : i32, i32
  }
  func.func @transform_2(%arg0: i32) -> (i32, i32) {
    %c0_i32 = arith.constant 0 : i32
    %c0_i32_0 = arith.constant 0 : i32
    %c0_i32_1 = arith.constant 0 : i32
    return %c0_i32, %c0_i32_0 : i32, i32
  }
  func.func @transform_3(%arg0: i32) -> (i32, i32) {
    %c0_i32 = arith.constant 0 : i32
    %c0_i32_0 = arith.constant 0 : i32
    return %arg0, %c0_i32 : i32, i32
  }
}

module attributes {stable_mosaic.version = 11 : i64} {
  func.func @_self_attn_norm_kernel(%arg0: i32, %arg1: i32, %arg2: memref<1x128x128xf32, #tpu.memory_space<vmem>>, %arg3: memref<1x128x128xbf16, #tpu.memory_space<vmem>>, %arg4: memref<1x128x128xf32, #tpu.memory_space<vmem>>, %arg5: memref<128x128xbf16, #tpu.memory_space<vmem>>) attributes {dimension_semantics = [#tpu.dimension_semantics<parallel>, #tpu.dimension_semantics<arbitrary>], iteration_bounds = array<i64: 2, 1>, scalar_prefetch = 0 : i64, scratch_operands = 1 : i64, tpu.core_type = #tpu.core_type<tc>, window_params = [{transform_indices = @transform_0, window_bounds = array<i64: 1, 128, 128>}, {transform_indices = @transform_1, window_bounds = array<i64: 1, 128, 128>}, {transform_indices = @transform_2, window_bounds = array<i64: 1, 128, 128>}]} {
    %c0_i32 = arith.constant 0 : i32
    %0 = arith.cmpi eq, %arg1, %c0_i32 : i32
    %1 = arith.extui %0 : i1 to i32
    %c0_i32_0 = arith.constant 0 : i32
    %2 = arith.cmpi ne, %1, %c0_i32_0 : i32
    scf.if %2 {
      %c0_26 = arith.constant 0 : index
      %c0_27 = arith.constant 0 : index
      %c0_28 = arith.constant 0 : index
      %72 = vector.load %arg2[%c0_26, %c0_27, %c0_28] : memref<1x128x128xf32, #tpu.memory_space<vmem>>, vector<1x128x128xf32>
      %73 = vector.shape_cast %72 : vector<1x128x128xf32> to vector<128x128xf32>
      %74 = arith.truncf %73 : vector<128x128xf32> to vector<128x128xbf16>
      %c0_29 = arith.constant 0 : index
      %c0_30 = arith.constant 0 : index
      %75 = vector.load %arg5[%c0_29, %c0_30] : memref<128x128xbf16, #tpu.memory_space<vmem>>, vector<128x128xbf16>
      tpu.vector_store %arg5[%c0_29, %c0_30], %74 {strides = array<i32>} : memref<128x128xbf16, #tpu.memory_space<vmem>>, vector<128x128xbf16>,
    } else {
    }
    %c128_i32 = arith.constant 128 : i32
    %3 = arith.muli %arg1, %c128_i32 : i32
    %4 = tpu.assume_multiple %3, 8 : i32
    %c0 = arith.constant 0 : index
    %5 = arith.index_cast %4 : i32 to index
    %c0_1 = arith.constant 0 : index
    %6 = vector.load %arg3[%c0, %5, %c0_1] : memref<1x128x128xbf16, #tpu.memory_space<vmem>>, vector<1x128x128xbf16>
    %7 = vector.shape_cast %6 : vector<1x128x128xbf16> to vector<128x128xbf16>
    %c0_2 = arith.constant 0 : index
    %c0_3 = arith.constant 0 : index
    %c0_4 = arith.constant 0 : index
    %8 = vector.load %arg3[%c0_2, %c0_3, %c0_4] : memref<1x128x128xbf16, #tpu.memory_space<vmem>>, vector<1x128x128xbf16>
    %9 = vector.shape_cast %8 : vector<1x128x128xbf16> to vector<128x128xbf16>
    %cst = arith.constant dense<0.000000e+00> : vector<128x128xf32>
    %10 = tpu.matmul %7, %9, %cst {dimension_numbers = #tpu.dot_dimension_numbers<[1], [1], [0], [0], [0, 0, 1, 0], [], []>} : vector<128x128xbf16>, vector<128x128xbf16>, vector<128x128xf32> -> vector<128x128xf32>
    %11 = math.exp %10 : vector<128x128xf32>
    %cst_5 = arith.constant dense<0.000000e+00> : vector<128xf32>
    %12 = vector.multi_reduction <add>, %11, %cst_5 [1] : vector<128x128xf32> to vector<128xf32>
    %13 = vector.shape_cast %12 : vector<128xf32> to vector<128x1xf32>
    %14 = tpu.reciprocal %13 {approx = true} : vector<128x1xf32> -> vector<128x1xf32>
    %15 = vector.broadcast %14 : vector<128x1xf32> to vector<128x128xf32>
    %16 = arith.mulf %11, %15 : vector<128x128xf32>
    %17 = arith.truncf %16 : vector<128x128xf32> to vector<128x128xbf16>
    %c0_6 = arith.constant 0 : index
    %c0_7 = arith.constant 0 : index
    %18 = vector.load %arg5[%c0_6, %c0_7] : memref<128x128xbf16, #tpu.memory_space<vmem>>, vector<128x128xbf16>
    %cst_8 = arith.constant dense<0.000000e+00> : vector<128x128xf32>
    %19 = tpu.matmul %17, %18, %cst_8 {dimension_numbers = #tpu.dot_dimension_numbers<[1], [0], [0], [1], [0, 0, 1, 1], [], []>} : vector<128x128xbf16>, vector<128x128xbf16>, vector<128x128xf32> -> vector<128x128xf32>
    %c0_9 = arith.constant 0 : index
    %20 = arith.index_cast %4 : i32 to index
    %c0_10 = arith.constant 0 : index
    %21 = vector.load %arg2[%c0_9, %20, %c0_10] : memref<1x128x128xf32, #tpu.memory_space<vmem>>, vector<1x128x128xf32>
    %22 = vector.shape_cast %21 : vector<1x128x128xf32> to vector<128x128xf32>
    %23 = arith.addf %22, %19 : vector<128x128xf32>
    %24 = vector.extract_strided_slice %23 {offsets = [0, 0], sizes = [64, 128], strides = [1, 1]} : vector<128x128xf32> to vector<64x128xf32>
    %cst_11 = arith.constant dense<0.000000e+00> : vector<128xf32>
    %25 = vector.multi_reduction <add>, %24, %cst_11 [0] : vector<64x128xf32> to vector<128xf32>
    %26 = vector.shape_cast %25 : vector<128xf32> to vector<1x128xf32>
    %cst_12 = arith.constant 6.400000e+01 : f32
    %27 = vector.broadcast %cst_12 : f32 to vector<1x128xf32>
    %28 = arith.divf %26, %27 : vector<1x128xf32>
    %29 = vector.broadcast %28 : vector<1x128xf32> to vector<64x128xf32>
    %30 = arith.subf %24, %29 : vector<64x128xf32>
    %31 = vector.broadcast %28 : vector<1x128xf32> to vector<64x128xf32>
    %32 = arith.subf %24, %31 : vector<64x128xf32>
    %33 = arith.mulf %30, %32 : vector<64x128xf32>
    %cst_13 = arith.constant dense<0.000000e+00> : vector<128xf32>
    %34 = vector.multi_reduction <add>, %33, %cst_13 [0] : vector<64x128xf32> to vector<128xf32>
    %35 = vector.shape_cast %34 : vector<128xf32> to vector<1x128xf32>
    %cst_14 = arith.constant 6.400000e+01 : f32
    %36 = vector.broadcast %cst_14 : f32 to vector<1x128xf32>
    %37 = arith.divf %35, %36 : vector<1x128xf32>
    %38 = vector.broadcast %28 : vector<1x128xf32> to vector<64x128xf32>
    %39 = arith.subf %24, %38 : vector<64x128xf32>
    %cst_15 = arith.constant 9.99999974E-6 : f32
    %40 = vector.broadcast %cst_15 : f32 to vector<1x128xf32>
    %41 = arith.addf %37, %40 : vector<1x128xf32>
    %42 = math.rsqrt %41 : vector<1x128xf32>
    %43 = vector.broadcast %42 : vector<1x128xf32> to vector<64x128xf32>
    %44 = arith.mulf %39, %43 : vector<64x128xf32>
    %c0_16 = arith.constant 0 : index
    %c0_17 = arith.constant 0 : index
    %c0_18 = arith.constant 0 : index
    %45 = vector.load %arg4[%c0_16, %c0_17, %c0_18] : memref<1x128x128xf32, #tpu.memory_space<vmem>>, vector<1x64x128xf32>
    %46 = vector.shape_cast %45 : vector<1x64x128xf32> to vector<64x128xf32>
    %47 = vector.shape_cast %44 : vector<64x128xf32> to vector<1x64x128xf32>
    tpu.vector_store %arg4[%c0_16, %c0_17, %c0_18], %47 {strides = array<i32>} : memref<1x128x128xf32, #tpu.memory_space<vmem>>, vector<1x64x128xf32>,
    %48 = vector.extract_strided_slice %23 {offsets = [64, 0], sizes = [64, 128], strides = [1, 1]} : vector<128x128xf32> to vector<64x128xf32>
    %cst_19 = arith.constant dense<0.000000e+00> : vector<128xf32>
    %49 = vector.multi_reduction <add>, %48, %cst_19 [0] : vector<64x128xf32> to vector<128xf32>
    %50 = vector.shape_cast %49 : vector<128xf32> to vector<1x128xf32>
    %cst_20 = arith.constant 6.400000e+01 : f32
    %51 = vector.broadcast %cst_20 : f32 to vector<1x128xf32>
    %52 = arith.divf %50, %51 : vector<1x128xf32>
    %53 = vector.broadcast %52 : vector<1x128xf32> to vector<64x128xf32>
    %54 = arith.subf %48, %53 : vector<64x128xf32>
    %55 = vector.broadcast %52 : vector<1x128xf32> to vector<64x128xf32>
    %56 = arith.subf %48, %55 : vector<64x128xf32>
    %57 = arith.mulf %54, %56 : vector<64x128xf32>
    %cst_21 = arith.constant dense<0.000000e+00> : vector<128xf32>
    %58 = vector.multi_reduction <add>, %57, %cst_21 [0] : vector<64x128xf32> to vector<128xf32>
    %59 = vector.shape_cast %58 : vector<128xf32> to vector<1x128xf32>
    %cst_22 = arith.constant 6.400000e+01 : f32
    %60 = vector.broadcast %cst_22 : f32 to vector<1x128xf32>
    %61 = arith.divf %59, %60 : vector<1x128xf32>
    %62 = vector.broadcast %52 : vector<1x128xf32> to vector<64x128xf32>
    %63 = arith.subf %48, %62 : vector<64x128xf32>
    %cst_23 = arith.constant 9.99999974E-6 : f32
    %64 = vector.broadcast %cst_23 : f32 to vector<1x128xf32>
    %65 = arith.addf %61, %64 : vector<1x128xf32>
    %66 = math.rsqrt %65 : vector<1x128xf32>
    %67 = vector.broadcast %66 : vector<1x128xf32> to vector<64x128xf32>
    %68 = arith.mulf %63, %67 : vector<64x128xf32>
    %c0_24 = arith.constant 0 : index
    %c64 = arith.constant 64 : index
    %c0_25 = arith.constant 0 : index
    %69 = vector.load %arg4[%c0_24, %c64, %c0_25] : memref<1x128x128xf32, #tpu.memory_space<vmem>>, vector<1x64x128xf32>
    %70 = vector.shape_cast %69 : vector<1x64x128xf32> to vector<64x128xf32>
    %71 = vector.shape_cast %68 : vector<64x128xf32> to vector<1x64x128xf32>
    tpu.vector_store %arg4[%c0_24, %c64, %c0_25], %71 {strides = array<i32>} : memref<1x128x128xf32, #tpu.memory_space<vmem>>, vector<1x64x128xf32>,
    return
  }
  func.func @transform_0(%arg0: i32, %arg1: i32) -> (i32, i32, i32) {
    %c0_i32 = arith.constant 0 : i32
    %c0_i32_0 = arith.constant 0 : i32
    %c0_i32_1 = arith.constant 0 : i32
    return %arg0, %c0_i32, %c0_i32_0 : i32, i32, i32
  }
  func.func @transform_1(%arg0: i32, %arg1: i32) -> (i32, i32, i32) {
    %c0_i32 = arith.constant 0 : i32
    %c0_i32_0 = arith.constant 0 : i32
    %c0_i32_1 = arith.constant 0 : i32
    return %arg0, %c0_i32, %c0_i32_0 : i32, i32, i32
  }
  func.func @transform_2(%arg0: i32, %arg1: i32) -> (i32, i32, i32) {
    %c0_i32 = arith.constant 0 : i32
    %c0_i32_0 = arith.constant 0 : i32
    return %arg0, %arg1, %c0_i32 : i32, i32, i32
  }
}

module attributes {stable_mosaic.version = 11 : i64} {
  func.func @_project_l2norm_kernel(%arg0: i32, %arg1: memref<128x128xf32, #tpu.memory_space<vmem>>, %arg2: memref<128x128xbf16, #tpu.memory_space<vmem>>, %arg3: memref<1x128xf32, #tpu.memory_space<vmem>>, %arg4: memref<128x128xbf16, #tpu.memory_space<vmem>>) attributes {dimension_semantics = [#tpu.dimension_semantics<parallel>], iteration_bounds = array<i64: 1>, scalar_prefetch = 0 : i64, scratch_operands = 0 : i64, tpu.core_type = #tpu.core_type<tc>, window_params = [{transform_indices = @transform_0, window_bounds = array<i64: 128, 128>}, {pipeline_mode = #tpu.pipeline_mode<synchronous>, transform_indices = @transform_1, window_bounds = array<i64: 128, 128>}, {pipeline_mode = #tpu.pipeline_mode<synchronous>, transform_indices = @transform_2, window_bounds = array<i64: 1, 128>}, {transform_indices = @transform_3, window_bounds = array<i64: 128, 128>}]} {
    %c0 = arith.constant 0 : index
    %c0_0 = arith.constant 0 : index
    %0 = vector.load %arg1[%c0, %c0_0] : memref<128x128xf32, #tpu.memory_space<vmem>>, vector<128x128xf32>
    %1 = arith.truncf %0 : vector<128x128xf32> to vector<128x128xbf16>
    %c0_1 = arith.constant 0 : index
    %c0_2 = arith.constant 0 : index
    %2 = vector.load %arg2[%c0_1, %c0_2] : memref<128x128xbf16, #tpu.memory_space<vmem>>, vector<128x128xbf16>
    %cst = arith.constant dense<0.000000e+00> : vector<128x128xf32>
    %3 = tpu.matmul %1, %2, %cst {dimension_numbers = #tpu.dot_dimension_numbers<[1], [0], [0], [1], [0, 0, 1, 1], [], []>} : vector<128x128xbf16>, vector<128x128xbf16>, vector<128x128xf32> -> vector<128x128xf32>
    %c0_3 = arith.constant 0 : index
    %c0_4 = arith.constant 0 : index
    %4 = vector.load %arg3[%c0_3, %c0_4] : memref<1x128xf32, #tpu.memory_space<vmem>>, vector<1x128xf32>
    %5 = vector.broadcast %4 : vector<1x128xf32> to vector<128x128xf32>
    %6 = arith.addf %3, %5 : vector<128x128xf32>
    %7 = arith.mulf %6, %6 : vector<128x128xf32>
    %cst_5 = arith.constant dense<0.000000e+00> : vector<128xf32>
    %8 = vector.multi_reduction <add>, %7, %cst_5 [1] : vector<128x128xf32> to vector<128xf32>
    %9 = vector.shape_cast %8 : vector<128xf32> to vector<128x1xf32>
    %cst_6 = arith.constant 1.000000e-24 : f32
    %10 = vector.broadcast %cst_6 : f32 to vector<128x1xf32>
    %11 = arith.maximumf %9, %10 : vector<128x1xf32>
    %12 = math.rsqrt %11 : vector<128x1xf32>
    %cst_7 = arith.constant 5.47722578 : f32
    %13 = vector.broadcast %cst_7 : f32 to vector<128x1xf32>
    %14 = arith.mulf %12, %13 : vector<128x1xf32>
    %15 = vector.broadcast %14 : vector<128x1xf32> to vector<128x128xf32>
    %16 = arith.mulf %6, %15 : vector<128x128xf32>
    %17 = arith.truncf %16 : vector<128x128xf32> to vector<128x128xbf16>
    %c0_8 = arith.constant 0 : index
    %c0_9 = arith.constant 0 : index
    %18 = vector.load %arg4[%c0_8, %c0_9] : memref<128x128xbf16, #tpu.memory_space<vmem>>, vector<128x128xbf16>
    tpu.vector_store %arg4[%c0_8, %c0_9], %17 {strides = array<i32>} : memref<128x128xbf16, #tpu.memory_space<vmem>>, vector<128x128xbf16>,
    return
  }
  func.func @transform_0(%arg0: i32) -> (i32, i32) {
    %c0_i32 = arith.constant 0 : i32
    %c0_i32_0 = arith.constant 0 : i32
    return %arg0, %c0_i32 : i32, i32
  }
  func.func @transform_1(%arg0: i32) -> (i32, i32) {
    %c0_i32 = arith.constant 0 : i32
    %c0_i32_0 = arith.constant 0 : i32
    %c0_i32_1 = arith.constant 0 : i32
    return %c0_i32, %c0_i32_0 : i32, i32
  }
  func.func @transform_2(%arg0: i32) -> (i32, i32) {
    %c0_i32 = arith.constant 0 : i32
    %c0_i32_0 = arith.constant 0 : i32
    %c0_i32_1 = arith.constant 0 : i32
    return %c0_i32, %c0_i32_0 : i32, i32
  }
  func.func @transform_3(%arg0: i32) -> (i32, i32) {
    %c0_i32 = arith.constant 0 : i32
    %c0_i32_0 = arith.constant 0 : i32
    return %arg0, %c0_i32 : i32, i32
  }
}

module attributes {stable_mosaic.version = 11 : i64} {
  func.func @_self_attn_norm_kernel(%arg0: i32, %arg1: i32, %arg2: memref<1x64x128xf32, #tpu.memory_space<vmem>>, %arg3: memref<1x64x128xbf16, #tpu.memory_space<vmem>>, %arg4: memref<1x64x128xf32, #tpu.memory_space<vmem>>, %arg5: memref<64x128xbf16, #tpu.memory_space<vmem>>) attributes {dimension_semantics = [#tpu.dimension_semantics<parallel>, #tpu.dimension_semantics<arbitrary>], iteration_bounds = array<i64: 2, 1>, scalar_prefetch = 0 : i64, scratch_operands = 1 : i64, tpu.core_type = #tpu.core_type<tc>, window_params = [{transform_indices = @transform_0, window_bounds = array<i64: 1, 64, 128>}, {transform_indices = @transform_1, window_bounds = array<i64: 1, 64, 128>}, {transform_indices = @transform_2, window_bounds = array<i64: 1, 64, 128>}]} {
    %c0_i32 = arith.constant 0 : i32
    %0 = arith.cmpi eq, %arg1, %c0_i32 : i32
    %1 = arith.extui %0 : i1 to i32
    %c0_i32_0 = arith.constant 0 : i32
    %2 = arith.cmpi ne, %1, %c0_i32_0 : i32
    scf.if %2 {
      %c0_19 = arith.constant 0 : index
      %c0_20 = arith.constant 0 : index
      %c0_21 = arith.constant 0 : index
      %47 = vector.load %arg2[%c0_19, %c0_20, %c0_21] : memref<1x64x128xf32, #tpu.memory_space<vmem>>, vector<1x64x128xf32>
      %48 = vector.shape_cast %47 : vector<1x64x128xf32> to vector<64x128xf32>
      %49 = arith.truncf %48 : vector<64x128xf32> to vector<64x128xbf16>
      %c0_22 = arith.constant 0 : index
      %c0_23 = arith.constant 0 : index
      %50 = vector.load %arg5[%c0_22, %c0_23] : memref<64x128xbf16, #tpu.memory_space<vmem>>, vector<64x128xbf16>
      tpu.vector_store %arg5[%c0_22, %c0_23], %49 {strides = array<i32>} : memref<64x128xbf16, #tpu.memory_space<vmem>>, vector<64x128xbf16>,
    } else {
    }
    %c64_i32 = arith.constant 64 : i32
    %3 = arith.muli %arg1, %c64_i32 : i32
    %4 = tpu.assume_multiple %3, 8 : i32
    %c0 = arith.constant 0 : index
    %5 = arith.index_cast %4 : i32 to index
    %c0_1 = arith.constant 0 : index
    %6 = vector.load %arg3[%c0, %5, %c0_1] : memref<1x64x128xbf16, #tpu.memory_space<vmem>>, vector<1x64x128xbf16>
    %7 = vector.shape_cast %6 : vector<1x64x128xbf16> to vector<64x128xbf16>
    %c0_2 = arith.constant 0 : index
    %c0_3 = arith.constant 0 : index
    %c0_4 = arith.constant 0 : index
    %8 = vector.load %arg3[%c0_2, %c0_3, %c0_4] : memref<1x64x128xbf16, #tpu.memory_space<vmem>>, vector<1x64x128xbf16>
    %9 = vector.shape_cast %8 : vector<1x64x128xbf16> to vector<64x128xbf16>
    %cst = arith.constant dense<0.000000e+00> : vector<64x64xf32>
    %10 = tpu.matmul %7, %9, %cst {dimension_numbers = #tpu.dot_dimension_numbers<[1], [1], [0], [0], [0, 0, 1, 0], [], []>} : vector<64x128xbf16>, vector<64x128xbf16>, vector<64x64xf32> -> vector<64x64xf32>
    %11 = math.exp %10 : vector<64x64xf32>
    %cst_5 = arith.constant dense<0.000000e+00> : vector<64xf32>
    %12 = vector.multi_reduction <add>, %11, %cst_5 [1] : vector<64x64xf32> to vector<64xf32>
    %13 = vector.shape_cast %12 : vector<64xf32> to vector<64x1xf32>
    %14 = tpu.reciprocal %13 {approx = true} : vector<64x1xf32> -> vector<64x1xf32>
    %15 = vector.broadcast %14 : vector<64x1xf32> to vector<64x64xf32>
    %16 = arith.mulf %11, %15 : vector<64x64xf32>
    %17 = arith.truncf %16 : vector<64x64xf32> to vector<64x64xbf16>
    %c0_6 = arith.constant 0 : index
    %c0_7 = arith.constant 0 : index
    %18 = vector.load %arg5[%c0_6, %c0_7] : memref<64x128xbf16, #tpu.memory_space<vmem>>, vector<64x128xbf16>
    %cst_8 = arith.constant dense<0.000000e+00> : vector<64x128xf32>
    %19 = tpu.matmul %17, %18, %cst_8 {dimension_numbers = #tpu.dot_dimension_numbers<[1], [0], [0], [1], [0, 0, 1, 1], [], []>} : vector<64x64xbf16>, vector<64x128xbf16>, vector<64x128xf32> -> vector<64x128xf32>
    %c0_9 = arith.constant 0 : index
    %20 = arith.index_cast %4 : i32 to index
    %c0_10 = arith.constant 0 : index
    %21 = vector.load %arg2[%c0_9, %20, %c0_10] : memref<1x64x128xf32, #tpu.memory_space<vmem>>, vector<1x64x128xf32>
    %22 = vector.shape_cast %21 : vector<1x64x128xf32> to vector<64x128xf32>
    %23 = arith.addf %22, %19 : vector<64x128xf32>
    %cst_11 = arith.constant dense<0.000000e+00> : vector<128xf32>
    %24 = vector.multi_reduction <add>, %23, %cst_11 [0] : vector<64x128xf32> to vector<128xf32>
    %25 = vector.shape_cast %24 : vector<128xf32> to vector<1x128xf32>
    %cst_12 = arith.constant 6.400000e+01 : f32
    %26 = vector.broadcast %cst_12 : f32 to vector<1x128xf32>
    %27 = arith.divf %25, %26 : vector<1x128xf32>
    %28 = vector.broadcast %27 : vector<1x128xf32> to vector<64x128xf32>
    %29 = arith.subf %23, %28 : vector<64x128xf32>
    %30 = vector.broadcast %27 : vector<1x128xf32> to vector<64x128xf32>
    %31 = arith.subf %23, %30 : vector<64x128xf32>
    %32 = arith.mulf %29, %31 : vector<64x128xf32>
    %cst_13 = arith.constant dense<0.000000e+00> : vector<128xf32>
    %33 = vector.multi_reduction <add>, %32, %cst_13 [0] : vector<64x128xf32> to vector<128xf32>
    %34 = vector.shape_cast %33 : vector<128xf32> to vector<1x128xf32>
    %cst_14 = arith.constant 6.400000e+01 : f32
    %35 = vector.broadcast %cst_14 : f32 to vector<1x128xf32>
    %36 = arith.divf %34, %35 : vector<1x128xf32>
    %37 = vector.broadcast %27 : vector<1x128xf32> to vector<64x128xf32>
    %38 = arith.subf %23, %37 : vector<64x128xf32>
    %cst_15 = arith.constant 9.99999974E-6 : f32
    %39 = vector.broadcast %cst_15 : f32 to vector<1x128xf32>
    %40 = arith.addf %36, %39 : vector<1x128xf32>
    %41 = math.rsqrt %40 : vector<1x128xf32>
    %42 = vector.broadcast %41 : vector<1x128xf32> to vector<64x128xf32>
    %43 = arith.mulf %38, %42 : vector<64x128xf32>
    %c0_16 = arith.constant 0 : index
    %c0_17 = arith.constant 0 : index
    %c0_18 = arith.constant 0 : index
    %44 = vector.load %arg4[%c0_16, %c0_17, %c0_18] : memref<1x64x128xf32, #tpu.memory_space<vmem>>, vector<1x64x128xf32>
    %45 = vector.shape_cast %44 : vector<1x64x128xf32> to vector<64x128xf32>
    %46 = vector.shape_cast %43 : vector<64x128xf32> to vector<1x64x128xf32>
    tpu.vector_store %arg4[%c0_16, %c0_17, %c0_18], %46 {strides = array<i32>} : memref<1x64x128xf32, #tpu.memory_space<vmem>>, vector<1x64x128xf32>,
    return
  }
  func.func @transform_0(%arg0: i32, %arg1: i32) -> (i32, i32, i32) {
    %c0_i32 = arith.constant 0 : i32
    %c0_i32_0 = arith.constant 0 : i32
    %c0_i32_1 = arith.constant 0 : i32
    return %arg0, %c0_i32, %c0_i32_0 : i32, i32, i32
  }
  func.func @transform_1(%arg0: i32, %arg1: i32) -> (i32, i32, i32) {
    %c0_i32 = arith.constant 0 : i32
    %c0_i32_0 = arith.constant 0 : i32
    %c0_i32_1 = arith.constant 0 : i32
    return %arg0, %c0_i32, %c0_i32_0 : i32, i32, i32
  }
  func.func @transform_2(%arg0: i32, %arg1: i32) -> (i32, i32, i32) {
    %c0_i32 = arith.constant 0 : i32
    %c0_i32_0 = arith.constant 0 : i32
    return %arg0, %arg1, %c0_i32 : i32, i32, i32
  }
}

module attributes {stable_mosaic.version = 11 : i64} {
  func.func @_cross_attn_kernel(%arg0: i32, %arg1: i32, %arg2: memref<1x64x128xbf16, #tpu.memory_space<vmem>>, %arg3: memref<1x128x128xbf16, #tpu.memory_space<vmem>>, %arg4: memref<1x128x128xbf16, #tpu.memory_space<vmem>>, %arg5: memref<1x64x128xf32, #tpu.memory_space<vmem>>) attributes {dimension_semantics = [#tpu.dimension_semantics<parallel>, #tpu.dimension_semantics<parallel>], iteration_bounds = array<i64: 2, 1>, scalar_prefetch = 0 : i64, scratch_operands = 0 : i64, tpu.core_type = #tpu.core_type<tc>, window_params = [{transform_indices = @transform_0, window_bounds = array<i64: 1, 64, 128>}, {transform_indices = @transform_1, window_bounds = array<i64: 1, 128, 128>}, {transform_indices = @transform_2, window_bounds = array<i64: 1, 128, 128>}, {transform_indices = @transform_3, window_bounds = array<i64: 1, 64, 128>}]} {
    %c0 = arith.constant 0 : index
    %c0_0 = arith.constant 0 : index
    %c0_1 = arith.constant 0 : index
    %0 = vector.load %arg2[%c0, %c0_0, %c0_1] : memref<1x64x128xbf16, #tpu.memory_space<vmem>>, vector<1x64x128xbf16>
    %1 = vector.shape_cast %0 : vector<1x64x128xbf16> to vector<64x128xbf16>
    %c0_2 = arith.constant 0 : index
    %c0_3 = arith.constant 0 : index
    %c0_4 = arith.constant 0 : index
    %2 = vector.load %arg3[%c0_2, %c0_3, %c0_4] : memref<1x128x128xbf16, #tpu.memory_space<vmem>>, vector<1x128x128xbf16>
    %3 = vector.shape_cast %2 : vector<1x128x128xbf16> to vector<128x128xbf16>
    %cst = arith.constant dense<0.000000e+00> : vector<64x128xf32>
    %4 = tpu.matmul %1, %3, %cst {dimension_numbers = #tpu.dot_dimension_numbers<[1], [1], [0], [0], [0, 0, 1, 0], [], []>} : vector<64x128xbf16>, vector<128x128xbf16>, vector<64x128xf32> -> vector<64x128xf32>
    %5 = math.exp %4 : vector<64x128xf32>
    %cst_5 = arith.constant dense<0.000000e+00> : vector<64xf32>
    %6 = vector.multi_reduction <add>, %5, %cst_5 [1] : vector<64x128xf32> to vector<64xf32>
    %7 = vector.shape_cast %6 : vector<64xf32> to vector<64x1xf32>
    %8 = tpu.reciprocal %7 {approx = true} : vector<64x1xf32> -> vector<64x1xf32>
    %9 = vector.broadcast %8 : vector<64x1xf32> to vector<64x128xf32>
    %10 = arith.mulf %5, %9 : vector<64x128xf32>
    %11 = arith.truncf %10 : vector<64x128xf32> to vector<64x128xbf16>
    %c0_6 = arith.constant 0 : index
    %c0_7 = arith.constant 0 : index
    %c0_8 = arith.constant 0 : index
    %12 = vector.load %arg4[%c0_6, %c0_7, %c0_8] : memref<1x128x128xbf16, #tpu.memory_space<vmem>>, vector<1x128x128xbf16>
    %13 = vector.shape_cast %12 : vector<1x128x128xbf16> to vector<128x128xbf16>
    %cst_9 = arith.constant dense<0.000000e+00> : vector<64x128xf32>
    %14 = tpu.matmul %11, %13, %cst_9 {dimension_numbers = #tpu.dot_dimension_numbers<[1], [0], [0], [1], [0, 0, 1, 1], [], []>} : vector<64x128xbf16>, vector<128x128xbf16>, vector<64x128xf32> -> vector<64x128xf32>
    %c0_10 = arith.constant 0 : index
    %c0_11 = arith.constant 0 : index
    %c0_12 = arith.constant 0 : index
    %15 = vector.load %arg5[%c0_10, %c0_11, %c0_12] : memref<1x64x128xf32, #tpu.memory_space<vmem>>, vector<1x64x128xf32>
    %16 = vector.shape_cast %15 : vector<1x64x128xf32> to vector<64x128xf32>
    %17 = vector.shape_cast %14 : vector<64x128xf32> to vector<1x64x128xf32>
    tpu.vector_store %arg5[%c0_10, %c0_11, %c0_12], %17 {strides = array<i32>} : memref<1x64x128xf32, #tpu.memory_space<vmem>>, vector<1x64x128xf32>,
    return
  }
  func.func @transform_0(%arg0: i32, %arg1: i32) -> (i32, i32, i32) {
    %c0_i32 = arith.constant 0 : i32
    %c0_i32_0 = arith.constant 0 : i32
    return %arg0, %arg1, %c0_i32 : i32, i32, i32
  }
  func.func @transform_1(%arg0: i32, %arg1: i32) -> (i32, i32, i32) {
    %c0_i32 = arith.constant 0 : i32
    %c0_i32_0 = arith.constant 0 : i32
    %c0_i32_1 = arith.constant 0 : i32
    return %arg0, %c0_i32, %c0_i32_0 : i32, i32, i32
  }
  func.func @transform_2(%arg0: i32, %arg1: i32) -> (i32, i32, i32) {
    %c0_i32 = arith.constant 0 : i32
    %c0_i32_0 = arith.constant 0 : i32
    %c0_i32_1 = arith.constant 0 : i32
    return %arg0, %c0_i32, %c0_i32_0 : i32, i32, i32
  }
  func.func @transform_3(%arg0: i32, %arg1: i32) -> (i32, i32, i32) {
    %c0_i32 = arith.constant 0 : i32
    %c0_i32_0 = arith.constant 0 : i32
    return %arg0, %arg1, %c0_i32 : i32, i32, i32
  }
}

</mosaic_0001>

<bundles_post_ra>
// kernel: transformer_forward.7
= control target key start
LH: loop header
LB: loop body
LE: loop exit
PB: predicated region body
PF: predicated region fallthrough
CT: control target
= control target key end

     0   :  { %s1898_s1 = inlined_call_operand.vmem [shape: bf16[128,128], index: 1, kind: input, shape index: {}]   ;;  %s1899_s2 = inlined_call_operand.vmem [shape: f32[1,128], index: 2, kind: input, shape index: {}]   ;;  %s1900_s0 = inlined_call_operand.vmem [shape: f32[256,128], index: 0, kind: input, shape index: {}]   ;;  %s1901_s3 = inlined_call_operand.vmem [shape: bf16[256,128], index: 3, kind: output, shape index: {}]  }
   0x1   :  { %v838_v0 = vld [vmem:[%s1898_s1 + $0x38] sm:$0xff]  ;;  %v837_v1 = vld [vmem:[%s1898_s1 + $0x30] sm:$0xff]  ;;  %v836_v2 = vld [vmem:[%s1898_s1 + $0x28] sm:$0xff] }
   0x2   :  { %130 = vmatpush.bf16.msra.mxu0 %v838_v0  ;;  %934 = vmatpush.bf16.msra.mxu1 %v838_v0  ;;  %v835_v3 = vld [vmem:[%s1898_s1 + $0x20] sm:$0xff]  ;;  %v834_v4 = vld [vmem:[%s1898_s1 + $0x18] sm:$0xff]  ;;  %v833_v5 = vld [vmem:[%s1898_s1 + $0x10] sm:$0xff] }
   0x3   :  { %935 = vmatpush.bf16.msra.mxu2 %v838_v0  ;;  %936 = vmatpush.bf16.msra.mxu3 %v838_v0  ;;  %v832_v6 = vld [vmem:[%s1898_s1 + $0x8] sm:$0xff]  ;;  %v831_v7 = vld [vmem:[%s1898_s1] sm:$0xff]  ;;  %v16_v20 = vld [vmem:[%s1900_s0 + $0x10] sm:$0xff] }
   0x4   :  { %v14_v8 = vld [vmem:[%s1900_s0] sm:$0xff]  ;;  %v15_v9 = vld [vmem:[%s1900_s0 + $0x8] sm:$0xff]  ;;  %v17_v21 = vld [vmem:[%s1900_s0 + $0x18] sm:$0xff] }
   0x5   :  { %v22_v10 = vld [vmem:[%s1900_s0 + $0x40] sm:$0xff]  ;;  %v23_v11 = vld [vmem:[%s1900_s0 + $0x48] sm:$0xff]  ;;  %v46_v16 = vpack.c.bf16 %v15_v9, %v14_v8  ;;  %v40_v22 = vld [vmem:[%s1900_s0 + $0xd0] sm:$0xff]  ;;  %v47_v28 = vpack.c.bf16 %v17_v21, %v16_v20 }
   0x6   :  { %131 = vmatpush.bf16.msra.mxu0 %v837_v1  ;;  %937 = vmatpush.bf16.msra.mxu1 %v837_v1  ;;  %v30_v12 = vld [vmem:[%s1900_s0 + $0x80] sm:$0xff]  ;;  %v31_v13 = vld [vmem:[%s1900_s0 + $0x88] sm:$0xff]  ;;  %v50_v17 = vpack.c.bf16 %v23_v11, %v22_v10  ;;  %v24_v23 = vld [vmem:[%s1900_s0 + $0x50] sm:$0xff] }
   0x7   :  { %938 = vmatpush.bf16.msra.mxu2 %v837_v1  ;;  %939 = vmatpush.bf16.msra.mxu3 %v837_v1  ;;  %v38_v14 = vld [vmem:[%s1900_s0 + $0xc0] sm:$0xff]  ;;  %v39_v15 = vld [vmem:[%s1900_s0 + $0xc8] sm:$0xff]  ;;  %v54_v18 = vpack.c.bf16 %v31_v13, %v30_v12  ;;  %v25_v24 = vld [vmem:[%s1900_s0 + $0x58] sm:$0xff] }
   0x8   :  { %v58_v19 = vpack.c.bf16 %v39_v15, %v38_v14  ;;  %v41_v25 = vld [vmem:[%s1900_s0 + $0xd8] sm:$0xff]  ;;  %v32_v26 = vld [vmem:[%s1900_s0 + $0x90] sm:$0xff]  ;;  %v51_v29 = vpack.c.bf16 %v25_v24, %v24_v23  ;;  %v18_v32 = vld [vmem:[%s1900_s0 + $0x20] sm:$0xff] }
   0x9   :  { %v33_v27 = vld [vmem:[%s1900_s0 + $0x98] sm:$0xff]  ;;  %v59_v30 = vpack.c.bf16 %v41_v25, %v40_v22  ;;  %v19_v33 = vld [vmem:[%s1900_s0 + $0x28] sm:$0xff]  ;;  %v34_v34 = vld [vmem:[%s1900_s0 + $0xa0] sm:$0xff] }
   0xa   :  { %132 = vmatpush.bf16.msra.mxu0 %v836_v2  ;;  %940 = vmatpush.bf16.msra.mxu1 %v836_v2  ;;  %v55_v31 = vpack.c.bf16 %v33_v27, %v32_v26  ;;  %v26_v35 = vld [vmem:[%s1900_s0 + $0x60] sm:$0xff]  ;;  %v27_v36 = vld [vmem:[%s1900_s0 + $0x68] sm:$0xff]  ;;  %v48_v40 = vpack.c.bf16 %v19_v33, %v18_v32  ;;  %v36_v44 = vld [vmem:[%s1900_s0 + $0xb0] sm:$0xff] }
   0xb   :  { %941 = vmatpush.bf16.msra.mxu2 %v836_v2  ;;  %942 = vmatpush.bf16.msra.mxu3 %v836_v2  ;;  %v35_v37 = vld [vmem:[%s1900_s0 + $0xa8] sm:$0xff]  ;;  %v42_v38 = vld [vmem:[%s1900_s0 + $0xe0] sm:$0xff]  ;;  %v52_v41 = vpack.c.bf16 %v27_v36, %v26_v35  ;;  %v20_v45 = vld [vmem:[%s1900_s0 + $0x30] sm:$0xff] }
   0xc   :  { %v43_v39 = vld [vmem:[%s1900_s0 + $0xe8] sm:$0xff]  ;;  %v56_v42 = vpack.c.bf16 %v35_v37, %v34_v34  ;;  %v21_v46 = vld [vmem:[%s1900_s0 + $0x38] sm:$0xff]  ;;  %v28_v47 = vld [vmem:[%s1900_s0 + $0x70] sm:$0xff] }
   0xd   :  { %v60_v43 = vpack.c.bf16 %v43_v39, %v42_v38  ;;  %v29_v48 = vld [vmem:[%s1900_s0 + $0x78] sm:$0xff]  ;;  %v44_v50 = vld [vmem:[%s1900_s0 + $0xf0] sm:$0xff]  ;;  %v49_v52 = vpack.c.bf16 %v21_v46, %v20_v45  ;;  %v1166_v56 = vld [vmem:[%s1899_s2] ss:$0 sm:$0xff] }
   0xe   :  { %133 = vmatpush.bf16.msra.mxu0 %v835_v3  ;;  %943 = vmatpush.bf16.msra.mxu1 %v835_v3  ;;  %v37_v49 = vld [vmem:[%s1900_s0 + $0xb8] sm:$0xff]  ;;  %v53_v53 = vpack.c.bf16 %v29_v48, %v28_v47 }
   0xf   :  { %944 = vmatpush.bf16.msra.mxu2 %v835_v3  ;;  %945 = vmatpush.bf16.msra.mxu3 %v835_v3  ;;  %v45_v51 = vld [vmem:[%s1900_s0 + $0xf8] sm:$0xff]  ;;  %v57_v54 = vpack.c.bf16 %v37_v49, %v36_v44 }
  0x10   :  { %v61_v55 = vpack.c.bf16 %v45_v51, %v44_v50 }
  0x12   :  { %134 = vmatpush.bf16.msra.mxu0 %v834_v4  ;;  %946 = vmatpush.bf16.msra.mxu1 %v834_v4 }
  0x13   :  { %947 = vmatpush.bf16.msra.mxu2 %v834_v4  ;;  %948 = vmatpush.bf16.msra.mxu3 %v834_v4 }
  0x16   :  { %135 = vmatpush.bf16.msra.mxu0 %v833_v5  ;;  %949 = vmatpush.bf16.msra.mxu1 %v833_v5 }
  0x17   :  { %950 = vmatpush.bf16.msra.mxu2 %v833_v5  ;;  %951 = vmatpush.bf16.msra.mxu3 %v833_v5 }
  0x1a   :  { %136 = vmatpush.bf16.msra.mxu0 %v832_v6  ;;  %952 = vmatpush.bf16.msra.mxu1 %v832_v6 }
  0x1b   :  { %953 = vmatpush.bf16.msra.mxu2 %v832_v6  ;;  %954 = vmatpush.bf16.msra.mxu3 %v832_v6 }
  0x1e   :  { %137 = vmatpush.bf16.msra.mxu0 %v831_v7  ;;  %955 = vmatpush.bf16.msra.mxu1 %v831_v7 }
  0x1f   :  { %956 = vmatpush.bf16.msra.mxu2 %v831_v7  ;;  %957 = vmatpush.bf16.msra.mxu3 %v831_v7 }
  0x21   :  { %138 = vmatmul.bf16.vlgmr.msra.gmra.mxu0 %v46_v16  ;;  %158 = vmatmul.bf16.vlgmr.msra.gmra.mxu1 %v50_v17 }
  0x22   :  { %178 = vmatmul.bf16.vlgmr.msra.gmra.mxu2 %v54_v18  ;;  %198 = vmatmul.bf16.vlgmr.msra.gmra.mxu3 %v58_v19 }
  0x31   :  { %143 = vmatmul.bf16.gmra.mxu0 %v47_v28  ;;  %163 = vmatmul.bf16.gmra.mxu1 %v51_v29 }
  0x32   :  { %203 = vmatmul.bf16.gmra.mxu3 %v59_v30  ;;  %183 = vmatmul.bf16.gmra.mxu2 %v55_v31 }
  0x41   :  { %148 = vmatmul.bf16.gmra.mxu0 %v48_v40  ;;  %168 = vmatmul.bf16.gmra.mxu1 %v52_v41 }
  0x42   :  { %188 = vmatmul.bf16.gmra.mxu2 %v56_v42  ;;  %208 = vmatmul.bf16.gmra.mxu3 %v60_v43 }
  0x51   :  { %153 = vmatmul.bf16.gmra.mxu0 %v49_v52  ;;  %173 = vmatmul.bf16.gmra.mxu1 %v53_v53 }
  0x52   :  { %193 = vmatmul.bf16.gmra.mxu2 %v57_v54  ;;  %213 = vmatmul.bf16.gmra.mxu3 %v61_v55 }
  0x9e   :  { %v139_v57 = vpop.f32.mrf.mxu0  ;;  %v159_v58 = vpop.f32.mrf.mxu1 }
  0x9f   :  { %v1169_v59 = vadd.f32 %v1166_v56, %v139_v57  ;;  %v1172_v60 = vadd.f32 %v1166_v56, %v159_v58 }
  0xa1   :  { %v227_v61 = vmul.f32 %v1172_v60, %v1172_v60  ;;  %v219_v62 = vmul.f32 %v1169_v59, %v1169_v59 }
  0xa3   :  { %267 = vadd.xlane.f32.xlu2 %v227_v61  ;;  %251 = vadd.xlane.f32.xlu0 %v219_v62 }
  0xa5   :  { %v179_v63 = vpop.f32.mrf.mxu2  ;;  %v199_v0 = vpop.f32.mrf.mxu3 }
  0xa6   :  { %v1179_v1 = vadd.f32 %v1166_v56, %v179_v63  ;;  %v1182_v2 = vadd.f32 %v1166_v56, %v199_v0  ;;  %v141_v3 = vpop.f32.mrf.mxu0  ;;  %v161_v4 = vpop.f32.mrf.mxu1 }
  0xa7   :  { %v1189_v7 = vadd.f32 %v1166_v56, %v141_v3  ;;  %v1207_v18 = vadd.f32 %v1166_v56, %v161_v4 }
  0xa8   :  { %v235_v5 = vmul.f32 %v1179_v1, %v1179_v1  ;;  %v243_v6 = vmul.f32 %v1182_v2, %v1182_v2 }
  0xa9   :  { %v220_v16 = vmul.f32 %v1189_v7, %v1189_v7  ;;  %v228_v26 = vmul.f32 %v1207_v18, %v1207_v18 }
  0xaa   :  { %283 = vadd.xlane.f32.xlu1 %v235_v5 }
  0xab   :  { %299 = vadd.xlane.f32.xlu0 %v243_v6 }
  0xad   :  { %v181_v8 = vpop.f32.mrf.mxu2  ;;  %v201_v9 = vpop.f32.mrf.mxu3 }
  0xae   :  { %v1192_v10 = vadd.f32 %v1166_v56, %v181_v8  ;;  %v1195_v11 = vadd.f32 %v1166_v56, %v201_v9  ;;  %v144_v12 = vpop.f32.mrf.mxu0  ;;  %v164_v13 = vpop.f32.mrf.mxu1 }
  0xaf   :  { %v1204_v17 = vadd.f32 %v1166_v56, %v144_v12  ;;  %v1219_v27 = vadd.f32 %v1166_v56, %v164_v13 }
  0xb0   :  { %v244_v14 = vmul.f32 %v1195_v11, %v1195_v11  ;;  %v236_v15 = vmul.f32 %v1192_v10, %v1192_v10 }
  0xb1   :  { %v221_v22 = vmul.f32 %v1204_v17, %v1204_v17  ;;  %v229_v32 = vmul.f32 %v1219_v27, %v1219_v27 }
  0xb2   :  { %301 = vadd.xlane.f32.xlu1 %v244_v14  ;;  %285 = vadd.xlane.f32.xlu2 %v236_v15 }
  0xb3   :  { %253 = vadd.xlane.f32.xlu0 %v220_v16 }
  0xb5   :  { %v204_v19 = vpop.f32.mrf.mxu3  ;;  %v184_v20 = vpop.f32.mrf.mxu2 }
  0xb6   :  { %v1210_v21 = vadd.f32 %v1166_v56, %v204_v19  ;;  %v146_v23 = vpop.f32.mrf.mxu0  ;;  %v166_v24 = vpop.f32.mrf.mxu1  ;;  %v1225_v29 = vadd.f32 %v1166_v56, %v184_v20 }
  0xb7   :  { %v1222_v28 = vadd.f32 %v1166_v56, %v166_v24  ;;  %v1237_v38 = vadd.f32 %v1166_v56, %v146_v23 }
  0xb8   :  { %v245_v25 = vmul.f32 %v1210_v21, %v1210_v21  ;;  %v237_v33 = vmul.f32 %v1225_v29, %v1225_v29 }
  0xb9   :  { %v230_v31 = vmul.f32 %v1222_v28, %v1222_v28  ;;  %v222_v42 = vmul.f32 %v1237_v38, %v1237_v38 }
  0xba   :  { %303 = vadd.xlane.f32.xlu2 %v245_v25  ;;  %255 = vadd.xlane.f32.xlu1 %v221_v22 }
  0xbb   :  { %269 = vadd.xlane.f32.xlu0 %v228_v26 }
  0xbd   :  { %v186_v30 = vpop.f32.mrf.mxu2  ;;  %v206_v35 = vpop.f32.mrf.mxu3 }
  0xbe   :  { %v149_v34 = vpop.f32.mrf.mxu0  ;;  %v169_v37 = vpop.f32.mrf.mxu1  ;;  %v1240_v39 = vadd.f32 %v1166_v56, %v206_v35  ;;  %v1255_v46 = vadd.f32 %v1166_v56, %v186_v30 }
  0xbf   :  { %v1234_v36 = vadd.f32 %v1166_v56, %v149_v34  ;;  %v1252_v45 = vadd.f32 %v1166_v56, %v169_v37 }
  0xc0   :  { %v246_v43 = vmul.f32 %v1240_v39, %v1240_v39  ;;  %v238_v51 = vmul.f32 %v1255_v46, %v1255_v46 }
  0xc1   :  { %v223_v41 = vmul.f32 %v1234_v36, %v1234_v36  ;;  %v231_v50 = vmul.f32 %v1252_v45, %v1252_v45 }
  0xc2   :  { %273 = vadd.xlane.f32.xlu2 %v230_v31  ;;  %271 = vadd.xlane.f32.xlu1 %v229_v32 }
  0xc3   :  { %287 = vadd.xlane.f32.xlu0 %v237_v33 }
  0xc5   :  { %v189_v40 = vpop.f32.mrf.mxu2  ;;  %v209_v53 = vpop.f32.mrf.mxu3 }
  0xc6   :  { %v1249_v44 = vadd.f32 %v1166_v56, %v189_v40  ;;  %v171_v47 = vpop.f32.mrf.mxu1  ;;  %v151_v52 = vpop.f32.mrf.mxu0  ;;  %v1264_v54 = vadd.f32 %v1166_v56, %v209_v53 }
  0xc7   :  { %v1267_v55 = vadd.f32 %v1166_v56, %v151_v52  ;;  %v1285_v6 = vadd.f32 %v1166_v56, %v171_v47 }
  0xc8   :  { %v239_v49 = vmul.f32 %v1249_v44, %v1249_v44  ;;  %v247_v61 = vmul.f32 %v1264_v54, %v1264_v54 }
  0xc9   :  { %v224_v63 = vmul.f32 %v1267_v55, %v1267_v55  ;;  %v232_v14 = vmul.f32 %v1285_v6, %v1285_v6 }
  0xca   :  { %259 = vadd.xlane.f32.xlu2 %v223_v41  ;;  %257 = vadd.xlane.f32.xlu1 %v222_v42 }
  0xcb   :  { %305 = vadd.xlane.f32.xlu0 %v246_v43 }
  0xcd   :  { %v191_v48 = vpop.f32.mrf.mxu2  ;;  %v211_v9 = vpop.f32.mrf.mxu3 }
  0xce   :  { %v1270_v57 = vadd.f32 %v1166_v56, %v191_v48  ;;  %v174_v62 = vpop.f32.mrf.mxu1  ;;  %v154_v3 = vpop.f32.mrf.mxu0  ;;  %v1309_v30 = vadd.f32 %v1166_v56, %v211_v9 }
  0xcf   :  { %v1279_v4 = vadd.f32 %v1166_v56, %v174_v62  ;;  %v1282_v5 = vadd.f32 %v1166_v56, %v154_v3 }
  0xd0   :  { %v240_v0 = vmul.f32 %v1270_v57, %v1270_v57  ;;  %v248_v33 = vmul.f32 %v1309_v30, %v1309_v30 }
  0xd1   :  { %v233_v8 = vmul.f32 %v1279_v4, %v1279_v4  ;;  %v225_v12 = vmul.f32 %v1282_v5, %v1282_v5 }
  0xd2   :  { %291 = vadd.xlane.f32.xlu2 %v239_v49  ;;  %289 = vadd.xlane.f32.xlu1 %v238_v51 }
  0xd3   :  { %275 = vadd.xlane.f32.xlu0 %v231_v50 }
  0xd5   :  { %v194_v58 = vpop.f32.mrf.mxu2  ;;  %v214_v24 = vpop.f32.mrf.mxu3 }
  0xd6   :  { %v1294_v15 = vadd.f32 %v1166_v56, %v194_v58  ;;  %v176_v16 = vpop.f32.mrf.mxu1  ;;  %v156_v25 = vpop.f32.mrf.mxu0  ;;  %v1315_v32 = vadd.f32 %v1166_v56, %v214_v24 }
  0xd7   :  { %v1300_v20 = vadd.f32 %v1166_v56, %v176_v16  ;;  %v1312_v31 = vadd.f32 %v1166_v56, %v156_v25 }
  0xd8   :  { %v241_v23 = vmul.f32 %v1294_v15, %v1294_v15  ;;  %v249_v37 = vmul.f32 %v1315_v32, %v1315_v32 }
  0xd9   :  { %v234_v26 = vmul.f32 %v1300_v20, %v1300_v20  ;;  %v226_v34 = vmul.f32 %v1312_v31, %v1312_v31 }
  0xda   :  { %261 = vadd.xlane.f32.xlu2 %v224_v63  ;;  %307 = vadd.xlane.f32.xlu1 %v247_v61 }
  0xdb   :  { %293 = vadd.xlane.f32.xlu0 %v240_v0 }
  0xdd   :  { %v196_v13 = vpop.f32.mrf.mxu2  ;;  %v216_v35 = vpop.f32.mrf.mxu3 }
  0xde   :  { %v1297_v19 = vadd.f32 %v1166_v56, %v196_v13  ;;  %v1324_v40 = vadd.f32 %v1166_v56, %v216_v35 }
  0xe0   :  { %v242_v22 = vmul.f32 %v1297_v19, %v1297_v19  ;;  %1903 = vst [vmem:[#allocation2_spill] sm:$0xff] %v1324_v40  ;;  %v250_v41 = vmul.f32 %v1324_v40, %v1324_v40 }
  0xe2   :  { %279 = vadd.xlane.f32.xlu2 %v233_v8  ;;  %277 = vadd.xlane.f32.xlu1 %v232_v14 }
  0xe3   :  { %263 = vadd.xlane.f32.xlu0 %v225_v12 }
  0xea   :  { %297 = vadd.xlane.f32.xlu2 %v242_v22  ;;  %295 = vadd.xlane.f32.xlu1 %v241_v23 }
  0xeb   :  { %281 = vadd.xlane.f32.xlu0 %v234_v26 }
  0xf2   :  { %309 = vadd.xlane.f32.xlu2 %v248_v33  ;;  %265 = vadd.xlane.f32.xlu1 %v226_v34 }
  0xf3   :  { %311 = vadd.xlane.f32.xlu0 %v249_v37 }
  0xfa   :  { %313 = vadd.xlane.f32.xlu1 %v250_v41 }
 0x116   :  { %v268_v42 = vpop.xlane.xlu2 %267  ;;  %v252_v43 = vpop.xlane.xlu0 %251 }
 0x117   :  { %v323_v47 = vmax.f32 %v268_v42, 1e-24  ;;  %v315_v48 = vmax.f32 %v252_v43, 1e-24 }
 0x119   :  { %959 = vrsqrt.f32 %v323_v47  ;;  %vm433_vm0 = vweird.f32 %v323_v47  ;;  %vm353_vm2 = vweird.f32 %v315_v48 }
 0x11a   :  { %961 = vrsqrt.f32 %v315_v48 }
 0x11d   :  { %v284_v49 = vpop.xlane.xlu1 %283 }
 0x11e   :  { %v1328_v50 = vmax.f32 %v284_v49, 1e-24  ;;  %v300_v51 = vpop.xlane.xlu0 %299 }
 0x11f   :  { %v1330_v52 = vpop.eup %959  ;;  %v1332_v53 = vmax.f32 %v300_v51, 1e-24 }
 0x120   :  { %v1334_v56 = vpop.eup %961  ;;  %v428_v58 = vmul.f32 %v1330_v52, %v323_v47  ;;  %963 = vrsqrt.f32 %v1328_v50  ;;  %vm434_vm1 = vweird.f32 %v1330_v52  ;;  %vm513_vm4 = vweird.f32 %v1328_v50 }
 0x121   :  { %v348_v61 = vmul.f32 %v1334_v56, %v315_v48  ;;  %965 = vrsqrt.f32 %v1332_v53  ;;  %vm354_vm3 = vweird.f32 %v1334_v56  ;;  %vm593_vm5 = vweird.f32 %v1332_v53  ;;  %vm1378_vm6 = vmor %vm433_vm0, %vm434_vm1 }
 0x122   :  { %v429_v62 = vmul.f32 %v1330_v52, %v428_v58  ;;  %vm1397_vm9 = vmor %vm353_vm2, %vm354_vm3 }
 0x123   :  { %v349_v63 = vmul.f32 %v1334_v56, %v348_v61 }
 0x124   :  { %v430_v9 = vmul.f32 0.5, %v429_v62 }
 0x125   :  { %v302_v0 = vpop.xlane.xlu1 %301  ;;  %v286_v3 = vpop.xlane.xlu2 %285  ;;  %v350_v12 = vmul.f32 0.5, %v349_v63 }
 0x126   :  { %v1342_v8 = vpop.eup %963  ;;  %v1344_v13 = vmax.f32 %v302_v0, 1e-24  ;;  %v1346_v14 = vmax.f32 %v286_v3, 1e-24  ;;  %v254_v16 = vpop.xlane.xlu0 %253  ;;  %v431_v33 = vsub.f32 1.5, %v430_v9 }
 0x127   :  { %v1348_v22 = vpop.eup %965  ;;  %v508_v23 = vmul.f32 %v1342_v8, %v1328_v50  ;;  %v1352_v24 = vmax.f32 %v254_v16, 1e-24  ;;  %v351_v34 = vsub.f32 1.5, %v350_v12  ;;  %vm514_vm7 = vweird.f32 %v1342_v8 }
 0x128   :  { %v588_v25 = vmul.f32 %v1348_v22, %v1332_v53  ;;  %967 = vrsqrt.f32 %v1344_v13  ;;  %v1368_v58 = vmul.f32 %v1330_v52, %v431_v33  ;;  %vm594_vm8 = vweird.f32 %v1348_v22  ;;  %vm1428_vm14 = vmor %vm513_vm4, %vm514_vm7 }
 0x129   :  { %v509_v26 = vmul.f32 %v1342_v8, %v508_v23  ;;  %969 = vrsqrt.f32 %v1346_v14  ;;  %v352_v61 = vmul.f32 %v1334_v56, %v351_v34  ;;  %vm603_vm10 = vweird.f32 %v1344_v13  ;;  %vm1418_vm12 = vmor %vm593_vm5, %vm594_vm8 }
 0x12a   :  { %v589_v35 = vmul.f32 %v1348_v22, %v588_v25  ;;  %971 = vrsqrt.f32 %v1352_v24  ;;  %vm523_vm11 = vweird.f32 %v1346_v14  ;;  %vm363_vm13 = vweird.f32 %v1352_v24 }
 0x12b   :  { %v510_v37 = vmul.f32 0.5, %v509_v26  ;;  %v356_v48 = vsel %vm1397_vm9, %v1334_v56, %v352_v61 }
 0x12c   :  { %v590_v41 = vmul.f32 0.5, %v589_v35 }
 0x12d   :  { %v511_v42 = vsub.f32 1.5, %v510_v37  ;;  %v304_v43 = vpop.xlane.xlu2 %303  ;;  %v256_v49 = vpop.xlane.xlu1 %255 }
 0x12e   :  { %v1365_v51 = vpop.eup %967  ;;  %v591_v62 = vsub.f32 1.5, %v590_v41  ;;  %v1371_v63 = vmax.f32 %v304_v43, 1e-24  ;;  %v270_v0 = vpop.xlane.xlu0 %269  ;;  %v1386_v16 = vmax.f32 %v256_v49, 1e-24  ;;  %v436_v41 = vsel %vm1378_vm6, %v1330_v52, %v1368_v58 }
 0x12f   :  { %v1373_v3 = vpop.eup %969  ;;  %v598_v12 = vmul.f32 %v1365_v51, %v1344_v13  ;;  %v1392_v47 = vmax.f32 %v270_v0, 1e-24  ;;  %v512_v34 = vmul.f32 %v1342_v8, %v511_v42  ;;  %vm604_vm15 = vweird.f32 %v1365_v51 }
 0x130   :  { %v972_v23 = vpop.eup %971  ;;  %v592_v25 = vmul.f32 %v1348_v22, %v591_v62  ;;  %v518_v26 = vmul.f32 %v1373_v3, %v1346_v14  ;;  %973 = vrsqrt.f32 %v1371_v63  ;;  %vm524_vm0 = vweird.f32 %v1373_v3  ;;  %vm605_vm2 = vmor %vm603_vm10, %vm604_vm15 }
 0x131   :  { %v599_v35 = vmul.f32 %v1365_v51, %v598_v12  ;;  %v358_v37 = vmul.f32 %v972_v23, %v1352_v24  ;;  %975 = vrsqrt.f32 %v1386_v16  ;;  %v516_v58 = vsel %vm1428_vm14, %v1342_v8, %v512_v34  ;;  %vm525_vm3 = vmor %vm523_vm11, %vm524_vm0 }
 0x132   :  { %v519_v43 = vmul.f32 %v1373_v3, %v518_v26  ;;  %v596_v53 = vsel %vm1418_vm12, %v1348_v22, %v592_v25  ;;  %977 = vrsqrt.f32 %v1392_v47  ;;  %vm364_vm1 = vweird.f32 %v972_v23 }
 0x133   :  { %v600_v49 = vmul.f32 0.5, %v599_v35  ;;  %v359_v62 = vmul.f32 %v972_v23, %v358_v37  ;;  %v691_v35 = vmul.f32 5.477226, %v596_v53  ;;  %v667_v34 = vmul.f32 5.477226, %v356_v48  ;;  %vm365_vm4 = vmor %vm363_vm13, %vm364_vm1 }
 0x134   :  { %v520_v56 = vmul.f32 0.5, %v519_v43  ;;  %v683_v42 = vmul.f32 5.477226, %v516_v58  ;;  %vm613_vm5 = vweird.f32 %v1371_v63  ;;  %vm373_vm7 = vweird.f32 %v1386_v16 }
 0x135   :  { %v601_v61 = vsub.f32 1.5, %v600_v49  ;;  %v360_v50 = vmul.f32 0.5, %v359_v62  ;;  %v274_v0 = vpop.xlane.xlu2 %273  ;;  %v272_v9 = vpop.xlane.xlu1 %271  ;;  %v723_v14 = vmul.f32 %v691_v35, %v1182_v2  ;;  %vm443_vm8 = vweird.f32 %v1392_v47 }
 0x136   :  { %v1441_v12 = vpop.eup %973  ;;  %v521_v26 = vsub.f32 1.5, %v520_v56  ;;  %v1443_v22 = vmax.f32 %v274_v0, 1e-24  ;;  %v1445_v25 = vmax.f32 %v272_v9, 1e-24  ;;  %v288_v33 = vpop.xlane.xlu0 %287  ;;  %v715_v24 = vmul.f32 %v683_v42, %v1179_v1 }
 0x137   :  { %v602_v37 = vmul.f32 %v1365_v51, %v601_v61  ;;  %v361_v43 = vsub.f32 1.5, %v360_v50  ;;  %v608_v8 = vmul.f32 %v1441_v12, %v1371_v63  ;;  %v1456_v62 = vpop.eup %975  ;;  %v675_v56 = vmul.f32 5.477226, %v436_v41 }
 0x138   :  { %v522_v49 = vmul.f32 %v1373_v3, %v521_v26  ;;  %979 = vrsqrt.f32 %v1443_v22  ;;  %v978_v13 = vpop.eup %977  ;;  %vm614_vm9 = vweird.f32 %v1441_v12  ;;  %vm463_vm11 = vweird.f32 %v1443_v22 }
 0x139   :  { %v606_v52 = vsel %vm605_vm2, %v1365_v51, %v602_v37  ;;  %v362_v48 = vmul.f32 %v972_v23, %v361_v43  ;;  %v609_v53 = vmul.f32 %v1441_v12, %v608_v8  ;;  %981 = vrsqrt.f32 %v1445_v25  ;;  %vm1519_vm14 = vmor %vm613_vm5, %vm614_vm9 }
 0x13a   :  { %v692_v58 = vmul.f32 5.477226, %v606_v52  ;;  %v526_v61 = vsel %vm525_vm3, %v1373_v3, %v522_v49  ;;  %v368_v51 = vmul.f32 %v1456_v62, %v1386_v16  ;;  %v438_v9 = vmul.f32 %v978_v13, %v1392_v47 }
 0x13b   :  { %v684_v50 = vmul.f32 5.477226, %v526_v61  ;;  %v366_v0 = vsel %vm365_vm4, %v972_v23, %v362_v48  ;;  %v610_v41 = vmul.f32 0.5, %v609_v53  ;;  %v699_v3 = vmul.f32 %v667_v34, %v1169_v59 }
 0x13c   :  { %v724_v26 = vmul.f32 %v692_v58, %v1195_v11  ;;  %v668_v37 = vmul.f32 5.477226, %v366_v0  ;;  %v369_v43 = vmul.f32 %v1456_v62, %v368_v51  ;;  %v439_v49 = vmul.f32 %v978_v13, %v438_v9 }
 0x13d   :  { %v716_v8 = vmul.f32 %v684_v50, %v1192_v10  ;;  %v260_v52 = vpop.xlane.xlu2 %259  ;;  %v258_v40 = vpop.xlane.xlu1 %257  ;;  %v1481_v11 = vmax.f32 %v288_v33, 1e-24  ;;  %v707_v34 = vmul.f32 %v675_v56, %v1172_v60  ;;  %v611_v42 = vsub.f32 1.5, %v610_v41 }
 0x13e   :  { %v1478_v2 = vpop.eup %979  ;;  %v902_v23 = vpack.c.bf16 %v724_v26, %v723_v14  ;;  %v700_v35 = vmul.f32 %v668_v37, %v1189_v7  ;;  %v370_v48 = vmul.f32 0.5, %v369_v43  ;;  %v306_v53 = vpop.xlane.xlu0 %305  ;;  %v440_v59 = vmul.f32 0.5, %v439_v49 }
 0x13f   :  { %v1483_v58 = vpop.eup %981  ;;  %v882_v61 = vpack.c.bf16 %v716_v8, %v715_v24  ;;  %v458_v1 = vmul.f32 %v1478_v2, %v1443_v22  ;;  %v1487_v10 = vmax.f32 %v260_v52, 1e-24  ;;  %vm444_vm6 = vweird.f32 %v978_v13 }
 0x140   :  { %930 = vst [vmem:[%s1901_s3 + $0x60] sm:$0xff] %v902_v23   ;;  %v842_v7 = vpack.c.bf16 %v700_v35, %v699_v3  ;;  %v448_v33 = vmul.f32 %v1483_v58, %v1445_v25  ;;  %v441_v51 = vsub.f32 1.5, %v440_v59  ;;  %983 = vrsqrt.f32 %v1481_v11  ;;  %vm445_vm10 = vmor %vm443_vm8, %vm444_vm6 }
 0x141   :  { %926 = vst [vmem:[%s1901_s3 + $0x40] sm:$0xff] %v882_v61   ;;  %v459_v14 = vmul.f32 %v1478_v2, %v458_v1  ;;  %v371_v56 = vsub.f32 1.5, %v370_v48  ;;  %985 = vrsqrt.f32 %v1487_v10  ;;  %v612_v9 = vmul.f32 %v1441_v12, %v611_v42 }
 0x142   :  { %843 = vst [vmem:[%s1901_s3] sm:$0xff] %v842_v7   ;;  %v449_v60 = vmul.f32 %v1483_v58, %v448_v33  ;;  %v442_v50 = vmul.f32 %v978_v13, %v441_v51  ;;  %vm464_vm12 = vweird.f32 %v1478_v2  ;;  %v1512_v47 = vmax.f32 %v258_v40, 1e-24 }
 0x143   :  { %v460_v0 = vmul.f32 0.5, %v459_v14  ;;  %vm454_vm13 = vweird.f32 %v1483_v58  ;;  %v1515_v49 = vmax.f32 %v306_v53, 1e-24  ;;  %vm374_vm15 = vweird.f32 %v1456_v62  ;;  %vm465_vm0 = vmor %vm463_vm11, %vm464_vm12 }
 0x144   :  { %v450_v26 = vmul.f32 0.5, %v449_v60  ;;  %v446_v37 = vsel %vm445_vm10, %v978_v13, %v442_v50  ;;  %v372_v13 = vmul.f32 %v1456_v62, %v371_v56  ;;  %987 = vrsqrt.f32 %v1512_v47  ;;  %vm1553_vm3 = vmor %vm373_vm7, %vm374_vm15 }
 0x145   :  { %v461_v41 = vsub.f32 1.5, %v460_v0  ;;  %v292_v43 = vpop.xlane.xlu2 %291  ;;  %v290_v3 = vpop.xlane.xlu1 %289  ;;  %v676_v24 = vmul.f32 5.477226, %v446_v37  ;;  %vm453_vm1 = vweird.f32 %v1445_v25  ;;  %989 = vrsqrt.f32 %v1515_v49 }
 0x146   :  { %v451_v8 = vsub.f32 1.5, %v450_v26  ;;  %v1527_v23 = vpop.eup %983  ;;  %v276_v48 = vpop.xlane.xlu0 %275  ;;  %v616_v61 = vsel %vm1519_vm14, %v1441_v12, %v612_v9  ;;  %vm455_vm2 = vmor %vm453_vm1, %vm454_vm13  ;;  %v1547_v59 = vmax.f32 %v292_v43, 1e-24  ;;  %v376_v42 = vsel %vm1553_vm3, %v1456_v62, %v372_v13 }
 0x147   :  { %v462_v40 = vmul.f32 %v1478_v2, %v461_v41  ;;  %v708_v35 = vmul.f32 %v676_v24, %v1207_v18  ;;  %v1537_v53 = vpop.eup %985  ;;  %v528_v22 = vmul.f32 %v1527_v23, %v1481_v11  ;;  %v693_v60 = vmul.f32 5.477226, %v616_v61 }
 0x148   :  { %v452_v63 = vmul.f32 %v1483_v58, %v451_v8  ;;  %v388_v7 = vmul.f32 %v1537_v53, %v1487_v10  ;;  %991 = vrsqrt.f32 %v1547_v59  ;;  %v1573_v62 = vmax.f32 %v276_v48, 1e-24 }
 0x149   :  { %v466_v18 = vsel %vm465_vm0, %v1478_v2, %v462_v40  ;;  %v862_v1 = vpack.c.bf16 %v708_v35, %v707_v34  ;;  %v529_v51 = vmul.f32 %v1527_v23, %v528_v22  ;;  %v1570_v34 = vmax.f32 %v290_v3, 1e-24 }
 0x14a   :  { %v678_v12 = vmul.f32 5.477226, %v466_v18  ;;  %v456_v2 = vsel %vm455_vm2, %v1483_v58, %v452_v63  ;;  %v389_v58 = vmul.f32 %v1537_v53, %v388_v7  ;;  %v988_v14 = vpop.eup %987  ;;  %v669_v26 = vmul.f32 5.477226, %v376_v42 }
 0x14b   :  { %v677_v33 = vmul.f32 5.477226, %v456_v2  ;;  %922 = vst [vmem:[%s1901_s3 + $0x20] sm:$0xff] %v862_v1   ;;  %v990_v9 = vpop.eup %989  ;;  %v530_v37 = vmul.f32 0.5, %v529_v51  ;;  %v378_v41 = vmul.f32 %v988_v14, %v1512_v47  ;;  %993 = vrsqrt.f32 %v1570_v34 }
 0x14c   :  { %v710_v16 = vmul.f32 %v678_v12, %v1222_v28  ;;  %v618_v43 = vmul.f32 %v990_v9, %v1515_v49  ;;  %v390_v3 = vmul.f32 0.5, %v389_v58  ;;  %995 = vrsqrt.f32 %v1573_v62 }
 0x14d   :  { %v709_v56 = vmul.f32 %v677_v33, %v1219_v27  ;;  %v262_v50 = vpop.xlane.xlu2 %261  ;;  %v308_v0 = vpop.xlane.xlu1 %307  ;;  %v379_v24 = vmul.f32 %v988_v14, %v378_v41  ;;  %v1582_v27 = vmul.f32 %v693_v60, %v1210_v21  ;;  %vm533_vm4 = vweird.f32 %v1481_v11 }
 0x14e   :  { %v1579_v8 = vpop.eup %991  ;;  %v619_v52 = vmul.f32 %v990_v9, %v618_v43  ;;  %v1588_v13 = vmax.f32 %v262_v50, 1e-24  ;;  %v1591_v40 = vmul.f32 %v669_v26, %v1204_v17  ;;  %v531_v35 = vsub.f32 1.5, %v530_v37  ;;  %v294_v48 = vpop.xlane.xlu0 %293 }
 0x14f   :  { %v867_v28 = vpack.c.bf16 %v710_v16, %v709_v56  ;;  %vm393_vm5 = vweird.f32 %v1487_v10  ;;  %v380_v63 = vmul.f32 0.5, %v379_v24  ;;  %v548_v21 = vmul.f32 %v1579_v8, %v1547_v59 }
 0x150   :  { %vm383_vm6 = vweird.f32 %v1512_v47  ;;  %v620_v61 = vmul.f32 0.5, %v619_v52  ;;  %vm623_vm7 = vweird.f32 %v1515_v49  ;;  %997 = vrsqrt.f32 %v1588_v13 }
 0x151   :  { %923 = vst [vmem:[%s1901_s3 + $0x28] sm:$0xff] %v867_v28   ;;  %v1599_v18 = vpop.eup %993  ;;  %v391_v22 = vsub.f32 1.5, %v390_v3  ;;  %v381_v17 = vsub.f32 1.5, %v380_v63  ;;  %vm384_vm8 = vweird.f32 %v988_v14  ;;  %v549_v25 = vmul.f32 %v1579_v8, %v548_v21 }
 0x152   :  { %vm534_vm9 = vweird.f32 %v1527_v23  ;;  %v621_v1 = vsub.f32 1.5, %v620_v61  ;;  %vm624_vm10 = vweird.f32 %v990_v9  ;;  %v538_v12 = vmul.f32 %v1599_v18, %v1570_v34  ;;  %v1605_v7 = vpop.eup %995  ;;  %vm385_vm12 = vmor %vm383_vm6, %vm384_vm8 }
 0x153   :  { %v532_v42 = vmul.f32 %v1527_v23, %v531_v35  ;;  %vm394_vm11 = vweird.f32 %v1537_v53  ;;  %v382_v33 = vmul.f32 %v988_v14, %v381_v17  ;;  %v1609_v51 = vmax.f32 %v308_v0, 1e-24  ;;  %vm625_vm14 = vmor %vm623_vm7, %vm624_vm10 }
 0x154   :  { %v622_v16 = vmul.f32 %v990_v9, %v621_v1  ;;  %v550_v58 = vmul.f32 0.5, %v549_v25  ;;  %vm553_vm13 = vweird.f32 %v1547_v59  ;;  %v539_v60 = vmul.f32 %v1599_v18, %v538_v12  ;;  %vm1627_vm0 = vmor %vm533_vm4, %vm534_vm9 }
 0x155   :  { %v280_v2 = vpop.xlane.xlu2 %279  ;;  %v468_v56 = vmul.f32 %v1605_v7, %v1573_v62  ;;  %v278_v50 = vpop.xlane.xlu1 %277  ;;  %v392_v26 = vmul.f32 %v1537_v53, %v391_v22  ;;  %v386_v37 = vsel %vm385_vm12, %v988_v14, %v382_v33  ;;  %vm543_vm15 = vweird.f32 %v1570_v34  ;;  %vm1646_vm3 = vmor %vm393_vm5, %vm394_vm11 }
 0x156   :  { %999 = vrsqrt.f32 %v1609_v51  ;;  %v998_v47 = vpop.eup %997  ;;  %v670_v41 = vmul.f32 5.477226, %v386_v37  ;;  %v626_v28 = vsel %vm625_vm14, %v990_v9, %v622_v16  ;;  %v540_v14 = vmul.f32 0.5, %v539_v60  ;;  %v264_v22 = vpop.xlane.xlu0 %263 }
 0x157   :  { %v469_v43 = vmul.f32 %v1605_v7, %v468_v56  ;;  %v536_v49 = vsel %vm1627_vm0, %v1527_v23, %v532_v42  ;;  %v694_v3 = vmul.f32 5.477226, %v626_v28  ;;  %vm544_vm1 = vweird.f32 %v1599_v18 }
 0x158   :  { %v398_v24 = vmul.f32 %v998_v47, %v1588_v13  ;;  %v702_v11 = vmul.f32 %v670_v41, %v1237_v38  ;;  %v551_v52 = vsub.f32 1.5, %v550_v58  ;;  %v541_v35 = vsub.f32 1.5, %v540_v14  ;;  %vm545_vm5 = vmor %vm543_vm15, %vm544_vm1 }
 0x159   :  { %v470_v63 = vmul.f32 0.5, %v469_v43  ;;  %v726_v21 = vmul.f32 %v694_v3, %v1240_v39  ;;  %vm473_vm2 = vweird.f32 %v1573_v62  ;;  %v1640_v61 = vmax.f32 %v294_v48, 1e-24 }
 0x15a   :  { %v399_v9 = vmul.f32 %v998_v47, %v398_v24  ;;  %v685_v17 = vmul.f32 5.477226, %v536_v49  ;;  %v847_v38 = vpack.c.bf16 %v702_v11, %v1591_v40  ;;  %vm554_vm4 = vweird.f32 %v1579_v8 }
 0x15b   :  { %v542_v39 = vmul.f32 %v1599_v18, %v541_v35  ;;  %v396_v48 = vsel %vm1646_vm3, %v1537_v53, %v392_v26  ;;  %v907_v12 = vpack.c.bf16 %v726_v21, %v1582_v27  ;;  %1001 = vrsqrt.f32 %v1640_v61  ;;  %vm1686_vm8 = vmor %vm553_vm13, %vm554_vm4 }
 0x15c   :  { %v1653_v1 = vpop.eup %999  ;;  %v400_v10 = vmul.f32 0.5, %v399_v9  ;;  %919 = vst [vmem:[%s1901_s3 + $0x8] sm:$0xff] %v847_v38   ;;  %v552_v40 = vmul.f32 %v1579_v8, %v551_v52  ;;  %v471_v33 = vsub.f32 1.5, %v470_v63  ;;  %vm404_vm6 = vweird.f32 %v998_v47 }
 0x15d   :  { %v298_v25 = vpop.xlane.xlu2 %297  ;;  %v546_v42 = vsel %vm545_vm5, %v1599_v18, %v542_v39  ;;  %v628_v53 = vmul.f32 %v1653_v1, %v1609_v51  ;;  %931 = vst [vmem:[%s1901_s3 + $0x68] sm:$0xff] %v907_v12   ;;  %v1674_v16 = vmax.f32 %v280_v2, 1e-24  ;;  %v717_v58 = vmul.f32 %v685_v17, %v1225_v29  ;;  %v296_v56 = vpop.xlane.xlu1 %295 }
 0x15e   :  { %v686_v34 = vmul.f32 5.477226, %v546_v42  ;;  %v401_v27 = vsub.f32 1.5, %v400_v10  ;;  %vm403_vm7 = vweird.f32 %v1588_v13  ;;  %v1678_v60 = vmax.f32 %v278_v50, 1e-24  ;;  %v282_v3 = vpop.xlane.xlu0 %281 }
 0x15f   :  { %v1680_v18 = vmax.f32 %v264_v22, 1e-24  ;;  %v629_v29 = vmul.f32 %v1653_v1, %v628_v53  ;;  %1003 = vrsqrt.f32 %v1674_v16  ;;  %v671_v13 = vmul.f32 5.477226, %v396_v48  ;;  %vm405_vm10 = vmor %vm403_vm7, %vm404_vm6 }
 0x160   :  { %v718_v2 = vmul.f32 %v686_v34, %v1255_v46  ;;  %v402_v37 = vmul.f32 %v998_v47, %v401_v27  ;;  %v556_v50 = vsel %vm1686_vm8, %v1579_v8, %v552_v40  ;;  %vm474_vm9 = vweird.f32 %v1605_v7 }
 0x161   :  { %1005 = vrsqrt.f32 %v1678_v60  ;;  %v1002_v59 = vpop.eup %1001  ;;  %v472_v46 = vmul.f32 %v1605_v7, %v471_v33  ;;  %v687_v43 = vmul.f32 5.477226, %v556_v50  ;;  %v630_v8 = vmul.f32 0.5, %v629_v29  ;;  %vm1712_vm11 = vmor %vm473_vm2, %vm474_vm9 }
 0x162   :  { %v887_v0 = vpack.c.bf16 %v718_v2, %v717_v58  ;;  %v406_v41 = vsel %vm405_vm10, %v998_v47, %v402_v37  ;;  %1007 = vrsqrt.f32 %v1680_v18  ;;  %v558_v14 = vmul.f32 %v1002_v59, %v1640_v61 }
 0x163   :  { %v672_v28 = vmul.f32 5.477226, %v406_v41  ;;  %v1705_v49 = vmax.f32 %v298_v25, 1e-24  ;;  %v703_v24 = vmul.f32 %v671_v13, %v1234_v36  ;;  %v476_v21 = vsel %vm1712_vm11, %v1605_v7, %v472_v46 }
 0x164   :  { %927 = vst [vmem:[%s1901_s3 + $0x48] sm:$0xff] %v887_v0   ;;  %v559_v52 = vmul.f32 %v1002_v59, %v558_v14  ;;  %vm563_vm12 = vweird.f32 %v1640_v61  ;;  %v1724_v36 = vmax.f32 %v296_v56, 1e-24  ;;  %vm633_vm13 = vweird.f32 %v1609_v51 }
 0x165   :  { %v704_v11 = vmul.f32 %v672_v28, %v1267_v55  ;;  %v310_v35 = vpop.xlane.xlu2 %309  ;;  %v1717_v63 = vpop.eup %1003  ;;  %1009 = vrsqrt.f32 %v1705_v49  ;;  %v1729_v17 = vmax.f32 %v282_v3, 1e-24  ;;  %v719_v7 = vmul.f32 %v687_v43, %v1249_v44 }
 0x166   :  { %v560_v22 = vmul.f32 0.5, %v559_v52  ;;  %v488_v55 = vmul.f32 %v1717_v63, %v1674_v16  ;;  %v631_v38 = vsub.f32 1.5, %v630_v8  ;;  %v1735_v25 = vmax.f32 %v310_v35, 1e-24  ;;  %v266_v40 = vpop.xlane.xlu1 %265 }
 0x167   :  { %v1006_v62 = vpop.eup %1005  ;;  %v852_v9 = vpack.c.bf16 %v704_v11, %v703_v24  ;;  %vm564_vm14 = vweird.f32 %v1002_v59  ;;  %v679_v42 = vmul.f32 5.477226, %v476_v21  ;;  %vm634_vm15 = vweird.f32 %v1653_v1 }
 0x168   :  { %v1731_v23 = vpop.eup %1007  ;;  %v478_v39 = vmul.f32 %v1006_v62, %v1678_v60  ;;  %v561_v48 = vsub.f32 1.5, %v560_v22  ;;  %v489_v12 = vmul.f32 %v1717_v63, %v488_v55  ;;  %1011 = vrsqrt.f32 %v1724_v36  ;;  %vm565_vm1 = vmor %vm563_vm12, %vm564_vm14 }
 0x169   :  { %920 = vst [vmem:[%s1901_s3 + $0x10] sm:$0xff] %v852_v9   ;;  %v408_v10 = vmul.f32 %v1731_v23, %v1680_v18  ;;  %vm483_vm0 = vweird.f32 %v1678_v60  ;;  %1013 = vrsqrt.f32 %v1729_v17  ;;  %vm493_vm2 = vweird.f32 %v1674_v16  ;;  %vm1772_vm6 = vmor %vm633_vm13, %vm634_vm15 }
 0x16a   :  { %v479_v44 = vmul.f32 %v1006_v62, %v478_v39  ;;  %v562_v33 = vmul.f32 %v1002_v59, %v561_v48  ;;  %v490_v27 = vmul.f32 0.5, %v489_v12  ;;  %1015 = vrsqrt.f32 %v1735_v25 }
 0x16b   :  { %v409_v53 = vmul.f32 %v1731_v23, %v408_v10  ;;  %v1748_v34 = vpop.eup %1009  ;;  %v1754_v56 = vmax.f32 %v266_v40, 1e-24  ;;  %v1757_v26 = vmul.f32 %v1653_v1, %v631_v38  ;;  %vm484_vm3 = vweird.f32 %v1006_v62 }
 0x16c   :  { %v480_v58 = vmul.f32 0.5, %v479_v44  ;;  %v566_v2 = vsel %vm565_vm1, %v1002_v59, %v562_v33  ;;  %v578_v29 = vmul.f32 %v1748_v34, %v1705_v49  ;;  %v711_v61 = vmul.f32 %v679_v42, %v1252_v45  ;;  %vm485_vm7 = vmor %vm483_vm0, %vm484_vm3 }
 0x16d   :  { %v410_v37 = vmul.f32 0.5, %v409_v53  ;;  %v688_v13 = vmul.f32 5.477226, %v566_v2  ;;  %1017 = vrsqrt.f32 %v1754_v56  ;;  %vm413_vm4 = vweird.f32 %v1680_v18 }
 0x16e   :  { %v481_v50 = vsub.f32 1.5, %v480_v58  ;;  %v579_v0 = vmul.f32 %v1748_v34, %v578_v29  ;;  %vm583_vm5 = vweird.f32 %v1705_v49  ;;  %v1766_v46 = vpop.eup %1011  ;;  %v491_v28 = vsub.f32 1.5, %v490_v27  ;;  %v314_v35 = vpop.xlane.xlu1 %313 }
 0x16f   :  { %v720_v41 = vmul.f32 %v688_v13, %v1270_v57  ;;  %v411_v14 = vsub.f32 1.5, %v410_v37  ;;  %v1777_v43 = vpop.eup %1013  ;;  %v636_v8 = vsel %vm1772_vm6, %v1653_v1, %v1757_v26  ;;  %v568_v3 = vmul.f32 %v1766_v46, %v1724_v36  ;;  %v312_v57 = vpop.xlane.xlu0 %311 }
 0x170   :  { %v482_v45 = vmul.f32 %v1006_v62, %v481_v50  ;;  %v580_v51 = vmul.f32 0.5, %v579_v0  ;;  %vm573_vm8 = vweird.f32 %v1724_v36  ;;  %v1788_v24 = vpop.eup %1015  ;;  %vm494_vm9 = vweird.f32 %v1717_v63 }
 0x171   :  { %v892_v47 = vpack.c.bf16 %v720_v41, %v719_v7  ;;  %vm414_vm10 = vweird.f32 %v1731_v23  ;;  %vm584_vm11 = vweird.f32 %v1748_v34  ;;  %v569_v60 = vmul.f32 %v1766_v46, %v568_v3  ;;  %vm1822_vm15 = vmor %vm493_vm2, %vm494_vm9 }
 0x172   :  { %v486_v11 = vsel %vm485_vm7, %v1006_v62, %v482_v45  ;;  %v581_v1 = vsub.f32 1.5, %v580_v51  ;;  %v492_v9 = vmul.f32 %v1717_v63, %v491_v28  ;;  %v412_v22 = vmul.f32 %v1731_v23, %v411_v14  ;;  %vm585_vm13 = vmor %vm583_vm5, %vm584_vm11 }
 0x173   :  { %v680_v52 = vmul.f32 5.477226, %v486_v11  ;;  %v1794_v21 = vpop.eup %1017  ;;  %928 = vst [vmem:[%s1901_s3 + $0x50] sm:$0xff] %v892_v47   ;;  %v498_v62 = vmul.f32 %v1777_v43, %v1729_v17  ;;  %vm503_vm12 = vweird.f32 %v1729_v17  ;;  %v1804_v55 = vmax.f32 %v312_v57, 1e-24  ;;  %vm1835_vm0 = vmor %vm413_vm4, %vm414_vm10 }
 0x174   :  { %v582_v38 = vmul.f32 %v1748_v34, %v581_v1  ;;  %v570_v39 = vmul.f32 0.5, %v569_v60  ;;  %v638_v48 = vmul.f32 %v1788_v24, %v1735_v25  ;;  %vm574_vm14 = vweird.f32 %v1766_v46 }
 0x175   :  { %v712_v7 = vmul.f32 %v680_v52, %v1285_v6  ;;  %v499_v12 = vmul.f32 %v1777_v43, %v498_v62  ;;  %v418_v10 = vmul.f32 %v1794_v21, %v1754_v56  ;;  %v1816_v40 = vmax.f32 %v314_v35, 1e-24  ;;  %vm575_vm1 = vmor %vm573_vm8, %vm574_vm14 }
 0x176   :  { %v586_v49 = vsel %vm585_vm13, %v1748_v34, %v582_v38  ;;  %v571_v44 = vsub.f32 1.5, %v570_v39  ;;  %v639_v33 = vmul.f32 %v1788_v24, %v638_v48  ;;  %v496_v53 = vsel %vm1822_vm15, %v1717_v63, %v492_v9 }
 0x177   :  { %v872_v42 = vpack.c.bf16 %v712_v7, %v711_v61  ;;  %v690_v27 = vmul.f32 5.477226, %v586_v49  ;;  %v500_v58 = vmul.f32 0.5, %v499_v12  ;;  %v419_v26 = vmul.f32 %v1794_v21, %v418_v10  ;;  %v1930_v10 = vld [vmem:[#allocation2_spill] sm:$0xff] }
 0x178   :  { %v416_v63 = vsel %vm1835_vm0, %v1731_v23, %v412_v22  ;;  %v572_v34 = vmul.f32 %v1766_v46, %v571_v44  ;;  %v640_v2 = vmul.f32 0.5, %v639_v33  ;;  %1019 = vrsqrt.f32 %v1804_v55 }
 0x179   :  { %924 = vst [vmem:[%s1901_s3 + $0x30] sm:$0xff] %v872_v42   ;;  %v501_v18 = vsub.f32 1.5, %v500_v58  ;;  %vm504_vm2 = vweird.f32 %v1777_v43  ;;  %v420_v37 = vmul.f32 0.5, %v419_v26  ;;  %1021 = vrsqrt.f32 %v1816_v40 }
 0x17a   :  { %v576_v29 = vsel %vm575_vm1, %v1766_v46, %v572_v34  ;;  %v641_v13 = vsub.f32 1.5, %v640_v2  ;;  %vm644_vm3 = vweird.f32 %v1788_v24  ;;  %vm424_vm4 = vweird.f32 %v1794_v21  ;;  %vm505_vm5 = vmor %vm503_vm12, %vm504_vm2 }
 0x17b   :  { %v722_v23 = vmul.f32 %v690_v27, %v1297_v19  ;;  %v689_v50 = vmul.f32 5.477226, %v576_v29  ;;  %v502_v61 = vmul.f32 %v1777_v43, %v501_v18  ;;  %v421_v36 = vsub.f32 1.5, %v420_v37 }
 0x17c   :  { %v695_v0 = vmul.f32 5.477226, %v636_v8  ;;  %v681_v59 = vmul.f32 5.477226, %v496_v53  ;;  %v642_v41 = vmul.f32 %v1788_v24, %v641_v13  ;;  %vm643_vm6 = vweird.f32 %v1735_v25 }
 0x17d   :  { %v721_v46 = vmul.f32 %v689_v50, %v1294_v15  ;;  %v506_v28 = vsel %vm505_vm5, %v1777_v43, %v502_v61  ;;  %vm645_vm7 = vmor %vm643_vm6, %vm644_vm3  ;;  %v422_v19 = vmul.f32 %v1794_v21, %v421_v36  ;;  %vm423_vm8 = vweird.f32 %v1754_v56 }
 0x17e   :  { %v1020_v45 = vpop.eup %1019  ;;  %v673_v14 = vmul.f32 5.477226, %v416_v63  ;;  %v682_v8 = vmul.f32 5.477226, %v506_v28  ;;  %v646_v51 = vsel %vm645_vm7, %v1788_v24, %v642_v41  ;;  %vm425_vm9 = vmor %vm423_vm8, %vm424_vm4  ;;  %v713_v57 = vmul.f32 %v681_v59, %v1279_v4 }
 0x17f   :  { %v1022_v17 = vpop.eup %1021  ;;  %v897_v3 = vpack.c.bf16 %v722_v23, %v721_v46  ;;  %v696_v25 = vmul.f32 5.477226, %v646_v51  ;;  %v426_v15 = vsel %vm425_vm9, %v1794_v21, %v422_v19  ;;  %v648_v43 = vmul.f32 %v1020_v45, %v1804_v55 }
 0x180   :  { %v714_v47 = vmul.f32 %v682_v8, %v1300_v20  ;;  %v674_v56 = vmul.f32 5.477226, %v426_v15  ;;  %v658_v11 = vmul.f32 %v1022_v17, %v1816_v40  ;;  %v727_v52 = vmul.f32 %v695_v0, %v1264_v54 }
 0x181   :  { %929 = vst [vmem:[%s1901_s3 + $0x58] sm:$0xff] %v897_v3   ;;  %v728_v24 = vmul.f32 %v696_v25, %v1309_v30  ;;  %v649_v1 = vmul.f32 %v1020_v45, %v648_v43  ;;  %v705_v60 = vmul.f32 %v673_v14, %v1282_v5  ;;  %vm654_vm10 = vweird.f32 %v1020_v45 }
 0x182   :  { %v877_v35 = vpack.c.bf16 %v714_v47, %v713_v57  ;;  %v706_v21 = vmul.f32 %v674_v56, %v1312_v31  ;;  %v659_v4 = vmul.f32 %v1022_v17, %v658_v11  ;;  %vm664_vm11 = vweird.f32 %v1022_v17 }
 0x183   :  { %v912_v9 = vpack.c.bf16 %v728_v24, %v727_v52  ;;  %v650_v20 = vmul.f32 0.5, %v649_v1  ;;  %vm653_vm12 = vweird.f32 %v1804_v55  ;;  %vm663_vm14 = vweird.f32 %v1816_v40 }
 0x184   :  { %925 = vst [vmem:[%s1901_s3 + $0x38] sm:$0xff] %v877_v35   ;;  %v857_v54 = vpack.c.bf16 %v706_v21, %v705_v60  ;;  %v660_v22 = vmul.f32 0.5, %v659_v4  ;;  %vm655_vm13 = vmor %vm653_vm12, %vm654_vm10 }
 0x185   :  { %932 = vst [vmem:[%s1901_s3 + $0x70] sm:$0xff] %v912_v9   ;;  %v651_v30 = vsub.f32 1.5, %v650_v20  ;;  %vm665_vm15 = vmor %vm663_vm14, %vm664_vm11 }
 0x186   :  { %921 = vst [vmem:[%s1901_s3 + $0x18] sm:$0xff] %v857_v54   ;;  %v661_v5 = vsub.f32 1.5, %v660_v22 }
 0x187   :  { %v652_v31 = vmul.f32 %v1020_v45, %v651_v30 }
 0x188   :  { %v662_v62 = vmul.f32 %v1022_v17, %v661_v5 }
 0x189   :  { %v656_v7 = vsel %vm655_vm13, %v1020_v45, %v652_v31 }
 0x18a   :  { %v697_v38 = vmul.f32 5.477226, %v656_v7  ;;  %v666_v39 = vsel %vm665_vm15, %v1022_v17, %v662_v62 }
 0x18b   :  { %v698_v48 = vmul.f32 5.477226, %v666_v39 }
 0x18c   :  { %v729_v12 = vmul.f32 %v697_v38, %v1315_v32 }
 0x18d   :  { %v730_v6 = vmul.f32 %v698_v48, %v1930_v10 }
 0x18f   :  { %v917_v42 = vpack.c.bf16 %v730_v6, %v729_v12 }
 0x191   :  { %933 = vst [vmem:[%s1901_s3 + $0x78] sm:$0xff] %v917_v42  }

// kernel: transformer_forward.9
= control target key start
LH: loop header
LB: loop body
LE: loop exit
PB: predicated region body
PF: predicated region fallthrough
CT: control target
= control target key end

     0   :  { %s989_s1 = inlined_call_operand.vmem [shape: bf16[128,128], index: 1, kind: input, shape index: {}]   ;;  %s990_s2 = inlined_call_operand.vmem [shape: f32[1,128], index: 2, kind: input, shape index: {}]   ;;  %s991_s0 = inlined_call_operand.vmem [shape: f32[128,128], index: 0, kind: input, shape index: {}]   ;;  %s992_s3 = inlined_call_operand.vmem [shape: bf16[128,128], index: 3, kind: output, shape index: {}]  }
   0x1   :  { %v486_v0 = vld [vmem:[%s989_s1 + $0x38] sm:$0xff]  ;;  %v485_v1 = vld [vmem:[%s989_s1 + $0x30] sm:$0xff]  ;;  %v484_v2 = vld [vmem:[%s989_s1 + $0x28] sm:$0xff] }
   0x2   :  { %106 = vmatpush.bf16.msra.mxu0 %v486_v0  ;;  %534 = vmatpush.bf16.msra.mxu1 %v486_v0  ;;  %v483_v3 = vld [vmem:[%s989_s1 + $0x20] sm:$0xff]  ;;  %v482_v4 = vld [vmem:[%s989_s1 + $0x18] sm:$0xff]  ;;  %v481_v5 = vld [vmem:[%s989_s1 + $0x10] sm:$0xff] }
   0x3   :  { %535 = vmatpush.bf16.msra.mxu2 %v486_v0  ;;  %536 = vmatpush.bf16.msra.mxu3 %v486_v0  ;;  %v480_v6 = vld [vmem:[%s989_s1 + $0x8] sm:$0xff]  ;;  %v479_v7 = vld [vmem:[%s989_s1] sm:$0xff]  ;;  %v16_v20 = vld [vmem:[%s991_s0 + $0x10] sm:$0xff] }
   0x4   :  { %v14_v8 = vld [vmem:[%s991_s0] sm:$0xff]  ;;  %v15_v9 = vld [vmem:[%s991_s0 + $0x8] sm:$0xff]  ;;  %v17_v21 = vld [vmem:[%s991_s0 + $0x18] sm:$0xff] }
   0x5   :  { %v18_v10 = vld [vmem:[%s991_s0 + $0x20] sm:$0xff]  ;;  %v19_v11 = vld [vmem:[%s991_s0 + $0x28] sm:$0xff]  ;;  %v30_v16 = vpack.c.bf16 %v15_v9, %v14_v8  ;;  %v24_v22 = vld [vmem:[%s991_s0 + $0x50] sm:$0xff]  ;;  %v31_v28 = vpack.c.bf16 %v17_v21, %v16_v20 }
   0x6   :  { %107 = vmatpush.bf16.msra.mxu0 %v485_v1  ;;  %537 = vmatpush.bf16.msra.mxu1 %v485_v1  ;;  %v22_v12 = vld [vmem:[%s991_s0 + $0x40] sm:$0xff]  ;;  %v23_v13 = vld [vmem:[%s991_s0 + $0x48] sm:$0xff]  ;;  %v32_v17 = vpack.c.bf16 %v19_v11, %v18_v10  ;;  %v20_v23 = vld [vmem:[%s991_s0 + $0x30] sm:$0xff] }
   0x7   :  { %538 = vmatpush.bf16.msra.mxu2 %v485_v1  ;;  %539 = vmatpush.bf16.msra.mxu3 %v485_v1  ;;  %v26_v14 = vld [vmem:[%s991_s0 + $0x60] sm:$0xff]  ;;  %v27_v15 = vld [vmem:[%s991_s0 + $0x68] sm:$0xff]  ;;  %v34_v18 = vpack.c.bf16 %v23_v13, %v22_v12  ;;  %v21_v24 = vld [vmem:[%s991_s0 + $0x38] sm:$0xff] }
   0x8   :  { %v36_v19 = vpack.c.bf16 %v27_v15, %v26_v14  ;;  %v25_v25 = vld [vmem:[%s991_s0 + $0x58] sm:$0xff]  ;;  %v28_v26 = vld [vmem:[%s991_s0 + $0x70] sm:$0xff]  ;;  %v33_v29 = vpack.c.bf16 %v21_v24, %v20_v23  ;;  %v558_v32 = vld [vmem:[%s990_s2] ss:$0 sm:$0xff] }
   0x9   :  { %v29_v27 = vld [vmem:[%s991_s0 + $0x78] sm:$0xff]  ;;  %v35_v30 = vpack.c.bf16 %v25_v25, %v24_v22 }
   0xa   :  { %108 = vmatpush.bf16.msra.mxu0 %v484_v2  ;;  %540 = vmatpush.bf16.msra.mxu1 %v484_v2  ;;  %v37_v31 = vpack.c.bf16 %v29_v27, %v28_v26 }
   0xb   :  { %541 = vmatpush.bf16.msra.mxu2 %v484_v2  ;;  %542 = vmatpush.bf16.msra.mxu3 %v484_v2 }
   0xe   :  { %109 = vmatpush.bf16.msra.mxu0 %v483_v3  ;;  %543 = vmatpush.bf16.msra.mxu1 %v483_v3 }
   0xf   :  { %544 = vmatpush.bf16.msra.mxu2 %v483_v3  ;;  %545 = vmatpush.bf16.msra.mxu3 %v483_v3 }
  0x12   :  { %110 = vmatpush.bf16.msra.mxu0 %v482_v4  ;;  %546 = vmatpush.bf16.msra.mxu1 %v482_v4 }
  0x13   :  { %547 = vmatpush.bf16.msra.mxu2 %v482_v4  ;;  %548 = vmatpush.bf16.msra.mxu3 %v482_v4 }
  0x16   :  { %111 = vmatpush.bf16.msra.mxu0 %v481_v5  ;;  %549 = vmatpush.bf16.msra.mxu1 %v481_v5 }
  0x17   :  { %550 = vmatpush.bf16.msra.mxu2 %v481_v5  ;;  %551 = vmatpush.bf16.msra.mxu3 %v481_v5 }
  0x1a   :  { %112 = vmatpush.bf16.msra.mxu0 %v480_v6  ;;  %552 = vmatpush.bf16.msra.mxu1 %v480_v6 }
  0x1b   :  { %553 = vmatpush.bf16.msra.mxu2 %v480_v6  ;;  %554 = vmatpush.bf16.msra.mxu3 %v480_v6 }
  0x1e   :  { %113 = vmatpush.bf16.msra.mxu0 %v479_v7  ;;  %555 = vmatpush.bf16.msra.mxu1 %v479_v7 }
  0x1f   :  { %556 = vmatpush.bf16.msra.mxu2 %v479_v7  ;;  %557 = vmatpush.bf16.msra.mxu3 %v479_v7 }
  0x21   :  { %114 = vmatmul.bf16.vlgmr.msra.gmra.mxu0 %v30_v16  ;;  %124 = vmatmul.bf16.vlgmr.msra.gmra.mxu1 %v32_v17 }
  0x22   :  { %134 = vmatmul.bf16.vlgmr.msra.gmra.mxu2 %v34_v18  ;;  %144 = vmatmul.bf16.vlgmr.msra.gmra.mxu3 %v36_v19 }
  0x31   :  { %119 = vmatmul.bf16.gmra.mxu0 %v31_v28  ;;  %129 = vmatmul.bf16.gmra.mxu1 %v33_v29 }
  0x32   :  { %139 = vmatmul.bf16.gmra.mxu2 %v35_v30  ;;  %149 = vmatmul.bf16.gmra.mxu3 %v37_v31 }
  0x9e   :  { %v115_v33 = vpop.f32.mrf.mxu0  ;;  %v125_v34 = vpop.f32.mrf.mxu1 }
  0x9f   :  { %v686_v35 = vadd.f32 %v558_v32, %v115_v33  ;;  %v688_v36 = vadd.f32 %v558_v32, %v125_v34 }
  0xa1   :  { %v159_v37 = vmul.f32 %v688_v36, %v688_v36  ;;  %v155_v38 = vmul.f32 %v686_v35, %v686_v35 }
  0xa3   :  { %179 = vadd.xlane.f32.xlu2 %v159_v37  ;;  %171 = vadd.xlane.f32.xlu0 %v155_v38 }
  0xa5   :  { %v135_v39 = vpop.f32.mrf.mxu2  ;;  %v145_v40 = vpop.f32.mrf.mxu3 }
  0xa6   :  { %v694_v41 = vadd.f32 %v558_v32, %v135_v39  ;;  %v117_v42 = vpop.f32.mrf.mxu0  ;;  %v696_v43 = vadd.f32 %v558_v32, %v145_v40  ;;  %v127_v46 = vpop.f32.mrf.mxu1 }
  0xa7   :  { %v702_v47 = vadd.f32 %v558_v32, %v127_v46  ;;  %v704_v49 = vadd.f32 %v558_v32, %v117_v42 }
  0xa8   :  { %v163_v44 = vmul.f32 %v694_v41, %v694_v41  ;;  %v167_v45 = vmul.f32 %v696_v43, %v696_v43 }
  0xa9   :  { %v160_v53 = vmul.f32 %v702_v47, %v702_v47  ;;  %v156_v55 = vmul.f32 %v704_v49, %v704_v49 }
  0xab   :  { %187 = vadd.xlane.f32.xlu2 %v163_v44  ;;  %195 = vadd.xlane.f32.xlu0 %v167_v45 }
  0xad   :  { %v137_v48 = vpop.f32.mrf.mxu2  ;;  %v147_v52 = vpop.f32.mrf.mxu3 }
  0xae   :  { %v120_v50 = vpop.f32.mrf.mxu0  ;;  %v714_v57 = vadd.f32 %v558_v32, %v137_v48  ;;  %v130_v60 = vpop.f32.mrf.mxu1  ;;  %v746_v15 = vadd.f32 %v558_v32, %v147_v52 }
  0xaf   :  { %v706_v51 = vadd.f32 %v558_v32, %v120_v50  ;;  %v722_v0 = vadd.f32 %v558_v32, %v130_v60 }
  0xb0   :  { %v164_v63 = vmul.f32 %v714_v57, %v714_v57  ;;  %v168_v16 = vmul.f32 %v746_v15, %v746_v15 }
  0xb1   :  { %v157_v54 = vmul.f32 %v706_v51, %v706_v51  ;;  %v161_v5 = vmul.f32 %v722_v0, %v722_v0 }
  0xb3   :  { %181 = vadd.xlane.f32.xlu2 %v160_v53  ;;  %175 = vadd.xlane.f32.xlu1 %v157_v54 }
  0xb4   :  { %173 = vadd.xlane.f32.xlu0 %v156_v55 }
  0xb5   :  { %v140_v56 = vpop.f32.mrf.mxu2  ;;  %v150_v59 = vpop.f32.mrf.mxu3 }
  0xb6   :  { %v716_v58 = vadd.f32 %v558_v32, %v140_v56  ;;  %v122_v62 = vpop.f32.mrf.mxu0  ;;  %v132_v8 = vpop.f32.mrf.mxu1  ;;  %v734_v9 = vadd.f32 %v558_v32, %v150_v59 }
  0xb7   :  { %v724_v1 = vadd.f32 %v558_v32, %v122_v62  ;;  %v738_v11 = vadd.f32 %v558_v32, %v132_v8 }
  0xb8   :  { %v165_v61 = vmul.f32 %v716_v58, %v716_v58  ;;  %v169_v12 = vmul.f32 %v734_v9, %v734_v9 }
  0xb9   :  { %v158_v6 = vmul.f32 %v724_v1, %v724_v1  ;;  %v162_v14 = vmul.f32 %v738_v11, %v738_v11 }
  0xbb   :  { %191 = vadd.xlane.f32.xlu1 %v165_v61 }
  0xbc   :  { %189 = vadd.xlane.f32.xlu0 %v164_v63 }
  0xbd   :  { %v142_v2 = vpop.f32.mrf.mxu2  ;;  %v152_v7 = vpop.f32.mrf.mxu3 }
  0xbe   :  { %v726_v3 = vadd.f32 %v558_v32, %v142_v2  ;;  %v736_v10 = vadd.f32 %v558_v32, %v152_v7 }
  0xc0   :  { %v166_v4 = vmul.f32 %v726_v3, %v726_v3  ;;  %v170_v13 = vmul.f32 %v736_v10, %v736_v10 }
  0xc2   :  { %193 = vadd.xlane.f32.xlu2 %v166_v4 }
  0xc3   :  { %177 = vadd.xlane.f32.xlu1 %v158_v6 }
  0xc4   :  { %183 = vadd.xlane.f32.xlu0 %v161_v5 }
  0xca   :  { %199 = vadd.xlane.f32.xlu2 %v169_v12 }
  0xcb   :  { %185 = vadd.xlane.f32.xlu1 %v162_v14 }
  0xcc   :  { %201 = vadd.xlane.f32.xlu0 %v170_v13 }
  0xd3   :  { %197 = vadd.xlane.f32.xlu1 %v168_v16 }
 0x116   :  { %v180_v17 = vpop.xlane.xlu2 %179  ;;  %v172_v18 = vpop.xlane.xlu0 %171 }
 0x117   :  { %v207_v19 = vmax.f32 %v180_v17, 1e-24  ;;  %v203_v20 = vmax.f32 %v172_v18, 1e-24 }
 0x119   :  { %559 = vrsqrt.f32 %v207_v19  ;;  %vm265_vm0 = vweird.f32 %v207_v19  ;;  %vm225_vm4 = vweird.f32 %v203_v20 }
 0x11a   :  { %561 = vrsqrt.f32 %v203_v20 }
 0x11e   :  { %v188_v21 = vpop.xlane.xlu2 %187  ;;  %v196_v22 = vpop.xlane.xlu0 %195 }
 0x11f   :  { %v560_v23 = vpop.eup %559  ;;  %v750_v24 = vmax.f32 %v188_v21, 1e-24  ;;  %v753_v30 = vmax.f32 %v196_v22, 1e-24 }
 0x120   :  { %v562_v25 = vpop.eup %561  ;;  %v260_v26 = vmul.f32 %v560_v23, %v207_v19  ;;  %vm266_vm1 = vweird.f32 %v560_v23 }
 0x121   :  { %v220_v27 = vmul.f32 %v562_v25, %v203_v20  ;;  %563 = vrsqrt.f32 %v750_v24  ;;  %vm772_vm2 = vmor %vm265_vm0, %vm266_vm1  ;;  %vm226_vm3 = vweird.f32 %v562_v25  ;;  %vm305_vm6 = vweird.f32 %v750_v24 }
 0x122   :  { %v261_v28 = vmul.f32 %v560_v23, %v260_v26  ;;  %565 = vrsqrt.f32 %v753_v30  ;;  %vm227_vm5 = vmor %vm225_vm4, %vm226_vm3 }
 0x123   :  { %v221_v29 = vmul.f32 %v562_v25, %v220_v27 }
 0x124   :  { %v262_v31 = vmul.f32 0.5, %v261_v28 }
 0x125   :  { %v222_v32 = vmul.f32 0.5, %v221_v29 }
 0x126   :  { %v182_v33 = vpop.xlane.xlu2 %181  ;;  %v176_v34 = vpop.xlane.xlu1 %175  ;;  %v263_v42 = vsub.f32 1.5, %v262_v31 }
 0x127   :  { %v755_v37 = vpop.eup %563  ;;  %v758_v38 = vmax.f32 %v182_v33, 1e-24  ;;  %v760_v39 = vmax.f32 %v176_v34, 1e-24  ;;  %v174_v40 = vpop.xlane.xlu0 %173  ;;  %v223_v46 = vsub.f32 1.5, %v222_v32 }
 0x128   :  { %v300_v44 = vmul.f32 %v755_v37, %v750_v24  ;;  %v764_v45 = vmax.f32 %v174_v40, 1e-24  ;;  %v264_v50 = vmul.f32 %v560_v23, %v263_v42  ;;  %v770_v52 = vpop.eup %565  ;;  %vm306_vm7 = vweird.f32 %v755_v37 }
 0x129   :  { %567 = vrsqrt.f32 %v758_v38  ;;  %v224_v55 = vmul.f32 %v562_v25, %v223_v46  ;;  %v340_v2 = vmul.f32 %v770_v52, %v753_v30  ;;  %vm275_vm8 = vweird.f32 %v758_v38  ;;  %vm812_vm11 = vmor %vm305_vm6, %vm306_vm7 }
 0x12a   :  { %v301_v48 = vmul.f32 %v755_v37, %v300_v44  ;;  %569 = vrsqrt.f32 %v760_v39  ;;  %v268_v63 = vsel %vm772_vm2, %v560_v23, %v264_v50  ;;  %vm235_vm10 = vweird.f32 %v764_v45 }
 0x12b   :  { %571 = vrsqrt.f32 %v764_v45  ;;  %v228_v8 = vsel %vm227_vm5, %v562_v25, %v224_v55  ;;  %v383_v14 = vmul.f32 5.477226, %v268_v63  ;;  %v341_v17 = vmul.f32 %v770_v52, %v340_v2 }
 0x12c   :  { %v302_v54 = vmul.f32 0.5, %v301_v48  ;;  %v379_v19 = vmul.f32 5.477226, %v228_v8  ;;  %vm245_vm14 = vweird.f32 %v760_v39 }
 0x12d   :  { %v399_v29 = vmul.f32 %v383_v14, %v688_v36  ;;  %v816_v42 = vmul.f32 0.5, %v341_v17 }
 0x12e   :  { %v192_v56 = vpop.xlane.xlu1 %191  ;;  %v303_v6 = vsub.f32 1.5, %v302_v54  ;;  %v395_v55 = vmul.f32 %v379_v19, %v686_v35 }
 0x12f   :  { %v568_v59 = vpop.eup %567  ;;  %v776_v60 = vmax.f32 %v192_v56, 1e-24  ;;  %v190_v61 = vpop.xlane.xlu0 %189 }
 0x130   :  { %v778_v62 = vpop.eup %569  ;;  %v270_v4 = vmul.f32 %v568_v59, %v758_v38  ;;  %v785_v5 = vmax.f32 %v190_v61, 1e-24  ;;  %v304_v20 = vmul.f32 %v755_v37, %v303_v6  ;;  %vm276_vm9 = vweird.f32 %v568_v59 }
 0x131   :  { %573 = vrsqrt.f32 %v776_v60  ;;  %v572_v7 = vpop.eup %571  ;;  %v240_v13 = vmul.f32 %v778_v62, %v760_v39  ;;  %vm277_vm12 = vmor %vm275_vm8, %vm276_vm9  ;;  %vm246_vm15 = vweird.f32 %v778_v62  ;;  %vm325_vm1 = vweird.f32 %v776_v60 }
 0x132   :  { %v271_v12 = vmul.f32 %v568_v59, %v270_v4  ;;  %575 = vrsqrt.f32 %v785_v5  ;;  %v230_v16 = vmul.f32 %v572_v7, %v764_v45  ;;  %v308_v46 = vsel %vm812_vm11, %v755_v37, %v304_v20  ;;  %vm888_vm9 = vmor %vm245_vm14, %vm246_vm15 }
 0x133   :  { %v241_v25 = vmul.f32 %v778_v62, %v240_v13  ;;  %vm236_vm13 = vweird.f32 %v572_v7  ;;  %v387_v63 = vmul.f32 5.477226, %v308_v46  ;;  %vm315_vm4 = vweird.f32 %v785_v5 }
 0x134   :  { %v272_v18 = vmul.f32 0.5, %v271_v12  ;;  %v231_v21 = vmul.f32 %v572_v7, %v230_v16  ;;  %vm237_vm0 = vmor %vm235_vm10, %vm236_vm13  ;;  %vm345_vm15 = vweird.f32 %v753_v30 }
 0x135   :  { %v194_v22 = vpop.xlane.xlu2 %193  ;;  %v242_v53 = vmul.f32 0.5, %v241_v25 }
 0x136   :  { %v273_v23 = vsub.f32 1.5, %v272_v18  ;;  %v798_v26 = vmax.f32 %v194_v22, 1e-24  ;;  %v178_v27 = vpop.xlane.xlu1 %177  ;;  %v232_v31 = vmul.f32 0.5, %v231_v21 }
 0x137   :  { %v800_v28 = vpop.eup %573  ;;  %v804_v32 = vmax.f32 %v178_v27, 1e-24  ;;  %v184_v33 = vpop.xlane.xlu0 %183  ;;  %v243_v12 = vsub.f32 1.5, %v242_v53 }
 0x138   :  { %v806_v34 = vpop.eup %575  ;;  %v274_v44 = vmul.f32 %v568_v59, %v273_v23  ;;  %v320_v36 = vmul.f32 %v800_v28, %v776_v60  ;;  %577 = vrsqrt.f32 %v798_v26  ;;  %v233_v24 = vsub.f32 1.5, %v232_v31 }
 0x139   :  { %v310_v48 = vmul.f32 %v806_v34, %v785_v5  ;;  %579 = vrsqrt.f32 %v804_v32  ;;  %vm316_vm2 = vweird.f32 %v806_v34  ;;  %vm326_vm3 = vweird.f32 %v800_v28 }
 0x13a   :  { %v278_v50 = vsel %vm277_vm12, %v568_v59, %v274_v44  ;;  %v321_v54 = vmul.f32 %v800_v28, %v320_v36  ;;  %v234_v61 = vmul.f32 %v572_v7, %v233_v24  ;;  %v838_v59 = vmax.f32 %v184_v33, 1e-24  ;;  %vm317_vm5 = vmor %vm315_vm4, %vm316_vm2 }
 0x13b   :  { %v384_v56 = vmul.f32 5.477226, %v278_v50  ;;  %v311_v37 = vmul.f32 %v806_v34, %v310_v48  ;;  %v244_v27 = vmul.f32 %v778_v62, %v243_v12  ;;  %vm335_vm6 = vweird.f32 %v798_v26  ;;  %vm875_vm7 = vmor %vm325_vm1, %vm326_vm3 }
 0x13c   :  { %v322_v38 = vmul.f32 0.5, %v321_v54  ;;  %v238_v35 = vsel %vm237_vm0, %v572_v7, %v234_v61  ;;  %581 = vrsqrt.f32 %v838_v59  ;;  %vm255_vm12 = vweird.f32 %v804_v32 }
 0x13d   :  { %v400_v2 = vmul.f32 %v384_v56, %v702_v47  ;;  %v312_v4 = vmul.f32 0.5, %v311_v37  ;;  %v200_v6 = vpop.xlane.xlu2 %199  ;;  %v380_v13 = vmul.f32 5.477226, %v238_v35  ;;  %v248_v53 = vsel %vm888_vm9, %v778_v62, %v244_v27 }
 0x13e   :  { %v841_v8 = vpop.eup %577  ;;  %v323_v14 = vsub.f32 1.5, %v322_v38  ;;  %v186_v45 = vpop.xlane.xlu1 %185  ;;  %v850_v7 = vmax.f32 %v200_v6, 1e-24  ;;  %vm285_vm1 = vweird.f32 %v838_v59  ;;  %vm346_vm2 = vweird.f32 %v770_v52 }
 0x13f   :  { %v500_v16 = vpack.c.bf16 %v400_v2, %v399_v29  ;;  %v313_v17 = vsub.f32 1.5, %v312_v4  ;;  %v330_v18 = vmul.f32 %v841_v8, %v798_v26  ;;  %v580_v19 = vpop.eup %579  ;;  %v396_v47 = vmul.f32 %v380_v13, %v704_v49  ;;  %v202_v25 = vpop.xlane.xlu0 %201 }
 0x140   :  { %v324_v20 = vmul.f32 %v800_v28, %v323_v14  ;;  %v250_v23 = vmul.f32 %v580_v19, %v804_v32  ;;  %v403_v49 = vmul.f32 %v387_v63, %v694_v41  ;;  %583 = vrsqrt.f32 %v850_v7 }
 0x141   :  { %528 = vst [vmem:[%s992_s3 + $0x10] sm:$0xff] %v500_v16   ;;  %v314_v21 = vmul.f32 %v806_v34, %v313_v17  ;;  %v331_v22 = vmul.f32 %v841_v8, %v330_v18  ;;  %v490_v5 = vpack.c.bf16 %v396_v47, %v395_v55  ;;  %vm336_vm8 = vweird.f32 %v841_v8 }
 0x142   :  { %v251_v33 = vmul.f32 %v580_v19, %v250_v23  ;;  %v866_v40 = vpop.eup %581  ;;  %v882_v36 = vmax.f32 %v202_v25, 1e-24  ;;  %v328_v60 = vsel %vm875_vm7, %v800_v28, %v324_v20  ;;  %vm256_vm10 = vweird.f32 %v580_v19  ;;  %vm337_vm11 = vmor %vm335_vm6, %vm336_vm8 }
 0x143   :  { %v318_v29 = vsel %vm317_vm5, %v806_v34, %v314_v21  ;;  %v332_v31 = vmul.f32 0.5, %v331_v22  ;;  %491 = vst [vmem:[%s992_s3] sm:$0xff] %v490_v5   ;;  %v880_v34 = vmax.f32 %v186_v45, 1e-24  ;;  %v280_v50 = vmul.f32 %v866_v40, %v838_v59  ;;  %vm257_vm13 = vmor %vm255_vm12, %vm256_vm10 }
 0x144   :  { %v388_v44 = vmul.f32 5.477226, %v318_v29  ;;  %v252_v48 = vmul.f32 0.5, %v251_v33  ;;  %v389_v37 = vmul.f32 5.477226, %v328_v60  ;;  %v343_v17 = vsub.f32 1.5, %v816_v42  ;;  %vm964_vm8 = vmor %vm345_vm15, %vm346_vm2 }
 0x145   :  { %v333_v24 = vsub.f32 1.5, %v332_v31  ;;  %585 = vrsqrt.f32 %v880_v34  ;;  %v281_v28 = vmul.f32 %v866_v40, %v280_v50  ;;  %v381_v4 = vmul.f32 5.477226, %v248_v53 }
 0x146   :  { %v404_v54 = vmul.f32 %v388_v44, %v714_v57  ;;  %v198_v39 = vpop.xlane.xlu1 %197  ;;  %v253_v56 = vsub.f32 1.5, %v252_v48  ;;  %587 = vrsqrt.f32 %v882_v36  ;;  %v905_v61 = vpop.eup %583  ;;  %v405_v13 = vmul.f32 %v389_v37, %v716_v58 }
 0x147   :  { %v334_v55 = vmul.f32 %v841_v8, %v333_v24  ;;  %v912_v57 = vmax.f32 %v198_v39, 1e-24  ;;  %v282_v2 = vmul.f32 0.5, %v281_v28  ;;  %v360_v35 = vmul.f32 %v905_v61, %v850_v7 }
 0x148   :  { %v510_v38 = vpack.c.bf16 %v404_v54, %v403_v49  ;;  %v254_v63 = vmul.f32 %v580_v19, %v253_v56  ;;  %v397_v20 = vmul.f32 %v381_v4, %v706_v51  ;;  %vm286_vm14 = vweird.f32 %v866_v40 }
 0x149   :  { %v338_v62 = vsel %vm337_vm11, %v841_v8, %v334_v55  ;;  %589 = vrsqrt.f32 %v912_v57  ;;  %v283_v32 = vsub.f32 1.5, %v282_v2  ;;  %v361_v12 = vmul.f32 %v905_v61, %v360_v35  ;;  %vm947_vm3 = vmor %vm285_vm1, %vm286_vm14 }
 0x14a   :  { %530 = vst [vmem:[%s992_s3 + $0x20] sm:$0xff] %v510_v38   ;;  %v390_v6 = vmul.f32 5.477226, %v338_v62  ;;  %v258_v26 = vsel %vm257_vm13, %v580_v19, %v254_v63  ;;  %vm366_vm0 = vweird.f32 %v905_v61  ;;  %v344_v5 = vmul.f32 %v770_v52, %v343_v17 }
 0x14b   :  { %v586_v8 = vpop.eup %585  ;;  %v382_v45 = vmul.f32 5.477226, %v258_v26  ;;  %v362_v18 = vmul.f32 0.5, %v361_v12  ;;  %v284_v23 = vmul.f32 %v866_v40, %v283_v32  ;;  %vm365_vm4 = vweird.f32 %v850_v7 }
 0x14c   :  { %v406_v14 = vmul.f32 %v390_v6, %v726_v3  ;;  %v588_v16 = vpop.eup %587  ;;  %v290_v47 = vmul.f32 %v586_v8, %v880_v34  ;;  %vm955_vm5 = vmor %vm365_vm4, %vm366_vm0  ;;  %vm296_vm6 = vweird.f32 %v586_v8  ;;  %vm295_vm9 = vweird.f32 %v880_v34 }
 0x14d   :  { %v398_v19 = vmul.f32 %v382_v45, %v724_v1  ;;  %v370_v22 = vmul.f32 %v588_v16, %v882_v36  ;;  %v363_v58 = vsub.f32 1.5, %v362_v18  ;;  %v288_v31 = vsel %vm947_vm3, %v866_v40, %v284_v23  ;;  %vm297_vm10 = vmor %vm295_vm9, %vm296_vm6 }
 0x14e   :  { %v515_v21 = vpack.c.bf16 %v406_v14, %v405_v13  ;;  %v291_v3 = vmul.f32 %v586_v8, %v290_v47  ;;  %vm376_vm7 = vweird.f32 %v588_v16  ;;  %v348_v48 = vsel %vm964_vm8, %v770_v52, %v344_v5 }
 0x14f   :  { %v590_v25 = vpop.eup %589  ;;  %v495_v42 = vpack.c.bf16 %v398_v19, %v397_v20  ;;  %v371_v51 = vmul.f32 %v588_v16, %v370_v22  ;;  %v364_v1 = vmul.f32 %v905_v61, %v363_v58  ;;  %v385_v50 = vmul.f32 5.477226, %v288_v31 }
 0x150   :  { %531 = vst [vmem:[%s992_s3 + $0x28] sm:$0xff] %v515_v21   ;;  %v292_v49 = vmul.f32 0.5, %v291_v3  ;;  %v350_v27 = vmul.f32 %v590_v25, %v912_v57  ;;  %vm375_vm11 = vweird.f32 %v882_v36  ;;  %vm356_vm13 = vweird.f32 %v590_v25 }
 0x151   :  { %527 = vst [vmem:[%s992_s3 + $0x8] sm:$0xff] %v495_v42   ;;  %v372_v59 = vmul.f32 0.5, %v371_v51  ;;  %v368_v46 = vsel %vm955_vm5, %v905_v61, %v364_v1  ;;  %vm377_vm12 = vmor %vm375_vm11, %vm376_vm7  ;;  %vm355_vm14 = vweird.f32 %v912_v57  ;;  %v391_v34 = vmul.f32 5.477226, %v348_v48 }
 0x152   :  { %v293_v41 = vsub.f32 1.5, %v292_v49  ;;  %v351_v44 = vmul.f32 %v590_v25, %v350_v27  ;;  %v393_v54 = vmul.f32 5.477226, %v368_v46  ;;  %v401_v37 = vmul.f32 %v385_v50, %v722_v0  ;;  %vm357_vm15 = vmor %vm355_vm14, %vm356_vm13 }
 0x153   :  { %v373_v60 = vsub.f32 1.5, %v372_v59  ;;  %v407_v4 = vmul.f32 %v391_v34, %v696_v43 }
 0x154   :  { %v294_v40 = vmul.f32 %v586_v8, %v293_v41  ;;  %v352_v24 = vmul.f32 0.5, %v351_v44  ;;  %v409_v38 = vmul.f32 %v393_v54, %v734_v9 }
 0x155   :  { %v374_v53 = vmul.f32 %v588_v16, %v373_v60 }
 0x156   :  { %v298_v39 = vsel %vm297_vm10, %v586_v8, %v294_v40  ;;  %v353_v30 = vsub.f32 1.5, %v352_v24 }
 0x157   :  { %v386_v55 = vmul.f32 5.477226, %v298_v39  ;;  %v378_v56 = vsel %vm377_vm12, %v588_v16, %v374_v53 }
 0x158   :  { %v394_v28 = vmul.f32 5.477226, %v378_v56  ;;  %v354_v61 = vmul.f32 %v590_v25, %v353_v30 }
 0x159   :  { %v402_v52 = vmul.f32 %v386_v55, %v738_v11 }
 0x15a   :  { %v410_v36 = vmul.f32 %v394_v28, %v736_v10  ;;  %v358_v62 = vsel %vm357_vm15, %v590_v25, %v354_v61 }
 0x15b   :  { %v505_v63 = vpack.c.bf16 %v402_v52, %v401_v37  ;;  %v392_v2 = vmul.f32 5.477226, %v358_v62 }
 0x15c   :  { %v525_v35 = vpack.c.bf16 %v410_v36, %v409_v38 }
 0x15d   :  { %529 = vst [vmem:[%s992_s3 + $0x18] sm:$0xff] %v505_v63   ;;  %v408_v57 = vmul.f32 %v392_v2, %v746_v15 }
 0x15e   :  { %533 = vst [vmem:[%s992_s3 + $0x38] sm:$0xff] %v525_v35  }
 0x15f   :  { %v520_v0 = vpack.c.bf16 %v408_v57, %v407_v4 }
 0x161   :  { %532 = vst [vmem:[%s992_s3 + $0x30] sm:$0xff] %v520_v0  }

// kernel: transformer_forward.10
= control target key start
LH: loop header
LB: loop body
LE: loop exit
PB: predicated region body
PF: predicated region fallthrough
CT: control target
= control target key end

     0   :  { %s852_s9 = smov 0   ;;  %s854_s10 = smov 0   ;;  %s960_s0 = inlined_call_operand.vmem [shape: f32[2,64,128], index: 0, kind: input, shape index: {}]   ;;  %s961_s1 = inlined_call_operand.vmem [shape: bf16[2,64,128], index: 1, kind: input, shape index: {}]   ;;  %s962_s2 = inlined_call_operand.vmem [shape: f32[2,64,128], index: 2, kind: output, shape index: {}]  }
   0x1   :  { %s856_s11 = smov 0  }
   0x2 LB: > { %s24_s12 = sadd.s32 1, %s830_s10  ;;  %p644_p0 = scmp.ge.s32.totalorder %s834_s11, 1  ;;  %s834_s11 = sphi %s856_s11, %s12_s11   ;;  %s830_s10 = sphi %s854_s10, %s964_s10   ;;  %s826_s9 = sphi %s852_s9, %s963_s9  }
   0x3   : > { %p26_p1 = scmp.ge.s32.totalorder %s24_s12, 2  ;;  %p136_p2 = scmp.lt.s32.totalorder %s834_s11, 3 }
   0x5   : > { %s966_s12 = smov (%p26_p1, %s24_s12), 0  ;;  %p137_p3 = pnand %p644_p0, %p136_p2 }
   0x6   : > { %p167_p4 = scmp.lt.s32.totalorder (!%p137_p3), %s826_s9, 1 }
   0x7   : > { %140 = sbr.rel (%p137_p3) target bundleno = 586 (0x24a), region = 28 }
   0xc   : > { %s968_s9 = smov (!%p167_p4, %s826_s9), 1  ;;  %vm330_vm0 = vcmask 523264  }
   0xd   : > { %s706_s13 = sshll.u32 %s968_s9, 5  ;;  %s705_s17 = sshll.u32 %s968_s9, 6 }
   0xe   : > { %s176_s16 = scalar_lea.vmem %s961_s1, %s706_s13  ;;  %s171_s20 = scalar_lea.vmem %s960_s0, %s705_s17 }
   0xf   : > { %v715_v0 = vld [vmem:[%s176_s16 + $0x18] sm:$0xff]  ;;  %v714_v1 = vld [vmem:[%s176_s16 + $0x10] sm:$0xff]  ;;  %v713_v2 = vld [vmem:[%s176_s16 + $0x8] sm:$0xff]  ;;  %s185_s23 = scalar_lea.vmem %s962_s2, %s705_s17 }
  0x10   : > { %289 = vmatpush.bf16.xpose.msra.mxu0 %v715_v0  ;;  %743 = vmatpush.bf16.xpose.msra.mxu2 %v715_v0  ;;  %v712_v3 = vld [vmem:[%s176_s16] sm:$0xff]  ;;  %v710_v5 = vld [vmem:[%s176_s16 + $0x10] sm:$0xff]  ;;  %v709_v6 = vld [vmem:[%s176_s16 + $0x8] sm:$0xff] }
  0x11   : > { %v708_v4 = vld [vmem:[%s176_s16] sm:$0xff]  ;;  %v711_v7 = vld [vmem:[%s176_s16 + $0x18] sm:$0xff]  ;;  %v911_v40 = vld [vmem:[%s171_s20 + $0x30] sm:$0xff] }
  0x12   : > { %v913_v41 = vld [vmem:[%s171_s20 + $0x38] sm:$0xff]  ;;  %v917_v43 = vld [vmem:[%s171_s20 + $0x20] sm:$0xff]  ;;  %v919_v44 = vld [vmem:[%s171_s20 + $0x28] sm:$0xff] }
  0x13   : > { %v738_v42 = vpack.c.bf16 %v913_v41, %v911_v40  ;;  %v733_v45 = vpack.c.bf16 %v919_v44, %v917_v43  ;;  %v923_v46 = vld [vmem:[%s171_s20 + $0x10] sm:$0xff]  ;;  %v925_v47 = vld [vmem:[%s171_s20 + $0x18] sm:$0xff]  ;;  %v192_v50 = vld [vmem:[%s171_s20] sm:$0xff] }
  0x14   : > { %v728_v48 = vpack.c.bf16 %v925_v47, %v923_v46  ;;  %v193_v51 = vld [vmem:[%s171_s20 + $0x8] sm:$0xff] }
  0x15   : > { %742 = vst [vmem:[#allocation2 + $0x8] sm:$0xff] %v738_v42   ;;  %v723_v52 = vpack.c.bf16 %v193_v51, %v192_v50 }
  0x16   : > { %741 = vst [vmem:[#allocation2 + $0x18] sm:$0xff] %v733_v45  }
  0x17   : > { %740 = vst [vmem:[#allocation2] sm:$0xff] %v728_v48  }
  0x18   : > { %290 = vmatpush.bf16.xpose.msra.mxu0 %v714_v1  ;;  %744 = vmatpush.bf16.xpose.msra.mxu2 %v714_v1  ;;  %724 = vst [vmem:[#allocation2 + $0x10] sm:$0xff] %v723_v52  }
  0x1c   : > { %v719_v49 = vld [vmem:[#allocation2 + $0x8] sm:$0xff] }
  0x1d   : > { %423 = vmatpush.bf16.msra.mxu1 %v719_v49  ;;  %747 = vmatpush.bf16.msra.mxu3 %v719_v49  ;;  %v718_v53 = vld [vmem:[#allocation2 + $0x18] sm:$0xff] }
  0x1e   : > { %v717_v54 = vld [vmem:[#allocation2] sm:$0xff] }
  0x1f   : > { %v716_v55 = vld [vmem:[#allocation2 + $0x10] sm:$0xff] }
  0x20   : > { %291 = vmatpush.bf16.xpose.msra.mxu0 %v713_v2  ;;  %745 = vmatpush.bf16.xpose.msra.mxu2 %v713_v2 }
  0x21   : > { %424 = vmatpush.bf16.msra.mxu1 %v718_v53  ;;  %748 = vmatpush.bf16.msra.mxu3 %v718_v53 }
  0x25   : > { %425 = vmatpush.bf16.msra.mxu1 %v717_v54  ;;  %749 = vmatpush.bf16.msra.mxu3 %v717_v54 }
  0x28   : > { %292 = vmatpush.bf16.xpose.msra.mxu0 %v712_v3  ;;  %746 = vmatpush.bf16.xpose.msra.mxu2 %v712_v3 }
  0x29   : > { %426 = vmatpush.bf16.msra.mxu1 %v716_v55  ;;  %750 = vmatpush.bf16.msra.mxu3 %v716_v55 }
  0x2f   : > { %293 = vmatmul.bf16.vlgmr.msra.gmra.mxu0 %v708_v4  ;;  %303 = vmatmul.bf16.vlgmr.msra.gmra.mxu2 %v710_v5 }
  0x3f   : > { %298 = vmatmul.bf16.gmra.mxu0 %v709_v6  ;;  %308 = vmatmul.bf16.gmra.mxu2 %v711_v7 }
  0xac   : > { %v294_v8 = vpop.f32.mrf.mxu0 }
  0xad   : > { %v314_v9 = vmul.f32 1.442695, %v294_v8 }
  0xaf   : > { %776 = vpow2.f32 %v314_v9 }
  0xb2   : > { %v304_v10 = vpop.f32.mrf.mxu2 }
  0xb3   : > { %v322_v11 = vmul.f32 1.442695, %v304_v10 }
  0xb4   : > { %v296_v12 = vpop.f32.mrf.mxu0 }
  0xb5   : > { %v876_v13 = vpop.eup %776  ;;  %778 = vpow2.f32 %v322_v11  ;;  %v316_v14 = vmul.f32 1.442695, %v296_v12 }
  0xb6   : > { %v331_v15 = vsel %vm330_vm0, %v876_v13, 0.0 }
  0xb7   : > { %780 = vpow2.f32 %v316_v14  ;;  %332 = vadd.xlane.f32.xlu2 %v331_v15 }
  0xba   : > { %v306_v16 = vpop.f32.mrf.mxu2 }
  0xbb   : > { %v880_v17 = vpop.eup %778  ;;  %v324_v18 = vmul.f32 1.442695, %v306_v16 }
  0xbc   : > { %v299_v19 = vpop.f32.mrf.mxu0  ;;  %v343_v20 = vsel %vm330_vm0, %v880_v17, 0.0 }
  0xbd   : > { %v884_v21 = vpop.eup %780  ;;  %782 = vpow2.f32 %v324_v18  ;;  %v318_v22 = vmul.f32 1.442695, %v299_v19  ;;  %344 = vadd.xlane.f32.xlu1 %v343_v20 }
  0xbe   : > { %v334_v23 = vsel %vm330_vm0, %v884_v21, 0.0 }
  0xbf   : > { %784 = vpow2.f32 %v318_v22  ;;  %335 = vadd.xlane.f32.xlu2 %v334_v23 }
  0xc2   : > { %v309_v24 = vpop.f32.mrf.mxu2 }
  0xc3   : > { %v888_v25 = vpop.eup %782  ;;  %v326_v31 = vmul.f32 1.442695, %v309_v24 }
  0xc4   : > { %v301_v26 = vpop.f32.mrf.mxu0  ;;  %v346_v27 = vsel %vm330_vm0, %v888_v25, 0.0 }
  0xc5   : > { %v892_v28 = vpop.eup %784  ;;  %v320_v29 = vmul.f32 1.442695, %v301_v26  ;;  %347 = vadd.xlane.f32.xlu1 %v346_v27 }
  0xc6   : > { %v337_v30 = vsel %vm330_vm0, %v892_v28, 0.0 }
  0xc7   : > { %786 = vpow2.f32 %v320_v29  ;;  %338 = vadd.xlane.f32.xlu0 %v337_v30  ;;  %v836_v29 = vmov 64.0  }
  0xc8   : > { %788 = vpow2.f32 %v326_v31 }
  0xca   : > { %v311_v32 = vpop.f32.mrf.mxu2 }
  0xcb   : > { %v328_v33 = vmul.f32 1.442695, %v311_v32 }
  0xcd   : > { %v787_v34 = vpop.eup %786  ;;  %790 = vpow2.f32 %v328_v33 }
  0xce   : > { %v340_v35 = vsel %vm330_vm0, %v787_v34, 0.0  ;;  %v897_v36 = vpop.eup %788 }
  0xcf   : > { %341 = vadd.xlane.f32.xlu0 %v340_v35  ;;  %v349_v39 = vsel %vm330_vm0, %v897_v36, 0.0 }
  0xd3   : > { %v899_v37 = vpop.eup %790 }
  0xd4   : > { %v352_v38 = vsel %vm330_vm0, %v899_v37, 0.0 }
  0xd5   : > { %353 = vadd.xlane.f32.xlu1 %v352_v38 }
  0xd7   : > { %350 = vadd.xlane.f32.xlu0 %v349_v39 }
 0x12a   : > { %v333_v56 = vpop.xlane.xlu2 %332 }
 0x12b   : > { %792 = vrcp.f32 %v333_v56 }
 0x130   : > { %v345_v0 = vpop.xlane.xlu1 %344 }
 0x131   : > { %v793_v58 = vpop.eup %792 }
 0x132   : > { %v336_v57 = vpop.xlane.xlu2 %335  ;;  %v363_v61 = vmul.f32 %v793_v58, %v876_v13 }
 0x133   : > { %794 = vrcp.f32 %v336_v57 }
 0x138   : > { %v348_v6 = vpop.xlane.xlu1 %347 }
 0x139   : > { %v795_v59 = vpop.eup %794 }
 0x13a   : > { %v339_v60 = vpop.xlane.xlu0 %338  ;;  %v364_v62 = vmul.f32 %v795_v59, %v884_v21 }
 0x13b   : > { %796 = vrcp.f32 %v339_v60 }
 0x13c   : > { %v371_v63 = vpack.c.bf16 %v364_v62, %v363_v61 }
 0x13e   : > { %699 = vmatmul.msk.bf16.vlgmr.msra.gmra.mxu1 %vm330_vm0, %v371_v63 }
 0x141   : > { %v797_v2 = vpop.eup %796 }
 0x142   : > { %v342_v1 = vpop.xlane.xlu0 %341  ;;  %v365_v4 = vmul.f32 %v797_v2, %v892_v28 }
 0x143   : > { %798 = vrcp.f32 %v342_v1 }
 0x144   : > { %800 = vrcp.f32 %v348_v6 }
 0x145   : > { %802 = vrcp.f32 %v345_v0 }
 0x148   : > { %v354_v14 = vpop.xlane.xlu1 %353 }
 0x149   : > { %v799_v3 = vpop.eup %798 }
 0x14a   : > { %v366_v5 = vmul.f32 %v799_v3, %v787_v34  ;;  %v801_v8 = vpop.eup %800  ;;  %v351_v12 = vpop.xlane.xlu0 %350 }
 0x14b   : > { %v803_v9 = vpop.eup %802  ;;  %v368_v10 = vmul.f32 %v801_v8, %v888_v25  ;;  %804 = vrcp.f32 %v351_v12 }
 0x14c   : > { %v372_v7 = vpack.c.bf16 %v366_v5, %v365_v4  ;;  %v367_v11 = vmul.f32 %v803_v9, %v880_v17  ;;  %806 = vrcp.f32 %v354_v14 }
 0x14d   : > { %808 = vrcp.f32 %v836_v29 }
 0x14e   : > { %700 = vmatmul.msk.bf16.vlgmr.msra.gmra.mxu3 %vm330_vm0, %v372_v7  ;;  %v373_v13 = vpack.c.bf16 %v368_v10, %v367_v11 }
 0x151   : > { %v805_v15 = vpop.eup %804 }
 0x152   : > { %v807_v16 = vpop.eup %806  ;;  %v369_v18 = vmul.f32 %v805_v15, %v897_v36 }
 0x153   : > { %v370_v19 = vmul.f32 %v807_v16, %v899_v37  ;;  %v809_v35 = vpop.eup %808 }
 0x154   : > { %v479_v42 = vmul.f32 64.0, %v809_v35  ;;  %vm483_vm1 = vweird.f32 %v809_v35 }
 0x155   : > { %v374_v20 = vpack.c.bf16 %v370_v19, %v369_v18 }
 0x15e   : > { %701 = vmatmul.msk.bf16.gmra.mxu3 %vm330_vm0, %v373_v13 }
 0x16e   : > { %702 = vmatmul.msk.bf16.gmra.mxu3 %vm330_vm0, %v374_v20 }
 0x1bb   : > { %v428_v23 = vpop.f32.mrf.mxu1 }
 0x1bc   : > { %v457_v27 = vadd.f32 %v428_v23, %v192_v50  ;;  %v480_v50 = vsub.f32 1.0, %v479_v42 }
 0x1be   : > { %v481_v52 = vmul.f32 %v809_v35, %v480_v50 }
 0x1c3   : > { %v430_v24 = vpop.f32.mrf.mxu1 }
 0x1c4   : > { %v458_v26 = vadd.f32 %v430_v24, %v193_v51 }
 0x1c6   : > { %v465_v30 = vadd.f32 %v458_v26, %v457_v27 }
 0x1d1   : > { %v433_v21 = vpop.f32.mrf.mxu3 }
 0x1d2   : > { %v459_v28 = vadd.f32 %v433_v21, %v923_v46 }
 0x1d4   : > { %v466_v33 = vadd.f32 %v465_v30, %v459_v28 }
 0x1d9   : > { %v435_v22 = vpop.f32.mrf.mxu3 }
 0x1da   : > { %v460_v31 = vadd.f32 %v435_v22, %v925_v47 }
 0x1dc   : > { %v467_v36 = vadd.f32 %v466_v33, %v460_v31 }
 0x1e1   : > { %v438_v17 = vpop.f32.mrf.mxu3 }
 0x1e2   : > { %v461_v34 = vadd.f32 %v438_v17, %v917_v43  ;;  %v482_v43 = vadd.f32 %v809_v35, %v481_v52 }
 0x1e4   : > { %v468_v38 = vadd.f32 %v467_v36, %v461_v34 }
 0x1e9   : > { %v440_v25 = vpop.f32.mrf.mxu3 }
 0x1ea   : > { %v462_v37 = vadd.f32 %v440_v25, %v919_v44  ;;  %v484_v44 = vsel %vm483_vm1, %v809_v35, %v482_v43 }
 0x1ec   : > { %v469_v45 = vadd.f32 %v468_v38, %v462_v37 }
 0x1f1   : > { %v443_v32 = vpop.f32.mrf.mxu3 }
 0x1f2   : > { %v463_v39 = vadd.f32 %v443_v32, %v911_v40 }
 0x1f4   : > { %v470_v46 = vadd.f32 %v469_v45, %v463_v39 }
 0x1f9   : > { %v445_v48 = vpop.f32.mrf.mxu3 }
 0x1fa   : > { %v464_v49 = vadd.f32 %v445_v48, %v913_v41 }
 0x1fc   : > { %v471_v51 = vadd.f32 %v470_v46, %v464_v49 }
 0x1fe   : > { %v472_v47 = vrot.slane %v471_v51, 4 }
 0x200   : > { %v473_v53 = vadd.f32 %v472_v47, %v471_v51 }
 0x202   : > { %v474_v54 = vrot.slane %v473_v53, 2 }
 0x204   : > { %v475_v55 = vadd.f32 %v474_v54, %v473_v53 }
 0x206   : > { %v476_v56 = vrot.slane %v475_v55, 1 }
 0x208   : > { %v477_v57 = vadd.f32 %v476_v56, %v475_v55 }
 0x20a   : > { %v485_v58 = vmul.f32 %v484_v44, %v477_v57 }
 0x20c   : > { %v486_v40 = vsub.f32 %v457_v27, %v485_v58  ;;  %v487_v59 = vsub.f32 %v458_v26, %v485_v58  ;;  %v488_v60 = vsub.f32 %v459_v28, %v485_v58  ;;  %v489_v61 = vsub.f32 %v460_v31, %v485_v58 }
 0x20d   : > { %v490_v41 = vsub.f32 %v461_v34, %v485_v58  ;;  %v491_v2 = vsub.f32 %v462_v37, %v485_v58  ;;  %v492_v5 = vsub.f32 %v463_v39, %v485_v58  ;;  %v493_v8 = vsub.f32 %v464_v49, %v485_v58 }
 0x20e   : > { %v494_v62 = vmul.f32 %v486_v40, %v486_v40  ;;  %v495_v63 = vmul.f32 %v487_v59, %v487_v59  ;;  %v496_v0 = vmul.f32 %v488_v60, %v488_v60  ;;  %v497_v3 = vmul.f32 %v489_v61, %v489_v61 }
 0x20f   : > { %v498_v6 = vmul.f32 %v490_v41, %v490_v41  ;;  %v499_v9 = vmul.f32 %v491_v2, %v491_v2  ;;  %v500_v11 = vmul.f32 %v492_v5, %v492_v5  ;;  %v501_v13 = vmul.f32 %v493_v8, %v493_v8 }
 0x210   : > { %v502_v1 = vadd.f32 %v495_v63, %v494_v62 }
 0x212   : > { %v503_v4 = vadd.f32 %v502_v1, %v496_v0 }
 0x214   : > { %v504_v7 = vadd.f32 %v503_v4, %v497_v3 }
 0x216   : > { %v505_v10 = vadd.f32 %v504_v7, %v498_v6 }
 0x218   : > { %v506_v12 = vadd.f32 %v505_v10, %v499_v9 }
 0x21a   : > { %v507_v14 = vadd.f32 %v506_v12, %v500_v11 }
 0x21c   : > { %v508_v15 = vadd.f32 %v507_v14, %v501_v13 }
 0x21e   : > { %v509_v16 = vrot.slane %v508_v15, 4 }
 0x220   : > { %v510_v18 = vadd.f32 %v509_v16, %v508_v15 }
 0x222   : > { %v511_v19 = vrot.slane %v510_v18, 2 }
 0x224   : > { %v512_v20 = vadd.f32 %v511_v19, %v510_v18 }
 0x226   : > { %v513_v21 = vrot.slane %v512_v20, 1 }
 0x228   : > { %v514_v22 = vadd.f32 %v513_v21, %v512_v20 }
 0x22a   : > { %v515_v23 = vmul.f32 %v514_v22, %v484_v44 }
 0x22c   : > { %v516_v17 = vadd.f32 1e-05, %v515_v23 }
 0x22e   : > { %810 = vrsqrt.f32 %v516_v17  ;;  %vm523_vm3 = vweird.f32 %v516_v17 }
 0x234   : > { %v811_v24 = vpop.eup %810 }
 0x235   : > { %v518_v25 = vmul.f32 %v811_v24, %v516_v17  ;;  %vm524_vm2 = vweird.f32 %v811_v24 }
 0x236   : > { %vm525_vm4 = vmor %vm523_vm3, %vm524_vm2 }
 0x237   : > { %v519_v26 = vmul.f32 %v811_v24, %v518_v25 }
 0x239   : > { %v520_v27 = vmul.f32 0.5, %v519_v26 }
 0x23b   : > { %v521_v28 = vsub.f32 1.5, %v520_v27 }
 0x23d   : > { %v522_v29 = vmul.f32 %v811_v24, %v521_v28 }
 0x23f   : > { %v526_v30 = vsel %vm525_vm4, %v811_v24, %v522_v29 }
 0x240   : > { %v527_v31 = vmul.f32 %v526_v30, %v486_v40  ;;  %v528_v32 = vmul.f32 %v526_v30, %v487_v59  ;;  %v529_v33 = vmul.f32 %v526_v30, %v488_v60  ;;  %v530_v34 = vmul.f32 %v526_v30, %v489_v61 }
 0x241   : > { %v531_v35 = vmul.f32 %v526_v30, %v490_v41  ;;  %v532_v36 = vmul.f32 %v526_v30, %v491_v2  ;;  %v533_v37 = vmul.f32 %v526_v30, %v492_v5  ;;  %v534_v38 = vmul.f32 %v526_v30, %v493_v8 }
 0x242   : > { %535 = vst [vmem:[%s185_s23] sm:$0xff] %v527_v31 }
 0x243   : > { %536 = vst [vmem:[%s185_s23 + $0x8] sm:$0xff] %v528_v32 }
 0x244   : > { %537 = vst [vmem:[%s185_s23 + $0x10] sm:$0xff] %v529_v33 }
 0x245   : > { %538 = vst [vmem:[%s185_s23 + $0x18] sm:$0xff] %v530_v34 }
 0x246   : > { %539 = vst [vmem:[%s185_s23 + $0x20] sm:$0xff] %v531_v35 }
 0x247   : > { %540 = vst [vmem:[%s185_s23 + $0x28] sm:$0xff] %v532_v36 }
 0x248   : > { %541 = vst [vmem:[%s185_s23 + $0x30] sm:$0xff] %v533_v37 }
 0x249   : > { %542 = vst [vmem:[%s185_s23 + $0x38] sm:$0xff] %v534_v38 }
 0x24a PF: > { %s12_s11 = sadd.s32 1, %s834_s11   ;;  %s963_s9 = smov %s830_s10 }
 0x24b   : > { %p9_p5 = scmp.ge.s32.totalorder %s12_s11, 4   ;;  %s964_s10 = smov %s966_s12 }
 0x24d   :  { %11 = sbr.rel (!%p9_p5) target bundleno = 2 (0x2), region = 67 }

// kernel: transformer_forward.8
= control target key start
LH: loop header
LB: loop body
LE: loop exit
PB: predicated region body
PF: predicated region fallthrough
CT: control target
= control target key end

     0   :  { %s1251_s9 = smov 0   ;;  %s1253_s10 = smov 0   ;;  %s1558_s0 = inlined_call_operand.vmem [shape: f32[2,128,128], index: 0, kind: input, shape index: {}]   ;;  %s1559_s1 = inlined_call_operand.vmem [shape: bf16[2,128,128], index: 1, kind: input, shape index: {}]   ;;  %s1560_s2 = inlined_call_operand.vmem [shape: f32[2,128,128], index: 2, kind: output, shape index: {}]  }
   0x1   :  { %s1255_s11 = smov 0  }
   0x2 LB: > { %s24_s12 = sadd.s32 1, %s1229_s10  ;;  %p921_p0 = scmp.ge.s32.totalorder %s1233_s11, 1  ;;  %s1233_s11 = sphi %s1255_s11, %s12_s11   ;;  %s1229_s10 = sphi %s1253_s10, %s1562_s10   ;;  %s1225_s9 = sphi %s1251_s9, %s1561_s9  }
   0x3   : > { %p26_p1 = scmp.ge.s32.totalorder %s24_s12, 2  ;;  %p136_p2 = scmp.lt.s32.totalorder %s1233_s11, 3 }
   0x5   : > { %s1564_s12 = smov (%p26_p1, %s24_s12), 0  ;;  %p137_p3 = pnand %p921_p0, %p136_p2 }
   0x6   : > { %p167_p4 = scmp.lt.s32.totalorder (!%p137_p3), %s1225_s9, 1 }
   0x7   : > { %140 = sbr.rel (%p137_p3) target bundleno = 642 (0x282), region = 28 }
   0xc   : > { %s1566_s9 = smov (!%p167_p4, %s1225_s9), 1 }
   0xd   : > { %s1027_s13 = sshll.u32 %s1566_s9, 6  ;;  %s1026_s17 = sshll.u32 %s1566_s9, 7 }
   0xe   : > { %s1275_s16 = scalar_lea.vmem %s1559_s1, %s1027_s13  ;;  %s1320_s20 = scalar_lea.vmem %s1558_s0, %s1026_s17 }
   0xf   : > { %v1044_v0 = vld [vmem:[%s1275_s16 + $0x38] sm:$0xff]  ;;  %v1043_v1 = vld [vmem:[%s1275_s16 + $0x30] sm:$0xff]  ;;  %v1042_v2 = vld [vmem:[%s1275_s16 + $0x28] sm:$0xff]  ;;  %s1515_s23 = scalar_lea.vmem %s1560_s2, %s1026_s17 }
  0x10   : > { %372 = vmatpush.bf16.xpose.msra.mxu0 %v1044_v0  ;;  %1100 = vmatpush.bf16.xpose.msra.mxu2 %v1044_v0  ;;  %v1041_v3 = vld [vmem:[%s1275_s16 + $0x20] sm:$0xff]  ;;  %v1040_v4 = vld [vmem:[%s1275_s16 + $0x18] sm:$0xff]  ;;  %v1039_v5 = vld [vmem:[%s1275_s16 + $0x10] sm:$0xff] }
  0x11   : > { %v1038_v6 = vld [vmem:[%s1275_s16 + $0x8] sm:$0xff]  ;;  %v1037_v7 = vld [vmem:[%s1275_s16] sm:$0xff]  ;;  %v1032_v9 = vld [vmem:[%s1275_s16 + $0x18] sm:$0xff] }
  0x12   : > { %v1029_v8 = vld [vmem:[%s1275_s16] sm:$0xff]  ;;  %v1030_v10 = vld [vmem:[%s1275_s16 + $0x8] sm:$0xff]  ;;  %v1031_v12 = vld [vmem:[%s1275_s16 + $0x10] sm:$0xff] }
  0x13   : > { %v1033_v11 = vld [vmem:[%s1275_s16 + $0x20] sm:$0xff]  ;;  %v1034_v13 = vld [vmem:[%s1275_s16 + $0x28] sm:$0xff]  ;;  %v1035_v14 = vld [vmem:[%s1275_s16 + $0x30] sm:$0xff] }
  0x14   : > { %v1036_v15 = vld [vmem:[%s1275_s16 + $0x38] sm:$0xff]  ;;  %v1329_v50 = vld [vmem:[%s1320_s20 + $0x70] sm:$0xff]  ;;  %v1335_v52 = vld [vmem:[%s1320_s20 + $0x60] sm:$0xff] }
  0x15   : > { %v1332_v51 = vld [vmem:[%s1320_s20 + $0x78] sm:$0xff]  ;;  %v1342_v55 = vld [vmem:[%s1320_s20 + $0x68] sm:$0xff]  ;;  %v1345_v56 = vld [vmem:[%s1320_s20 + $0x50] sm:$0xff] }
  0x16   : > { %v1091_v54 = vpack.c.bf16 %v1332_v51, %v1329_v50  ;;  %v1348_v57 = vld [vmem:[%s1320_s20 + $0x58] sm:$0xff]  ;;  %v1086_v58 = vpack.c.bf16 %v1342_v55, %v1335_v52 }
  0x17   : > { %v1081_v59 = vpack.c.bf16 %v1348_v57, %v1345_v56 }
  0x18   : > { %373 = vmatpush.bf16.xpose.msra.mxu0 %v1043_v1  ;;  %1101 = vmatpush.bf16.xpose.msra.mxu2 %v1043_v1  ;;  %1099 = vst [vmem:[#allocation2 + $0x38] sm:$0xff] %v1091_v54  }
  0x19   : > { %1098 = vst [vmem:[#allocation2 + $0x28] sm:$0xff] %v1086_v58  }
  0x1a   : > { %1097 = vst [vmem:[#allocation2 + $0x20] sm:$0xff] %v1081_v59  }
  0x1f   : > { %v1052_v1 = vld [vmem:[#allocation2 + $0x38] sm:$0xff] }
  0x20   : > { %374 = vmatpush.bf16.xpose.msra.mxu0 %v1042_v2  ;;  %1102 = vmatpush.bf16.xpose.msra.mxu2 %v1042_v2  ;;  %v1051_v2 = vld [vmem:[#allocation2 + $0x28] sm:$0xff] }
  0x21   : > { %589 = vmatpush.bf16.msra.mxu1 %v1052_v1  ;;  %1108 = vmatpush.bf16.msra.mxu3 %v1052_v1 }
  0x25   : > { %590 = vmatpush.bf16.msra.mxu1 %v1051_v2  ;;  %1109 = vmatpush.bf16.msra.mxu3 %v1051_v2 }
  0x28   : > { %375 = vmatpush.bf16.xpose.msra.mxu0 %v1041_v3  ;;  %1103 = vmatpush.bf16.xpose.msra.mxu2 %v1041_v3 }
  0x30   : > { %376 = vmatpush.bf16.xpose.msra.mxu0 %v1040_v4  ;;  %1104 = vmatpush.bf16.xpose.msra.mxu2 %v1040_v4 }
  0x38   : > { %377 = vmatpush.bf16.xpose.msra.mxu0 %v1039_v5  ;;  %1105 = vmatpush.bf16.xpose.msra.mxu2 %v1039_v5 }
  0x40   : > { %378 = vmatpush.bf16.xpose.msra.mxu0 %v1038_v6  ;;  %1106 = vmatpush.bf16.xpose.msra.mxu2 %v1038_v6 }
  0x48   : > { %379 = vmatpush.bf16.xpose.msra.mxu0 %v1037_v7  ;;  %1107 = vmatpush.bf16.xpose.msra.mxu2 %v1037_v7  ;;  %v1050_v7 = vld [vmem:[#allocation2 + $0x20] sm:$0xff] }
  0x49   : > { %591 = vmatpush.bf16.msra.mxu1 %v1050_v7  ;;  %1110 = vmatpush.bf16.msra.mxu3 %v1050_v7 }
  0x4f   : > { %380 = vmatmul.bf16.vlgmr.msra.gmra.mxu0 %v1029_v8  ;;  %395 = vmatmul.bf16.vlgmr.msra.gmra.mxu2 %v1032_v9 }
  0x5f   : > { %385 = vmatmul.bf16.gmra.mxu0 %v1030_v10  ;;  %400 = vmatmul.bf16.gmra.mxu2 %v1033_v11  ;;  %v1371_v11 = vld [vmem:[%s1320_s20 + $0x40] sm:$0xff] }
  0x6f   : > { %390 = vmatmul.bf16.gmra.mxu0 %v1031_v12  ;;  %405 = vmatmul.bf16.gmra.mxu2 %v1034_v13  ;;  %v1374_v12 = vld [vmem:[%s1320_s20 + $0x48] sm:$0xff] }
  0x70   : > { %v1076_v13 = vpack.c.bf16 %v1374_v12, %v1371_v11 }
  0x72   : > { %1096 = vst [vmem:[#allocation2 + $0x8] sm:$0xff] %v1076_v13  }
  0x7f   : > { %410 = vmatmul.bf16.gmra.mxu2 %v1035_v14  ;;  %v1379_v14 = vld [vmem:[%s1320_s20 + $0x30] sm:$0xff] }
  0x8f   : > { %415 = vmatmul.bf16.gmra.mxu2 %v1036_v15  ;;  %v1382_v15 = vld [vmem:[%s1320_s20 + $0x38] sm:$0xff] }
  0xcc   : > { %v381_v16 = vpop.f32.mrf.mxu0 }
  0xcd   : > { %v421_v17 = vmul.f32 1.442695, %v381_v16 }
  0xcf   : > { %1141 = vpow2.f32 %v421_v17  ;;  %v1071_v17 = vpack.c.bf16 %v1382_v15, %v1379_v14 }
  0xd1   : > { %1095 = vst [vmem:[#allocation2 + $0x10] sm:$0xff] %v1071_v17  }
  0xd2   : > { %v396_v18 = vpop.f32.mrf.mxu2 }
  0xd3   : > { %v433_v42 = vmul.f32 1.442695, %v396_v18  ;;  %v1390_v18 = vld [vmem:[%s1320_s20 + $0x20] sm:$0xff] }
  0xd4   : > { %v383_v19 = vpop.f32.mrf.mxu0 }
  0xd5   : > { %v1293_v20 = vpop.eup %1141  ;;  %v423_v21 = vmul.f32 1.442695, %v383_v19  ;;  %v1393_v19 = vld [vmem:[%s1320_s20 + $0x28] sm:$0xff] }
  0xd6   : > { %453 = vadd.xlane.f32.xlu0 %v1293_v20 }
  0xd7   : > { %1143 = vpow2.f32 %v423_v21  ;;  %v1066_v21 = vpack.c.bf16 %v1393_v19, %v1390_v18 }
  0xd9   : > { %1094 = vst [vmem:[#allocation2 + $0x18] sm:$0xff] %v1066_v21  }
  0xda   : > { %v398_v22 = vpop.f32.mrf.mxu2 }
  0xdb   : > { %v435_v39 = vmul.f32 1.442695, %v398_v22  ;;  %v1049_v22 = vld [vmem:[#allocation2 + $0x8] sm:$0xff] }
  0xdc   : > { %v386_v23 = vpop.f32.mrf.mxu0  ;;  %592 = vmatpush.bf16.msra.mxu1 %v1049_v22  ;;  %1111 = vmatpush.bf16.msra.mxu3 %v1049_v22 }
  0xdd   : > { %v1296_v24 = vpop.eup %1143  ;;  %v425_v25 = vmul.f32 1.442695, %v386_v23  ;;  %v1398_v23 = vld [vmem:[%s1320_s20 + $0x10] sm:$0xff] }
  0xde   : > { %455 = vadd.xlane.f32.xlu0 %v1296_v24 }
  0xdf   : > { %1145 = vpow2.f32 %v425_v25  ;;  %v1401_v25 = vld [vmem:[%s1320_s20 + $0x18] sm:$0xff] }
  0xe2   : > { %v401_v26 = vpop.f32.mrf.mxu2 }
  0xe3   : > { %v437_v45 = vmul.f32 1.442695, %v401_v26  ;;  %v1061_v26 = vpack.c.bf16 %v1401_v25, %v1398_v23 }
  0xe4   : > { %v388_v27 = vpop.f32.mrf.mxu0 }
  0xe5   : > { %v1299_v28 = vpop.eup %1145  ;;  %v427_v29 = vmul.f32 1.442695, %v388_v27  ;;  %v1048_v27 = vld [vmem:[#allocation2 + $0x10] sm:$0xff]  ;;  %1093 = vst [vmem:[#allocation2] sm:$0xff] %v1061_v26  }
  0xe6   : > { %457 = vadd.xlane.f32.xlu1 %v1299_v28  ;;  %593 = vmatpush.bf16.msra.mxu1 %v1048_v27 }
  0xe7   : > { %1147 = vpow2.f32 %v427_v29  ;;  %v1406_v29 = vld [vmem:[%s1320_s20] sm:$0xff]  ;;  %1112 = vmatpush.bf16.msra.mxu3 %v1048_v27 }
  0xea   : > { %v403_v30 = vpop.f32.mrf.mxu2 }
  0xeb   : > { %v439_v60 = vmul.f32 1.442695, %v403_v30  ;;  %v1409_v30 = vld [vmem:[%s1320_s20 + $0x8] sm:$0xff] }
  0xec   : > { %v391_v31 = vpop.f32.mrf.mxu0 }
  0xed   : > { %v1302_v32 = vpop.eup %1147  ;;  %v429_v33 = vmul.f32 1.442695, %v391_v31  ;;  %v1056_v31 = vpack.c.bf16 %v1409_v30, %v1406_v29 }
  0xee   : > { %459 = vadd.xlane.f32.xlu1 %v1302_v32 }
  0xef   : > { %1149 = vpow2.f32 %v429_v33  ;;  %v1047_v33 = vld [vmem:[#allocation2 + $0x18] sm:$0xff]  ;;  %1057 = vst [vmem:[#allocation2 + $0x30] sm:$0xff] %v1056_v31  }
  0xf0   : > { %594 = vmatpush.bf16.msra.mxu1 %v1047_v33  ;;  %1113 = vmatpush.bf16.msra.mxu3 %v1047_v33 }
  0xf2   : > { %v406_v34 = vpop.f32.mrf.mxu2 }
  0xf3   : > { %v441_v35 = vmul.f32 1.442695, %v406_v34  ;;  %v1046_v34 = vld [vmem:[#allocation2] sm:$0xff] }
  0xf4   : > { %v393_v36 = vpop.f32.mrf.mxu0  ;;  %595 = vmatpush.bf16.msra.mxu1 %v1046_v34  ;;  %1114 = vmatpush.bf16.msra.mxu3 %v1046_v34 }
  0xf5   : > { %v1305_v37 = vpop.eup %1149  ;;  %1151 = vpow2.f32 %v441_v35  ;;  %v431_v38 = vmul.f32 1.442695, %v393_v36 }
  0xf6   : > { %461 = vadd.xlane.f32.xlu2 %v1305_v37  ;;  %v1045_v35 = vld [vmem:[#allocation2 + $0x30] sm:$0xff] }
  0xf7   : > { %1153 = vpow2.f32 %v431_v38 }
  0xf8   : > { %1155 = vpow2.f32 %v435_v39  ;;  %596 = vmatpush.bf16.msra.mxu1 %v1045_v35  ;;  %1115 = vmatpush.bf16.msra.mxu3 %v1045_v35 }
  0xfa   : > { %v408_v40 = vpop.f32.mrf.mxu2 }
  0xfb   : > { %v1308_v41 = vpop.eup %1151  ;;  %v443_v43 = vmul.f32 1.442695, %v408_v40 }
  0xfc   : > { %473 = vadd.xlane.f32.xlu0 %v1308_v41 }
  0xfd   : > { %v1311_v44 = vpop.eup %1153  ;;  %1157 = vpow2.f32 %v443_v43 }
  0xfe   : > { %463 = vadd.xlane.f32.xlu2 %v1311_v44  ;;  %1159 = vpow2.f32 %v433_v42  ;;  %v1322_v46 = vpop.eup %1155 }
  0xff   : > { %1161 = vpow2.f32 %v437_v45 }
 0x102   : > { %v411_v47 = vpop.f32.mrf.mxu2 }
 0x103   : > { %v1324_v48 = vpop.eup %1157  ;;  %v445_v49 = vmul.f32 1.442695, %v411_v47 }
 0x104   : > { %467 = vadd.xlane.f32.xlu0 %v1322_v46  ;;  %475 = vadd.xlane.f32.xlu1 %v1324_v48  ;;  %v1337_v53 = vpop.eup %1159 }
 0x105   : > { %1163 = vpow2.f32 %v445_v49  ;;  %v1355_v61 = vpop.eup %1161 }
 0x106   : > { %465 = vadd.xlane.f32.xlu2 %v1337_v53  ;;  %1165 = vpow2.f32 %v439_v60 }
 0x10a   : > { %v413_v62 = vpop.f32.mrf.mxu2 }
 0x10b   : > { %v1357_v63 = vpop.eup %1163  ;;  %v447_v0 = vmul.f32 1.442695, %v413_v62 }
 0x10c   : > { %469 = vadd.xlane.f32.xlu0 %v1355_v61  ;;  %477 = vadd.xlane.f32.xlu1 %v1357_v63  ;;  %v1361_v3 = vpop.eup %1165 }
 0x10d   : > { %1167 = vpow2.f32 %v447_v0 }
 0x112   : > { %v416_v4 = vpop.f32.mrf.mxu2 }
 0x113   : > { %v1363_v5 = vpop.eup %1167  ;;  %v449_v6 = vmul.f32 1.442695, %v416_v4 }
 0x114   : > { %471 = vadd.xlane.f32.xlu1 %v1361_v3  ;;  %479 = vadd.xlane.f32.xlu2 %v1363_v5 }
 0x115   : > { %1169 = vpow2.f32 %v449_v6 }
 0x11a   : > { %v418_v8 = vpop.f32.mrf.mxu2 }
 0x11b   : > { %v1367_v9 = vpop.eup %1169  ;;  %v451_v10 = vmul.f32 1.442695, %v418_v8 }
 0x11c   : > { %481 = vadd.xlane.f32.xlu2 %v1367_v9 }
 0x11d   : > { %1171 = vpow2.f32 %v451_v10 }
 0x123   : > { %v1384_v16 = vpop.eup %1171 }
 0x124   : > { %483 = vadd.xlane.f32.xlu0 %v1384_v16 }
 0x149   : > { %v454_v36 = vpop.xlane.xlu0 %453 }
 0x14a   : > { %1173 = vrcp.f32 %v454_v36 }
 0x150   : > { %v1174_v39 = vpop.eup %1173 }
 0x151   : > { %v456_v38 = vpop.xlane.xlu0 %455  ;;  %v501_v43 = vmul.f32 %v1174_v39, %v1293_v20 }
 0x152   : > { %1175 = vrcp.f32 %v456_v38 }
 0x158   : > { %v1176_v40 = vpop.eup %1175 }
 0x159   : > { %v458_v42 = vpop.xlane.xlu1 %457  ;;  %v502_v45 = vmul.f32 %v1176_v40, %v1296_v24 }
 0x15a   : > { %1177 = vrcp.f32 %v458_v42 }
 0x15b   : > { %v517_v47 = vpack.c.bf16 %v502_v45, %v501_v43 }
 0x15d   : > { %597 = vmatmul.bf16.vlgmr.msra.gmra.mxu1 %v517_v47 }
 0x160   : > { %v1178_v54 = vpop.eup %1177 }
 0x161   : > { %v460_v49 = vpop.xlane.xlu1 %459  ;;  %v503_v60 = vmul.f32 %v1178_v54, %v1299_v28 }
 0x162   : > { %1179 = vrcp.f32 %v460_v49 }
 0x168   : > { %v1180_v58 = vpop.eup %1179 }
 0x169   : > { %v462_v59 = vpop.xlane.xlu2 %461  ;;  %v504_v62 = vmul.f32 %v1180_v58, %v1302_v32 }
 0x16a   : > { %1181 = vrcp.f32 %v462_v59 }
 0x16b   : > { %v518_v0 = vpack.c.bf16 %v504_v62, %v503_v60 }
 0x16d   : > { %602 = vmatmul.bf16.gmra.mxu1 %v518_v0 }
 0x16f   : > { %v474_v20 = vpop.xlane.xlu0 %473 }
 0x170   : > { %v1182_v2 = vpop.eup %1181 }
 0x171   : > { %v464_v1 = vpop.xlane.xlu2 %463  ;;  %v505_v6 = vmul.f32 %v1182_v2, %v1305_v37 }
 0x172   : > { %1183 = vrcp.f32 %v464_v1 }
 0x173   : > { %1185 = vrcp.f32 %v474_v20 }
 0x177   : > { %v476_v24 = vpop.xlane.xlu1 %475  ;;  %v468_v13 = vpop.xlane.xlu0 %467 }
 0x178   : > { %v1184_v4 = vpop.eup %1183  ;;  %1187 = vrcp.f32 %v476_v24 }
 0x179   : > { %v506_v7 = vmul.f32 %v1184_v4, %v1311_v44  ;;  %v466_v8 = vpop.xlane.xlu2 %465  ;;  %v1186_v28 = vpop.eup %1185 }
 0x17a   : > { %1189 = vrcp.f32 %v466_v8  ;;  %v511_v17 = vmul.f32 %v1186_v28, %v1308_v41 }
 0x17b   : > { %v519_v10 = vpack.c.bf16 %v506_v7, %v505_v6  ;;  %1191 = vrcp.f32 %v468_v13  ;;  %v1235_v6 = vmov 64.0  }
 0x17d   : > { %607 = vmatmul.bf16.gmra.mxu1 %v519_v10 }
 0x17e   : > { %v1188_v32 = vpop.eup %1187 }
 0x17f   : > { %v512_v21 = vmul.f32 %v1188_v32, %v1324_v48  ;;  %v478_v22 = vpop.xlane.xlu1 %477  ;;  %v470_v38 = vpop.xlane.xlu0 %469 }
 0x180   : > { %v1190_v27 = vpop.eup %1189  ;;  %1193 = vrcp.f32 %v478_v22 }
 0x181   : > { %v522_v26 = vpack.c.bf16 %v512_v21, %v511_v17  ;;  %v1192_v31 = vpop.eup %1191  ;;  %v507_v44 = vmul.f32 %v1190_v27, %v1337_v53 }
 0x182   : > { %v508_v33 = vmul.f32 %v1192_v31, %v1322_v46 }
 0x183   : > { %622 = vmatmul.bf16.vlgmr.msra.gmra.mxu3 %v522_v26 }
 0x184   : > { %v520_v35 = vpack.c.bf16 %v508_v33, %v507_v44 }
 0x186   : > { %v1194_v36 = vpop.eup %1193 }
 0x187   : > { %v480_v37 = vpop.xlane.xlu2 %479  ;;  %v472_v34 = vpop.xlane.xlu1 %471  ;;  %v513_v48 = vmul.f32 %v1194_v36, %v1357_v63 }
 0x188   : > { %1195 = vrcp.f32 %v480_v37 }
 0x189   : > { %1197 = vrcp.f32 %v472_v34 }
 0x18a   : > { %1199 = vrcp.f32 %v470_v38 }
 0x18d   : > { %612 = vmatmul.bf16.gmra.mxu1 %v520_v35 }
 0x18e   : > { %v1196_v41 = vpop.eup %1195 }
 0x18f   : > { %v514_v39 = vmul.f32 %v1196_v41, %v1363_v5  ;;  %v482_v42 = vpop.xlane.xlu2 %481  ;;  %v1198_v43 = vpop.eup %1197 }
 0x190   : > { %v1200_v53 = vpop.eup %1199  ;;  %1201 = vrcp.f32 %v482_v42  ;;  %v510_v46 = vmul.f32 %v1198_v43, %v1361_v3 }
 0x191   : > { %v523_v40 = vpack.c.bf16 %v514_v39, %v513_v48  ;;  %v509_v47 = vmul.f32 %v1200_v53, %v1355_v61 }
 0x193   : > { %627 = vmatmul.bf16.gmra.mxu3 %v523_v40  ;;  %v521_v49 = vpack.c.bf16 %v510_v46, %v509_v47 }
 0x196   : > { %v1202_v54 = vpop.eup %1201 }
 0x197   : > { %v484_v45 = vpop.xlane.xlu0 %483  ;;  %v515_v63 = vmul.f32 %v1202_v54, %v1367_v9 }
 0x198   : > { %1203 = vrcp.f32 %v484_v45 }
 0x199   : > { %1205 = vrcp.f32 %v1235_v6 }
 0x19d   : > { %617 = vmatmul.bf16.gmra.mxu1 %v521_v49 }
 0x19e   : > { %v1204_v58 = vpop.eup %1203 }
 0x19f   : > { %v516_v5 = vmul.f32 %v1204_v58, %v1384_v16  ;;  %v1206_v28 = vpop.eup %1205 }
 0x1a0   : > { %v685_v21 = vmul.f32 64.0, %v1206_v28  ;;  %vm689_vm0 = vweird.f32 %v1206_v28 }
 0x1a1   : > { %v524_v59 = vpack.c.bf16 %v516_v5, %v515_v63 }
 0x1a2   : > { %v686_v31 = vsub.f32 1.0, %v685_v21 }
 0x1a3   : > { %632 = vmatmul.bf16.gmra.mxu3 %v524_v59 }
 0x1a4   : > { %v687_v33 = vmul.f32 %v1206_v28, %v686_v31 }
 0x1a6   : > { %v688_v36 = vadd.f32 %v1206_v28, %v687_v33 }
 0x1a8   : > { %v1437_v41 = vsel %vm689_vm0, %v1206_v28, %v688_v36 }
 0x1da   : > { %v598_v60 = vpop.f32.mrf.mxu1 }
 0x1db   : > { %v655_v61 = vadd.f32 %v598_v60, %v1406_v29 }
 0x1e2   : > { %v600_v62 = vpop.f32.mrf.mxu1 }
 0x1e3   : > { %v656_v3 = vadd.f32 %v600_v62, %v1409_v30 }
 0x1e5   : > { %v671_v9 = vadd.f32 %v656_v3, %v655_v61 }
 0x1ea   : > { %v603_v0 = vpop.f32.mrf.mxu1 }
 0x1eb   : > { %v657_v24 = vadd.f32 %v603_v0, %v1398_v23 }
 0x1ed   : > { %v672_v8 = vadd.f32 %v671_v9, %v657_v24 }
 0x1f2   : > { %v605_v1 = vpop.f32.mrf.mxu1 }
 0x1f3   : > { %v658_v16 = vadd.f32 %v605_v1, %v1401_v25 }
 0x1f5   : > { %v673_v13 = vadd.f32 %v672_v8, %v658_v16 }
 0x1fa   : > { %v608_v20 = vpop.f32.mrf.mxu1 }
 0x1fb   : > { %v659_v10 = vadd.f32 %v608_v20, %v1390_v18 }
 0x1fd   : > { %v674_v17 = vadd.f32 %v673_v13, %v659_v10 }
 0x202   : > { %v610_v2 = vpop.f32.mrf.mxu1 }
 0x203   : > { %v660_v32 = vadd.f32 %v610_v2, %v1393_v19 }
 0x205   : > { %v675_v23 = vadd.f32 %v674_v17, %v660_v32 }
 0x206   : > { %v623_v4 = vpop.f32.mrf.mxu3 }
 0x207   : > { %v665_v58 = vadd.f32 %v623_v4, %v1345_v56 }
 0x20a   : > { %v613_v7 = vpop.f32.mrf.mxu1 }
 0x20b   : > { %v661_v30 = vadd.f32 %v613_v7, %v1379_v14 }
 0x20d   : > { %v676_v26 = vadd.f32 %v675_v23, %v661_v30 }
 0x20e   : > { %v625_v29 = vpop.f32.mrf.mxu3 }
 0x20f   : > { %v666_v60 = vadd.f32 %v625_v29, %v1348_v57 }
 0x212   : > { %v615_v22 = vpop.f32.mrf.mxu1 }
 0x213   : > { %v662_v27 = vadd.f32 %v615_v22, %v1382_v15 }
 0x215   : > { %v677_v25 = vadd.f32 %v676_v26, %v662_v27 }
 0x216   : > { %v628_v44 = vpop.f32.mrf.mxu3 }
 0x217   : > { %v678_v37 = vrot.slane %v677_v25, 4 }
 0x219   : > { %v679_v18 = vadd.f32 %v678_v37, %v677_v25 }
 0x21a   : > { %v618_v34 = vpop.f32.mrf.mxu1 }
 0x21b   : > { %v680_v35 = vrot.slane %v679_v18, 2  ;;  %v663_v49 = vadd.f32 %v618_v34, %v1371_v11 }
 0x21d   : > { %v681_v19 = vadd.f32 %v680_v35, %v679_v18 }
 0x21e   : > { %v630_v14 = vpop.f32.mrf.mxu3 }
 0x21f   : > { %v682_v38 = vrot.slane %v681_v19, 1 }
 0x221   : > { %v683_v48 = vadd.f32 %v682_v38, %v681_v19 }
 0x222   : > { %v620_v39 = vpop.f32.mrf.mxu1 }
 0x223   : > { %v691_v40 = vmul.f32 %v1437_v41, %v683_v48  ;;  %v664_v53 = vadd.f32 %v620_v39, %v1374_v12 }
 0x225   : > { %v1440_v15 = vsub.f32 %v655_v61, %v691_v40  ;;  %v1442_v42 = vsub.f32 %v656_v3, %v691_v40  ;;  %v1444_v43 = vsub.f32 %v657_v24, %v691_v40  ;;  %v1447_v45 = vsub.f32 %v658_v16, %v691_v40 }
 0x226   : > { %v633_v54 = vpop.f32.mrf.mxu3  ;;  %v1455_v63 = vsub.f32 %v659_v10, %v691_v40  ;;  %v749_v12 = vadd.f32 %v664_v53, %v663_v49  ;;  %v1460_v62 = vsub.f32 %v660_v32, %v691_v40  ;;  %v1464_v11 = vsub.f32 %v661_v30, %v691_v40 }
 0x227   : > { %v700_v46 = vmul.f32 %v1440_v15, %v1440_v15  ;;  %v701_v47 = vmul.f32 %v1442_v42, %v1442_v42  ;;  %v702_v5 = vmul.f32 %v1444_v43, %v1444_v43  ;;  %v703_v0 = vmul.f32 %v1447_v45, %v1447_v45 }
 0x228   : > { %v750_v20 = vadd.f32 %v749_v12, %v665_v58  ;;  %v704_v56 = vmul.f32 %v1455_v63, %v1455_v63  ;;  %v667_v3 = vadd.f32 %v628_v44, %v1335_v52  ;;  %v668_v24 = vadd.f32 %v630_v14, %v1342_v55 }
 0x229   : > { %v708_v59 = vadd.f32 %v701_v47, %v700_v46  ;;  %v1470_v4 = vsub.f32 %v662_v27, %v691_v40  ;;  %v705_v57 = vmul.f32 %v1460_v62, %v1460_v62  ;;  %v706_v7 = vmul.f32 %v1464_v11, %v1464_v11 }
 0x22a   : > { %v751_v61 = vadd.f32 %v750_v20, %v666_v60  ;;  %v669_v10 = vadd.f32 %v633_v54, %v1329_v50 }
 0x22b   : > { %v709_v1 = vadd.f32 %v708_v59, %v702_v5  ;;  %v707_v55 = vmul.f32 %v1470_v4, %v1470_v4 }
 0x22c   : > { %v752_v9 = vadd.f32 %v751_v61, %v667_v3 }
 0x22d   : > { %v710_v2 = vadd.f32 %v709_v1, %v703_v0 }
 0x22e   : > { %v635_v16 = vpop.f32.mrf.mxu3  ;;  %v753_v28 = vadd.f32 %v752_v9, %v668_v24 }
 0x22f   : > { %v711_v6 = vadd.f32 %v710_v2, %v704_v56  ;;  %v670_v52 = vadd.f32 %v635_v16, %v1332_v51 }
 0x230   : > { %v754_v32 = vadd.f32 %v753_v28, %v669_v10 }
 0x231   : > { %v712_v8 = vadd.f32 %v711_v6, %v705_v57 }
 0x232   : > { %v755_v30 = vadd.f32 %v754_v32, %v670_v52 }
 0x233   : > { %v713_v13 = vadd.f32 %v712_v8, %v706_v7 }
 0x234   : > { %v756_v21 = vrot.slane %v755_v30, 4 }
 0x235   : > { %v714_v17 = vadd.f32 %v713_v13, %v707_v55 }
 0x236   : > { %v757_v22 = vadd.f32 %v756_v21, %v755_v30 }
 0x237   : > { %v715_v29 = vrot.slane %v714_v17, 4 }
 0x238   : > { %v758_v27 = vrot.slane %v757_v22, 2 }
 0x239   : > { %v716_v23 = vadd.f32 %v715_v29, %v714_v17 }
 0x23a   : > { %v759_v25 = vadd.f32 %v758_v27, %v757_v22 }
 0x23b   : > { %v717_v26 = vrot.slane %v716_v23, 2 }
 0x23c   : > { %v760_v50 = vrot.slane %v759_v25, 1 }
 0x23d   : > { %v718_v31 = vadd.f32 %v717_v26, %v716_v23 }
 0x23e   : > { %v761_v33 = vadd.f32 %v760_v50, %v759_v25 }
 0x23f   : > { %v719_v37 = vrot.slane %v718_v31, 1 }
 0x240   : > { %v762_v18 = vmul.f32 %v761_v33, %v1437_v41 }
 0x241   : > { %v720_v44 = vadd.f32 %v719_v37, %v718_v31 }
 0x242   : > { %v1482_v35 = vsub.f32 %v663_v49, %v762_v18  ;;  %v1484_v36 = vsub.f32 %v664_v53, %v762_v18  ;;  %v1486_v19 = vsub.f32 %v665_v58, %v762_v18  ;;  %v1490_v14 = vsub.f32 %v666_v60, %v762_v18 }
 0x243   : > { %v721_v51 = vmul.f32 %v720_v44, %v1437_v41  ;;  %v1494_v39 = vsub.f32 %v667_v3, %v762_v18  ;;  %v1498_v47 = vsub.f32 %v668_v24, %v762_v18  ;;  %v1502_v5 = vsub.f32 %v669_v10, %v762_v18 }
 0x244   : > { %v771_v38 = vmul.f32 %v1482_v35, %v1482_v35  ;;  %v772_v48 = vmul.f32 %v1484_v36, %v1484_v36  ;;  %v773_v40 = vmul.f32 %v1486_v19, %v1486_v19  ;;  %v774_v53 = vmul.f32 %v1490_v14, %v1490_v14 }
 0x245   : > { %v722_v34 = vadd.f32 1e-05, %v721_v51  ;;  %v775_v59 = vmul.f32 %v1494_v39, %v1494_v39  ;;  %v770_v0 = vsub.f32 %v670_v52, %v762_v18  ;;  %v776_v1 = vmul.f32 %v1498_v47, %v1498_v47 }
 0x246   : > { %v779_v46 = vadd.f32 %v772_v48, %v771_v38  ;;  %v777_v2 = vmul.f32 %v1502_v5, %v1502_v5 }
 0x247   : > { %1207 = vrsqrt.f32 %v722_v34  ;;  %v778_v24 = vmul.f32 %v770_v0, %v770_v0  ;;  %vm729_vm2 = vweird.f32 %v722_v34 }
 0x248   : > { %v780_v49 = vadd.f32 %v779_v46, %v773_v40 }
 0x24a   : > { %v781_v12 = vadd.f32 %v780_v49, %v774_v53 }
 0x24c   : > { %v782_v20 = vadd.f32 %v781_v12, %v775_v59 }
 0x24d   : > { %v1208_v54 = vpop.eup %1207 }
 0x24e   : > { %v724_v58 = vmul.f32 %v1208_v54, %v722_v34  ;;  %v783_v3 = vadd.f32 %v782_v20, %v776_v1  ;;  %vm730_vm1 = vweird.f32 %v1208_v54 }
 0x24f   : > { %vm731_vm3 = vmor %vm729_vm2, %vm730_vm1 }
 0x250   : > { %v725_v60 = vmul.f32 %v1208_v54, %v724_v58  ;;  %v784_v57 = vadd.f32 %v783_v3, %v777_v2 }
 0x252   : > { %v726_v56 = vmul.f32 0.5, %v725_v60  ;;  %v785_v9 = vadd.f32 %v784_v57, %v778_v24 }
 0x254   : > { %v727_v61 = vsub.f32 1.5, %v726_v56  ;;  %v786_v7 = vrot.slane %v785_v9, 4 }
 0x256   : > { %v728_v6 = vmul.f32 %v1208_v54, %v727_v61  ;;  %v787_v13 = vadd.f32 %v786_v7, %v785_v9 }
 0x258   : > { %v732_v16 = vsel %vm731_vm3, %v1208_v54, %v728_v6 }
 0x259   : > { %v733_v8 = vmul.f32 %v732_v16, %v1440_v15  ;;  %v734_v10 = vmul.f32 %v732_v16, %v1442_v42  ;;  %v735_v28 = vmul.f32 %v732_v16, %v1444_v43  ;;  %v736_v52 = vmul.f32 %v732_v16, %v1447_v45 }
 0x25a   : > { %v737_v55 = vmul.f32 %v732_v16, %v1455_v63  ;;  %v738_v32 = vmul.f32 %v732_v16, %v1460_v62  ;;  %v739_v17 = vmul.f32 %v732_v16, %v1464_v11  ;;  %v788_v15 = vrot.slane %v787_v13, 2 }
 0x25b   : > { %741 = vst [vmem:[%s1515_s23] sm:$0xff] %v733_v8  ;;  %v740_v30 = vmul.f32 %v732_v16, %v1470_v4 }
 0x25c   : > { %742 = vst [vmem:[%s1515_s23 + $0x8] sm:$0xff] %v734_v10  ;;  %v789_v42 = vadd.f32 %v788_v15, %v787_v13 }
 0x25d   : > { %743 = vst [vmem:[%s1515_s23 + $0x10] sm:$0xff] %v735_v28 }
 0x25e   : > { %744 = vst [vmem:[%s1515_s23 + $0x18] sm:$0xff] %v736_v52  ;;  %v790_v43 = vrot.slane %v789_v42, 1 }
 0x25f   : > { %745 = vst [vmem:[%s1515_s23 + $0x20] sm:$0xff] %v737_v55 }
 0x260   : > { %746 = vst [vmem:[%s1515_s23 + $0x28] sm:$0xff] %v738_v32  ;;  %v791_v45 = vadd.f32 %v790_v43, %v789_v42 }
 0x261   : > { %747 = vst [vmem:[%s1515_s23 + $0x30] sm:$0xff] %v739_v17 }
 0x262   : > { %748 = vst [vmem:[%s1515_s23 + $0x38] sm:$0xff] %v740_v30  ;;  %v792_v63 = vmul.f32 %v791_v45, %v1437_v41 }
 0x264   : > { %v793_v29 = vadd.f32 1e-05, %v792_v63 }
 0x266   : > { %1209 = vrsqrt.f32 %v793_v29  ;;  %vm800_vm5 = vweird.f32 %v793_v29 }
 0x26c   : > { %v1210_v62 = vpop.eup %1209 }
 0x26d   : > { %v795_v21 = vmul.f32 %v1210_v62, %v793_v29  ;;  %vm801_vm4 = vweird.f32 %v1210_v62 }
 0x26e   : > { %vm802_vm6 = vmor %vm800_vm5, %vm801_vm4 }
 0x26f   : > { %v796_v11 = vmul.f32 %v1210_v62, %v795_v21 }
 0x271   : > { %v797_v23 = vmul.f32 0.5, %v796_v11 }
 0x273   : > { %v798_v4 = vsub.f32 1.5, %v797_v23 }
 0x275   : > { %v799_v22 = vmul.f32 %v1210_v62, %v798_v4 }
 0x277   : > { %v803_v26 = vsel %vm802_vm6, %v1210_v62, %v799_v22 }
 0x278   : > { %v804_v41 = vmul.f32 %v803_v26, %v1482_v35  ;;  %v805_v27 = vmul.f32 %v803_v26, %v1484_v36  ;;  %v806_v31 = vmul.f32 %v803_v26, %v1486_v19  ;;  %v807_v25 = vmul.f32 %v803_v26, %v1490_v14 }
 0x279   : > { %v808_v37 = vmul.f32 %v803_v26, %v1494_v39  ;;  %v809_v50 = vmul.f32 %v803_v26, %v1498_v47  ;;  %v810_v44 = vmul.f32 %v803_v26, %v1502_v5  ;;  %v811_v33 = vmul.f32 %v803_v26, %v770_v0 }
 0x27a   : > { %812 = vst [vmem:[%s1515_s23 + $0x40] sm:$0xff] %v804_v41 }
 0x27b   : > { %813 = vst [vmem:[%s1515_s23 + $0x48] sm:$0xff] %v805_v27 }
 0x27c   : > { %814 = vst [vmem:[%s1515_s23 + $0x50] sm:$0xff] %v806_v31 }
 0x27d   : > { %815 = vst [vmem:[%s1515_s23 + $0x58] sm:$0xff] %v807_v25 }
 0x27e   : > { %816 = vst [vmem:[%s1515_s23 + $0x60] sm:$0xff] %v808_v37 }
 0x27f   : > { %817 = vst [vmem:[%s1515_s23 + $0x68] sm:$0xff] %v809_v50 }
 0x280   : > { %818 = vst [vmem:[%s1515_s23 + $0x70] sm:$0xff] %v810_v44 }
 0x281   : > { %819 = vst [vmem:[%s1515_s23 + $0x78] sm:$0xff] %v811_v33 }
 0x282 PF: > { %s12_s11 = sadd.s32 1, %s1233_s11   ;;  %s1561_s9 = smov %s1229_s10 }
 0x283   : > { %p9_p5 = scmp.ge.s32.totalorder %s12_s11, 4   ;;  %s1562_s10 = smov %s1564_s12 }
 0x285   :  { %11 = sbr.rel (!%p9_p5) target bundleno = 2 (0x2), region = 67 }

// kernel: transformer_forward.13
= control target key start
LH: loop header
LB: loop body
LE: loop exit
PB: predicated region body
PF: predicated region fallthrough
CT: control target
= control target key end

     0   :  { %8 = vsyncpa [#allocation3], 0  ;;  %s1088_s0 = inlined_call_operand.vmem [shape: bf16[2,64,128], index: 0, kind: input, shape index: {}]   ;;  %s1089_s1 = inlined_call_operand.vmem [shape: bf16[2,128,128], index: 1, kind: input, shape index: {}]   ;;  %s1090_s2 = inlined_call_operand.vmem [shape: bf16[2,128,128], index: 2, kind: input, shape index: {}]   ;;  %s1091_s3 = inlined_call_operand.hbm [shape: f32[2,64,128], index: 3, kind: output, shape index: {}]  }
   0x1   :  { %10 = vsyncpa [#allocation3 + $0x1], 0  ;;  %s967_s12 = smov 0   ;;  %s969_s13 = smov 0  }
   0x2   :  { %s971_s14 = smov 0   ;;  %s973_s15 = smov 0  }
   0x3   :  { %s975_s16 = smov 0   ;;  %s977_s17 = smov 0  }
   0x4 LB: > { %s639_s18 = sadd.s32 4294967295, %s943_s17   ;;  %s640_s19 = sadd.s32 4294967294, %s943_s17   ;;  %s943_s17 = sphi %s977_s17, %s16_s17   ;;  %s939_s16 = sphi %s975_s16, %s1098_s16   ;;  %s935_s15 = sphi %s973_s15, %s1097_s15   ;;  %s931_s14 = sphi %s971_s14, %s1096_s14   ;;  %s927_s13 = sphi %s969_s13, %s1095_s13   ;;  %s923_s12 = sphi %s967_s12, %s1094_s12  }
   0x5   : > { %s28_s20 = sadd.s32 1, %s939_s16  ;;  %s117_s21 = sadd.s32 1, %s931_s14 }
   0x6   : > { %p30_p0 = scmp.ge.s32.totalorder %s28_s20, 2  ;;  %p127_p1 = scmp.ne.s32.totalorder %s931_s14, %s927_s13 }
   0x7   : > { %p128_p2 = scmp.eq.s32.totalorder %s639_s18, 1  ;;  %p133_p3 = scmp.ne.s32.totalorder %s927_s13, %s923_s12 }
   0x8   : > { %s1100_s20 = smov (%p30_p0, %s28_s20), 0  ;;  %p134_p5 = scmp.eq.s32.totalorder %s640_s19, 1 }
   0x9   : > { %p1007_p4 = por %p128_p2, %p127_p1  ;;  %s112_s23 = ssub.s32 %s939_s16, %s1100_s20 }
   0xa   : > { %p643_p6 = scmp.ge.s32.totalorder %s943_s17, 1  ;;  %p115_p7 = scmp.eq.s32.totalorder %s112_s23, 0 }
   0xb   : > { %p1014_p8 = por %p134_p5, %p133_p3  ;;  %p181_p9 = scmp.lt.s32.totalorder %s943_s17, 3 }
   0xc   : > { %s1020_s25 = scalar_select %p115_p7, %s931_s14, %s117_s21  }
   0xd   : > { %p182_p10 = pnand %p643_p6, %p181_p9 }
   0xe   : > { %p220_p11 = scmp.lt.s32.totalorder (!%p182_p10), %s935_s15, 1  ;;  %s216_s11 = sand.u32 (!%p182_p10), 1, %s927_s13  }
   0xf   : > { %185 = sbr.rel (%p182_p10) target bundleno = 544 (0x220), region = 32  ;;  %s644_s18 = sshll.u32 (!%p182_p10), %s216_s11, 6 }
  0x10   : > { %s218_s19 = scalar_lea.vmem (!%p182_p10), [#allocation2], %s644_s18  ;;  %s759_s21 = sshll.u32 (!%p182_p10), %s935_s15, 6 }
  0x11   : > { %s533_s28 = sshll.u32 (!%p182_p10), %s218_s19, 4  ;;  %s534_s28 = int_to_ptr.vmem [resolvable:$true] %s533_s28 }
  0x14   : > { %s1024_s26 = scalar_select %p220_p11, %s935_s15, 1 }
  0x16   : > { %s737_s27 = sshll.u32 %s1024_s26, 6  ;;  %s736_s4 = sshll.u32 %s1024_s26, 5 }
  0x17   : > { %s233_s30 = scalar_lea.vmem %s1089_s1, %s737_s27  ;;  %s227_s7 = scalar_lea.vmem %s1088_s0, %s736_s4 }
  0x18   : > { %v750_v0 = vld [vmem:[%s233_s30 + $0x38] sm:$0xff]  ;;  %v749_v1 = vld [vmem:[%s233_s30 + $0x30] sm:$0xff]  ;;  %v748_v2 = vld [vmem:[%s233_s30 + $0x28] sm:$0xff]  ;;  %s1041_s10 = scalar_lea.vmem %s1090_s2, %s737_s27  ;;  %s532_s27 = scalar_lea.hbm %s1091_s3, %s759_s21 }
  0x19   : > { %336 = vmatpush.bf16.xpose.msra.mxu0 %v750_v0  ;;  %760 = vmatpush.bf16.xpose.msra.mxu2 %v750_v0  ;;  %v747_v3 = vld [vmem:[%s233_s30 + $0x20] sm:$0xff]  ;;  %v746_v4 = vld [vmem:[%s233_s30 + $0x18] sm:$0xff]  ;;  %v745_v5 = vld [vmem:[%s233_s30 + $0x10] sm:$0xff]  ;;  %s535_s29 = sshll.u32 %s532_s27, 4  ;;  %s536_s29 = int_to_ptr.hbm [resolvable:$true] %s535_s29 }
  0x1a   : > { %761 = vmatpush.bf16.xpose.msra.mxu3 %v750_v0  ;;  %v744_v6 = vld [vmem:[%s233_s30 + $0x8] sm:$0xff]  ;;  %v743_v7 = vld [vmem:[%s233_s30] sm:$0xff]  ;;  %v741_v10 = vld [vmem:[%s227_s7 + $0x10] sm:$0xff]  ;;  %s519_s30 = scalar_lea.sflag [#allocation3], %s216_s11  ;;  %s879_s4 = sshra.s32 %s536_s29, 4  ;;  %s880_s4 = int_to_ptr.hbm [resolvable:$true] %s879_s4 }
  0x1b   : > { %v739_v8 = vld [vmem:[%s227_s7] sm:$0xff]  ;;  %v740_v9 = vld [vmem:[%s227_s7 + $0x8] sm:$0xff]  ;;  %v742_v11 = vld [vmem:[%s227_s7 + $0x18] sm:$0xff]  ;;  %s881_s5 = scalar_lea.hbm %s880_s4, 64  ;;  %s885_s7 = scalar_lea.hbm %s1091_s3, 128 }
  0x1c   : > { %v758_v21 = vld [vmem:[%s1041_s10 + $0x38] sm:$0xff]  ;;  %v757_v22 = vld [vmem:[%s1041_s10 + $0x30] sm:$0xff]  ;;  %v756_v27 = vld [vmem:[%s1041_s10 + $0x28] sm:$0xff]  ;;  %p882_p12 = scmp.ne.s32.totalorder %s880_s4, %s881_s5  ;;  %p886_p1 = scmp.lt.s32.totalorder %s880_s4, %s1091_s3 }
  0x1d   : > { %481 = vmatpush.bf16.msra.mxu1 %v758_v21  ;;  %v755_v39 = vld [vmem:[%s1041_s10 + $0x20] sm:$0xff]  ;;  %v754_v40 = vld [vmem:[%s1041_s10 + $0x18] sm:$0xff]  ;;  %v753_v41 = vld [vmem:[%s1041_s10 + $0x10] sm:$0xff]  ;;  %p887_p2 = scmp.lt.s32.totalorder %s885_s7, %s881_s5 }
  0x1e   : > { %v752_v42 = vld [vmem:[%s1041_s10 + $0x8] sm:$0xff]  ;;  %v751_v43 = vld [vmem:[%s1041_s10] sm:$0xff]  ;;  %p883_p13 = pnand %p882_p12, %p1007_p4 }
  0x1f   : > { %p888_p3 = por %p887_p2, %p886_p1 }
  0x20   : > { %p884_p0 = pneg %p883_p13 }
  0x21   : > { %337 = vmatpush.bf16.xpose.msra.mxu0 %v749_v1  ;;  %762 = vmatpush.bf16.xpose.msra.mxu2 %v749_v1 }
  0x22   : > { %763 = vmatpush.bf16.xpose.msra.mxu3 %v749_v1  ;;  %482 = vmatpush.bf16.msra.mxu1 %v757_v22  ;;  %p889_p5 = pnand %p888_p3, %p884_p0 }
  0x26   : > { %483 = vmatpush.bf16.msra.mxu1 %v756_v27 }
  0x29   : > { %338 = vmatpush.bf16.xpose.msra.mxu0 %v748_v2  ;;  %764 = vmatpush.bf16.xpose.msra.mxu2 %v748_v2 }
  0x2a   : > { %765 = vmatpush.bf16.xpose.msra.mxu3 %v748_v2  ;;  %484 = vmatpush.bf16.msra.mxu1 %v755_v39 }
  0x2e   : > { %485 = vmatpush.bf16.msra.mxu1 %v754_v40 }
  0x31   : > { %339 = vmatpush.bf16.xpose.msra.mxu0 %v747_v3  ;;  %766 = vmatpush.bf16.xpose.msra.mxu2 %v747_v3 }
  0x32   : > { %767 = vmatpush.bf16.xpose.msra.mxu3 %v747_v3  ;;  %486 = vmatpush.bf16.msra.mxu1 %v753_v41 }
  0x36   : > { %487 = vmatpush.bf16.msra.mxu1 %v752_v42 }
  0x39   : > { %340 = vmatpush.bf16.xpose.msra.mxu0 %v746_v4  ;;  %768 = vmatpush.bf16.xpose.msra.mxu2 %v746_v4 }
  0x3a   : > { %769 = vmatpush.bf16.xpose.msra.mxu3 %v746_v4  ;;  %488 = vmatpush.bf16.msra.mxu1 %v751_v43 }
  0x41   : > { %341 = vmatpush.bf16.xpose.msra.mxu0 %v745_v5  ;;  %770 = vmatpush.bf16.xpose.msra.mxu2 %v745_v5 }
  0x42   : > { %771 = vmatpush.bf16.xpose.msra.mxu3 %v745_v5 }
  0x49   : > { %342 = vmatpush.bf16.xpose.msra.mxu0 %v744_v6  ;;  %772 = vmatpush.bf16.xpose.msra.mxu2 %v744_v6 }
  0x4a   : > { %773 = vmatpush.bf16.xpose.msra.mxu3 %v744_v6 }
  0x51   : > { %343 = vmatpush.bf16.xpose.msra.mxu0 %v743_v7  ;;  %774 = vmatpush.bf16.xpose.msra.mxu2 %v743_v7 }
  0x52   : > { %775 = vmatpush.bf16.xpose.msra.mxu3 %v743_v7 }
  0x58   : > { %344 = vmatmul.bf16.vlgmr.msra.gmra.mxu0 %v739_v8  ;;  %349 = vmatmul.bf16.vlgmr.msra.gmra.mxu2 %v740_v9 }
  0x59   : > { %354 = vmatmul.bf16.vlgmr.msra.gmra.mxu3 %v741_v10 }
  0x69   : > { %359 = vmatmul.bf16.gmra.mxu3 %v742_v11 }
  0xd5   : > { %v345_v12 = vpop.f32.mrf.mxu0 }
  0xd6   : > { %v365_v13 = vmul.f32 1.442695, %v345_v12 }
  0xd8   : > { %833 = vpow2.f32 %v365_v13 }
  0xdb   : > { %v350_v14 = vpop.f32.mrf.mxu2 }
  0xdc   : > { %v369_v15 = vmul.f32 1.442695, %v350_v14  ;;  %v355_v16 = vpop.f32.mrf.mxu3 }
  0xdd   : > { %v373_v17 = vmul.f32 1.442695, %v355_v16  ;;  %v347_v18 = vpop.f32.mrf.mxu0 }
  0xde   : > { %v834_v19 = vpop.eup %833  ;;  %835 = vpow2.f32 %v369_v15  ;;  %v367_v20 = vmul.f32 1.442695, %v347_v18 }
  0xdf   : > { %837 = vpow2.f32 %v373_v17  ;;  %381 = vadd.xlane.f32.xlu0 %v834_v19 }
  0xe0   : > { %839 = vpow2.f32 %v367_v20 }
  0xe3   : > { %v352_v23 = vpop.f32.mrf.mxu2 }
  0xe4   : > { %v836_v24 = vpop.eup %835  ;;  %v371_v25 = vmul.f32 1.442695, %v352_v23  ;;  %v357_v26 = vpop.f32.mrf.mxu3 }
  0xe5   : > { %v838_v28 = vpop.eup %837  ;;  %v375_v29 = vmul.f32 1.442695, %v357_v26  ;;  %385 = vadd.xlane.f32.xlu1 %v836_v24 }
  0xe6   : > { %v840_v30 = vpop.eup %839  ;;  %841 = vpow2.f32 %v371_v25  ;;  %389 = vadd.xlane.f32.xlu2 %v838_v28 }
  0xe7   : > { %843 = vpow2.f32 %v375_v29  ;;  %383 = vadd.xlane.f32.xlu0 %v840_v30 }
  0xec   : > { %v842_v31 = vpop.eup %841  ;;  %v360_v32 = vpop.f32.mrf.mxu3 }
  0xed   : > { %v844_v33 = vpop.eup %843  ;;  %v377_v34 = vmul.f32 1.442695, %v360_v32  ;;  %387 = vadd.xlane.f32.xlu1 %v842_v31 }
  0xee   : > { %391 = vadd.xlane.f32.xlu2 %v844_v33 }
  0xef   : > { %845 = vpow2.f32 %v377_v34 }
  0xf4   : > { %v362_v35 = vpop.f32.mrf.mxu3 }
  0xf5   : > { %v846_v36 = vpop.eup %845  ;;  %v379_v37 = vmul.f32 1.442695, %v362_v35 }
  0xf6   : > { %393 = vadd.xlane.f32.xlu0 %v846_v36 }
  0xf7   : > { %847 = vpow2.f32 %v379_v37 }
  0xfd   : > { %v848_v38 = vpop.eup %847 }
  0xfe   : > { %395 = vadd.xlane.f32.xlu1 %v848_v38 }
 0x152   : > { %v382_v44 = vpop.xlane.xlu0 %381 }
 0x153   : > { %849 = vrcp.f32 %v382_v44 }
 0x158   : > { %v386_v45 = vpop.xlane.xlu1 %385 }
 0x159   : > { %v850_v47 = vpop.eup %849  ;;  %v390_v53 = vpop.xlane.xlu2 %389 }
 0x15a   : > { %v384_v46 = vpop.xlane.xlu0 %383  ;;  %v405_v49 = vmul.f32 %v850_v47, %v834_v19 }
 0x15b   : > { %851 = vrcp.f32 %v384_v46 }
 0x160   : > { %v388_v51 = vpop.xlane.xlu1 %387 }
 0x161   : > { %v852_v48 = vpop.eup %851  ;;  %853 = vrcp.f32 %v388_v51  ;;  %v392_v58 = vpop.xlane.xlu2 %391 }
 0x162   : > { %v406_v50 = vmul.f32 %v852_v48, %v840_v30  ;;  %855 = vrcp.f32 %v386_v45 }
 0x163   : > { %857 = vrcp.f32 %v392_v58 }
 0x164   : > { %v413_v52 = vpack.c.bf16 %v406_v50, %v405_v49  ;;  %859 = vrcp.f32 %v390_v53 }
 0x166   : > { %489 = vmatmul.bf16.vlgmr.msra.gmra.mxu1 %v413_v52 }
 0x167   : > { %v854_v54 = vpop.eup %853 }
 0x168   : > { %v856_v55 = vpop.eup %855  ;;  %v408_v56 = vmul.f32 %v854_v54, %v842_v31 }
 0x169   : > { %v407_v57 = vmul.f32 %v856_v55, %v836_v24  ;;  %v858_v60 = vpop.eup %857  ;;  %v394_v2 = vpop.xlane.xlu0 %393 }
 0x16a   : > { %v860_v61 = vpop.eup %859  ;;  %v410_v62 = vmul.f32 %v858_v60, %v844_v33 }
 0x16b   : > { %v414_v59 = vpack.c.bf16 %v408_v56, %v407_v57  ;;  %v409_v63 = vmul.f32 %v860_v61, %v838_v28 }
 0x16d   : > { %v415_v1 = vpack.c.bf16 %v410_v62, %v409_v63 }
 0x171   : > { %v396_v0 = vpop.xlane.xlu1 %395 }
 0x172   : > { %861 = vrcp.f32 %v396_v0 }
 0x173   : > { %863 = vrcp.f32 %v394_v2 }
 0x176   : > { %494 = vmatmul.bf16.gmra.mxu1 %v414_v59 }
 0x178   : > { %v862_v3 = vpop.eup %861 }
 0x179   : > { %v864_v4 = vpop.eup %863  ;;  %v412_v5 = vmul.f32 %v862_v3, %v848_v38 }
 0x17a   : > { %v411_v6 = vmul.f32 %v864_v4, %v846_v36 }
 0x17c   : > { %v416_v7 = vpack.c.bf16 %v412_v5, %v411_v6 }
 0x186   : > { %499 = vmatmul.bf16.gmra.mxu1 %v415_v1 }
 0x196   : > { %504 = vmatmul.bf16.gmra.mxu1 %v416_v7 }
 0x1e3   : > { %v490_v8 = vpop.f32.mrf.mxu1 }
 0x1e4   : > { %510 = vst [vmem:[%s218_s19] sm:$0xff] %v490_v8 }
 0x1eb   : > { %v492_v9 = vpop.f32.mrf.mxu1 }
 0x1ec   : > { %511 = vst [vmem:[%s218_s19 + $0x8] sm:$0xff] %v492_v9 }
 0x1f3   : > { %v495_v10 = vpop.f32.mrf.mxu1 }
 0x1f4   : > { %512 = vst [vmem:[%s218_s19 + $0x10] sm:$0xff] %v495_v10 }
 0x1fb   : > { %v497_v11 = vpop.f32.mrf.mxu1 }
 0x1fc   : > { %513 = vst [vmem:[%s218_s19 + $0x18] sm:$0xff] %v497_v11 }
 0x203   : > { %v500_v12 = vpop.f32.mrf.mxu1 }
 0x204   : > { %514 = vst [vmem:[%s218_s19 + $0x20] sm:$0xff] %v500_v12 }
 0x20b   : > { %v502_v13 = vpop.f32.mrf.mxu1 }
 0x20c   : > { %515 = vst [vmem:[%s218_s19 + $0x28] sm:$0xff] %v502_v13 }
 0x213   : > { %v505_v14 = vpop.f32.mrf.mxu1 }
 0x214   : > { %516 = vst [vmem:[%s218_s19 + $0x30] sm:$0xff] %v505_v14 }
 0x21b   : > { %v507_v15 = vpop.f32.mrf.mxu1 }
 0x21c   : > { %517 = vst [vmem:[%s218_s19 + $0x38] sm:$0xff] %v507_v15 }
 0x21d   : > { %892 = shalt.err (!%p889_p5)
}
 0x21e   : > { %s945_s10 = smov 128   ;;  %s946_s11 = smov 8  }
 0x21f   : > { %776 = dma.vmem_to_hbm [thread:$0]  (%p1007_p4), %s534_s28, 1024, %s536_s29, %s519_s30, %s945_s10, %s945_s10, %s946_s11  }
 0x220 PF: > { %p782_p6 = scmp.ge.s32.totalorder %s943_s17, 2  ;;  %s550_s18 = sand.u32 1, %s923_s12  }
 0x221   : > { %s551_s19 = scalar_lea.sflag [#allocation3], %s550_s18 }
 0x222   : > { %p779_p7 = pnand %p782_p6, %p1014_p8 }
 0x224   : > { %p780_p9 = pneg %p779_p7 }
 0x226   : > { %918 = dma.done.wait (%p780_p9), %s551_s19, 1024  }
 0x227   : > { %920 = vsyncadd (%p780_p9), %s551_s19, 4294966272  ;;  %s16_s17 = sadd.s32 1, %s943_s17   ;;  %s1094_s12 = smov %s927_s13 }
 0x228   : > { %p13_p10 = scmp.ge.s32.totalorder %s16_s17, 4   ;;  %s1095_s13 = smov %s931_s14 }
 0x229   : > { %s1096_s14 = smov %s1020_s25  ;;  %s1097_s15 = smov %s939_s16 }
 0x22a   : > { %s1098_s16 = smov %s1100_s20  ;;  %15 = sbr.rel (!%p13_p10) target bundleno = 4 (0x4), region = 73 }
 0x22f   :  { %557 = vsyncpa [#allocation3], 1 }
 0x230   :  { %559 = vsyncpa [#allocation3 + $0x1], 1 }

</bundles_post_ra>
